<compile_context>
chip_gen: v5e
topology: v5e:2x2
jax: 0.10.0
libtpu: 0.0.40
codegen_flags: <defaults>
</compile_context>

<pallas_src>
import functools

import jax
import jax.numpy as jnp
from jax.experimental import pallas as pl
from jax.experimental.pallas import tpu as pltpu


def _encoder_kernel(*refs, n_layers, hidden_size, seq_len, batch):
    ids_ref, emb_ref = refs[0], refs[1]
    w_ih = refs[2:2 + n_layers]
    w_hh = refs[2 + n_layers:2 + 2 * n_layers]
    b_refs = refs[2 + 2 * n_layers:2 + 3 * n_layers]
    out_ref, h_out_ref, c_out_ref, z0_scr, h_scr, c_scr = refs[2 + 3 * n_layers:]

    H = hidden_size
    V = emb_ref.shape[0]
    TB = seq_len * batch

    # Encoder always starts from a zero hidden state (pre_hidden=None in Recurrent.forward).
    h_scr[...] = jnp.zeros_like(h_scr)
    c_scr[...] = jnp.zeros_like(c_scr)

    # ---------------- hoisted out of the recurrence (no serial dependence) ----------------
    # (1) Embedding lookup for ALL timesteps as one one-hot MXU matmul.
    ids = ids_ref[...]                                              # (T*B, 1) int32
    vocab_iota = jax.lax.broadcasted_iota(jnp.int32, (TB, V), 1)
    one_hot = (ids == vocab_iota).astype(emb_ref.dtype)            # (T*B, V) bf16
    x_all = jnp.dot(one_hot, emb_ref[...],
                    preferred_element_type=jnp.float32)             # (T*B, D) f32
    # (2) Layer-0 input projection (+ its bias) for ALL timesteps in one big matmul.
    z0 = jnp.dot(x_all.astype(w_ih[0].dtype), w_ih[0][...],
                 preferred_element_type=jnp.float32)                # (T*B, 4H) f32
    z0 = z0 + jnp.broadcast_to(b_refs[0][...], (TB, 4 * H))
    z0_scr[...] = z0.reshape(seq_len, batch, 4 * H)

    # (3) Loop-invariant bias broadcasts (layers >= 1) and the g-gate pre-scale so a single
    #     sigmoid pass per layer covers the tanh gate: tanh(z) = 2*sigmoid(2z) - 1.
    biases = [jnp.broadcast_to(b_refs[l][...], (batch, 4 * H)) for l in range(1, n_layers)]
    lane = jax.lax.broadcasted_iota(jnp.int32, (batch, 4 * H), 1)
    g_scale = jnp.where((lane >= 2 * H) & (lane < 3 * H),
                        jnp.float32(2.0), jnp.float32(1.0))

    def timestep(t, carry):
        x = None
        for l in range(n_layers):
            h_prev = h_scr[l]                                       # (B, H) f32
            c_prev = c_scr[l]
            # Recurrent contraction only (input-side term precomputed for layer 0).
            hh = jnp.dot(h_prev.astype(w_hh[l].dtype), w_hh[l][...],
                         preferred_element_type=jnp.float32)
            if l == 0:
                gates = z0_scr[t] + hh
            else:
                gates = (jnp.dot(x.astype(w_ih[l].dtype), w_ih[l][...],
                                 preferred_element_type=jnp.float32)
                         + hh + biases[l - 1])
            # Single full-width sigmoid pass (EUP); g-gate tanh recovered on the VPU.
            s = jax.nn.sigmoid(gates * g_scale)
            i_g = s[:, 0 * H:1 * H]
            f_g = s[:, 1 * H:2 * H]
            g_g = 2.0 * s[:, 2 * H:3 * H] - 1.0
            o_g = s[:, 3 * H:4 * H]
            c_new = f_g * c_prev + i_g * g_g
            h_new = o_g * jnp.tanh(c_new)
            h_scr[l] = h_new
            c_scr[l] = c_new
            x = h_new                                               # feeds next layer
        out_ref[t] = x.astype(out_ref.dtype)                        # top-layer h_t (time-major)
        return carry

    if seq_len <= 16:
        # Fully static unroll: max scheduler visibility across independent (t, l) cells.
        for t in range(seq_len):
            timestep(t, 0)
    else:
        # Partial unroll still lets cell (t, l) overlap with (t-1, l+1) latency.
        jax.lax.fori_loop(0, seq_len, timestep, 0, unroll=4)

    h_out_ref[...] = h_scr[...]
    c_out_ref[...] = c_scr[...]


def init_encoder_params(key, vocab_size, embedding_dim, hidden_size, n_layers,
                        pad_id, bias=True, matmul_dtype=jnp.bfloat16):
    """Parameters mirroring Encoder(embedding_size, embedding_dim, rnn_dim, rnn_bias, pad_id, n_layers).

    Per layer the PyTorch (4H, K) LSTMCell weights are stored transposed and kept SPLIT:
        w_ih: (K_in, 4H) bf16,  w_hh: (H, 4H) bf16,  b = b_ih + b_hh: (1, 4H) f32.
    The embedding row at pad_id is zeroed (nn.Embedding padding_idx semantics).
    """
    key, k_emb = jax.random.split(key)
    emb = jax.random.normal(k_emb, (vocab_size, embedding_dim), jnp.float32)
    emb = emb.at[pad_id].set(0.0)

    layers = []
    d_in = embedding_dim
    bound = 1.0 / (hidden_size ** 0.5)
    for _ in range(n_layers):
        key, k1, k2, k3, k4 = jax.random.split(key, 5)
        w_ih_t = jax.random.uniform(k1, (d_in, 4 * hidden_size), jnp.float32, -bound, bound)
        w_hh_t = jax.random.uniform(k2, (hidden_size, 4 * hidden_size), jnp.float32, -bound, bound)
        if bias:
            b_ih = jax.random.uniform(k3, (4 * hidden_size,), jnp.float32, -bound, bound)
            b_hh = jax.random.uniform(k4, (4 * hidden_size,), jnp.float32, -bound, bound)
        else:
            b_ih = b_hh = jnp.zeros((4 * hidden_size,), jnp.float32)
        layers.append({
            "w_ih": w_ih_t.astype(matmul_dtype),
            "w_hh": w_hh_t.astype(matmul_dtype),
            "b": (b_ih + b_hh).reshape(1, 4 * hidden_size).astype(jnp.float32),
        })
        d_in = hidden_size
    return {"embedding": emb.astype(matmul_dtype), "layers": layers}


def encoder_forward(enc_input, params):
    """Encoder.forward: enc_input (B, T) int32 token ids
       -> (outputs (B, T, H) f32, (h_n, c_n) each (n_layers, B, H) f32)."""
    batch, seq_len = enc_input.shape
    emb = params["embedding"]
    layers = params["layers"]
    n_layers = len(layers)
    hidden_size = layers[0]["w_hh"].shape[0]

    # Time-major flattened ids (T*B, 1): the one-hot is built ONCE, outside the recurrence,
    # so keeping ids in VMEM is fine (SMEM ids are subsumed by the embedding hoist).
    ids = jnp.transpose(enc_input).reshape(seq_len * batch, 1).astype(jnp.int32)

    kernel = functools.partial(_encoder_kernel, n_layers=n_layers,
                               hidden_size=hidden_size, seq_len=seq_len, batch=batch)
    vmem = pl.BlockSpec(memory_space=pltpu.MemorySpace.VMEM)
    n_inputs = 2 + 3 * n_layers

    operands = [ids, emb]
    operands += [l["w_ih"] for l in layers]
    operands += [l["w_hh"] for l in layers]
    operands += [l["b"] for l in layers]

    # VMEM residency budget: raise v5e's 16 MiB scoped default, stay <= v7x's 64 MiB physical.
    out_bytes = (seq_len * batch * hidden_size + 2 * n_layers * batch * hidden_size) * 4
    scr_bytes = (seq_len * batch * 4 * hidden_size + 2 * n_layers * batch * hidden_size) * 4
    resident = sum(int(a.size) * a.dtype.itemsize for a in operands) + out_bytes + scr_bytes
    vmem_limit = int(min(max(2 * resident, 32 << 20), 64 << 20))

    out_tbh, h_n, c_n = pl.pallas_call(
        kernel,
        out_shape=(
            jax.ShapeDtypeStruct((seq_len, batch, hidden_size), jnp.float32),
            jax.ShapeDtypeStruct((n_layers, batch, hidden_size), jnp.float32),
            jax.ShapeDtypeStruct((n_layers, batch, hidden_size), jnp.float32),
        ),
        in_specs=[vmem] * n_inputs,
        out_specs=(vmem, vmem, vmem),
        scratch_shapes=[
            pltpu.VMEM((seq_len, batch, 4 * hidden_size), jnp.float32),  # precomputed layer-0 gates
            pltpu.VMEM((n_layers, batch, hidden_size), jnp.float32),     # h state
            pltpu.VMEM((n_layers, batch, hidden_size), jnp.float32),     # c state
        ],
        compiler_params=pltpu.CompilerParams(vmem_limit_bytes=vmem_limit),
    )(*operands)

    # TODO(synk): for v7x add a 'parallel' batch grid axis (second TensorCore) and, at realistic
    # vocab/seq sizes, keep the embedding in HBM (memory_space=pl.ANY) + time-chunk the output.
    outputs = jnp.transpose(out_tbh, (1, 0, 2))   # (B, T, H): torch.stack(outputs, dim=1)
    return outputs, (h_n, c_n)


def _reference_forward(enc_input, params):
    """Pure-JAX reference replicating the kernel math (bf16 matmul operands, f32 elsewhere)."""
    emb = params["embedding"]
    layers = params["layers"]
    batch, seq_len = enc_input.shape
    n_layers = len(layers)
    H = layers[0]["w_hh"].shape[0]

    h = jnp.zeros((n_layers, batch, H), jnp.float32)
    c = jnp.zeros((n_layers, batch, H), jnp.float32)
    outs = []
    for t in range(seq_len):
        x = emb[enc_input[:, t]].astype(jnp.float32)               # (B, D_emb)
        new_h, new_c = [], []
        for l, p in enumerate(layers):
            gates = (jnp.dot(x.astype(p["w_ih"].dtype), p["w_ih"],
                             preferred_element_type=jnp.float32)
                     + jnp.dot(h[l].astype(p["w_hh"].dtype), p["w_hh"],
                               preferred_element_type=jnp.float32)
                     + p["b"])
            i_g = jax.nn.sigmoid(gates[:, 0 * H:1 * H])
            f_g = jax.nn.sigmoid(gates[:, 1 * H:2 * H])
            g_g = jnp.tanh(gates[:, 2 * H:3 * H])
            o_g = jax.nn.sigmoid(gates[:, 3 * H:4 * H])
            c_l = f_g * c[l] + i_g * g_g
            h_l = o_g * jnp.tanh(c_l)
            new_h.append(h_l)
            new_c.append(c_l)
            x = h_l
        h = jnp.stack(new_h, 0)
        c = jnp.stack(new_c, 0)
        outs.append(x)
    return jnp.stack(outs, axis=1), (h, c)


if __name__ == "__main__":
    vocab_size = 64       # embedding_size
    embedding_dim = 16
    hidden_size = 32      # rnn_dim
    n_layers = 2
    pad_id = 0
    batch = 8
    seq_len = 8

    key = jax.random.PRNGKey(0)
    key, k_tok, k_par = jax.random.split(key, 3)

    enc_input = jax.random.randint(k_tok, (batch, seq_len), 1, vocab_size, dtype=jnp.int32)
    enc_input = enc_input.at[:, -2:].set(pad_id)   # trailing padding tokens

    params = init_encoder_params(k_par, vocab_size, embedding_dim, hidden_size,
                                 n_layers, pad_id, bias=True)

    outputs, (h_n, c_n) = encoder_forward(enc_input, params)
    outputs = jax.block_until_ready(outputs)
    h_n = jax.block_until_ready(h_n)
    c_n = jax.block_until_ready(c_n)

    ref_out, (ref_h, ref_c) = _reference_forward(enc_input, params)
    assert outputs.shape == (batch, seq_len, hidden_size)
    assert h_n.shape == (n_layers, batch, hidden_size)
    assert c_n.shape == (n_layers, batch, hidden_size)
    assert jnp.allclose(outputs, ref_out, atol=1e-3, rtol=1e-3)
    assert jnp.allclose(h_n, ref_h, atol=1e-3, rtol=1e-3)
    assert jnp.allclose(c_n, ref_c, atol=1e-3, rtol=1e-3)

    print("KERNEL_OK")
</pallas_src>

<mosaic_0001>
module attributes {stable_mosaic.version = 11 : i64} {
  func.func @_encoder_kernel(%arg0: memref<64x1xi32, #tpu.memory_space<vmem>>, %arg1: memref<64x16xbf16, #tpu.memory_space<vmem>>, %arg2: memref<16x128xbf16, #tpu.memory_space<vmem>>, %arg3: memref<32x128xbf16, #tpu.memory_space<vmem>>, %arg4: memref<32x128xbf16, #tpu.memory_space<vmem>>, %arg5: memref<32x128xbf16, #tpu.memory_space<vmem>>, %arg6: memref<1x128xf32, #tpu.memory_space<vmem>>, %arg7: memref<1x128xf32, #tpu.memory_space<vmem>>, %arg8: memref<8x8x32xf32, #tpu.memory_space<vmem>>, %arg9: memref<2x8x32xf32, #tpu.memory_space<vmem>>, %arg10: memref<2x8x32xf32, #tpu.memory_space<vmem>>, %arg11: memref<8x8x128xf32, #tpu.memory_space<vmem>>, %arg12: memref<2x8x32xf32, #tpu.memory_space<vmem>>, %arg13: memref<2x8x32xf32, #tpu.memory_space<vmem>>) attributes {dimension_semantics = [], scalar_prefetch = 0 : i64, scratch_operands = 3 : i64, tpu.core_type = #tpu.core_type<tc>} {
    %cst = arith.constant 0.000000e+00 : f32
    %0 = vector.broadcast %cst : f32 to vector<2x8x32xf32>
    %c0 = arith.constant 0 : index
    %c0_0 = arith.constant 0 : index
    %c0_1 = arith.constant 0 : index
    %1 = vector.load %arg12[%c0, %c0_0, %c0_1] : memref<2x8x32xf32, #tpu.memory_space<vmem>>, vector<2x8x32xf32>
    tpu.vector_store %arg12[%c0, %c0_0, %c0_1], %0 {strides = array<i32>} : memref<2x8x32xf32, #tpu.memory_space<vmem>>, vector<2x8x32xf32>,
    %cst_2 = arith.constant 0.000000e+00 : f32
    %2 = vector.broadcast %cst_2 : f32 to vector<2x8x32xf32>
    %c0_3 = arith.constant 0 : index
    %c0_4 = arith.constant 0 : index
    %c0_5 = arith.constant 0 : index
    %3 = vector.load %arg13[%c0_3, %c0_4, %c0_5] : memref<2x8x32xf32, #tpu.memory_space<vmem>>, vector<2x8x32xf32>
    tpu.vector_store %arg13[%c0_3, %c0_4, %c0_5], %2 {strides = array<i32>} : memref<2x8x32xf32, #tpu.memory_space<vmem>>, vector<2x8x32xf32>,
    %c0_6 = arith.constant 0 : index
    %c0_7 = arith.constant 0 : index
    %4 = vector.load %arg0[%c0_6, %c0_7] : memref<64x1xi32, #tpu.memory_space<vmem>>, vector<64x1xi32>
    %5 = tpu.iota {dimensions = array<i32: 1>} : vector<64x64xi32>
    %6 = vector.broadcast %4 : vector<64x1xi32> to vector<64x64xi32>
    %7 = arith.cmpi eq, %6, %5 : vector<64x64xi32>
    %8 = arith.extui %7 : vector<64x64xi1> to vector<64x64xi32>
    %9 = arith.sitofp %8 : vector<64x64xi32> to vector<64x64xf32>
    %10 = arith.truncf %9 : vector<64x64xf32> to vector<64x64xbf16>
    %c0_8 = arith.constant 0 : index
    %c0_9 = arith.constant 0 : index
    %11 = vector.load %arg1[%c0_8, %c0_9] : memref<64x16xbf16, #tpu.memory_space<vmem>>, vector<64x16xbf16>
    %cst_10 = arith.constant dense<0.000000e+00> : vector<64x16xf32>
    %12 = tpu.matmul %10, %11, %cst_10 {dimension_numbers = #tpu.dot_dimension_numbers<[1], [0], [0], [1], [0, 0, 1, 1], [], []>} : vector<64x64xbf16>, vector<64x16xbf16>, vector<64x16xf32> -> vector<64x16xf32>
    %13 = arith.truncf %12 : vector<64x16xf32> to vector<64x16xbf16>
    %c0_11 = arith.constant 0 : index
    %c0_12 = arith.constant 0 : index
    %14 = vector.load %arg2[%c0_11, %c0_12] : memref<16x128xbf16, #tpu.memory_space<vmem>>, vector<16x128xbf16>
    %cst_13 = arith.constant dense<0.000000e+00> : vector<64x128xf32>
    %15 = tpu.matmul %13, %14, %cst_13 {dimension_numbers = #tpu.dot_dimension_numbers<[1], [0], [0], [1], [0, 0, 1, 1], [], []>} : vector<64x16xbf16>, vector<16x128xbf16>, vector<64x128xf32> -> vector<64x128xf32>
    %c0_14 = arith.constant 0 : index
    %c0_15 = arith.constant 0 : index
    %16 = vector.load %arg6[%c0_14, %c0_15] : memref<1x128xf32, #tpu.memory_space<vmem>>, vector<1x128xf32>
    %17 = vector.shape_cast %16 : vector<1x128xf32> to vector<1x128xf32>
    %18 = vector.broadcast %17 : vector<1x128xf32> to vector<64x128xf32>
    %19 = arith.addf %15, %18 : vector<64x128xf32>
    %20 = vector.shape_cast %19 : vector<64x128xf32> to vector<8x8x128xf32>
    %c0_16 = arith.constant 0 : index
    %c0_17 = arith.constant 0 : index
    %c0_18 = arith.constant 0 : index
    %21 = vector.load %arg11[%c0_16, %c0_17, %c0_18] : memref<8x8x128xf32, #tpu.memory_space<vmem>>, vector<8x8x128xf32>
    tpu.vector_store %arg11[%c0_16, %c0_17, %c0_18], %20 {strides = array<i32>} : memref<8x8x128xf32, #tpu.memory_space<vmem>>, vector<8x8x128xf32>,
    %c0_19 = arith.constant 0 : index
    %c0_20 = arith.constant 0 : index
    %22 = vector.load %arg7[%c0_19, %c0_20] : memref<1x128xf32, #tpu.memory_space<vmem>>, vector<1x128xf32>
    %23 = vector.shape_cast %22 : vector<1x128xf32> to vector<1x128xf32>
    %24 = vector.broadcast %23 : vector<1x128xf32> to vector<8x128xf32>
    %25 = tpu.iota {dimensions = array<i32: 1>} : vector<8x128xi32>
    %c64_i32 = arith.constant 64 : i32
    %26 = vector.broadcast %c64_i32 : i32 to vector<8x128xi32>
    %27 = arith.cmpi sge, %25, %26 : vector<8x128xi32>
    %c96_i32 = arith.constant 96 : i32
    %28 = vector.broadcast %c96_i32 : i32 to vector<8x128xi32>
    %29 = arith.cmpi slt, %25, %28 : vector<8x128xi32>
    %30 = arith.andi %27, %29 : vector<8x128xi1>
    %cst_21 = arith.constant 2.000000e+00 : f32
    %cst_22 = arith.constant 1.000000e+00 : f32
    %31 = vector.broadcast %cst_21 : f32 to vector<8x128xf32>
    %32 = vector.broadcast %cst_22 : f32 to vector<8x128xf32>
    %33 = arith.select %30, %31, %32 : vector<8x128xi1>, vector<8x128xf32>
    %c0_23 = arith.constant 0 : index
    %c0_24 = arith.constant 0 : index
    %c0_25 = arith.constant 0 : index
    %34 = vector.load %arg12[%c0_23, %c0_24, %c0_25] : memref<2x8x32xf32, #tpu.memory_space<vmem>>, vector<1x8x32xf32>
    %35 = vector.shape_cast %34 : vector<1x8x32xf32> to vector<8x32xf32>
    %c0_26 = arith.constant 0 : index
    %c0_27 = arith.constant 0 : index
    %c0_28 = arith.constant 0 : index
    %36 = vector.load %arg13[%c0_26, %c0_27, %c0_28] : memref<2x8x32xf32, #tpu.memory_space<vmem>>, vector<1x8x32xf32>
    %37 = vector.shape_cast %36 : vector<1x8x32xf32> to vector<8x32xf32>
    %38 = arith.truncf %35 : vector<8x32xf32> to vector<8x32xbf16>
    %c0_29 = arith.constant 0 : index
    %c0_30 = arith.constant 0 : index
    %39 = vector.load %arg4[%c0_29, %c0_30] : memref<32x128xbf16, #tpu.memory_space<vmem>>, vector<32x128xbf16>
    %cst_31 = arith.constant dense<0.000000e+00> : vector<8x128xf32>
    %40 = tpu.matmul %38, %39, %cst_31 {dimension_numbers = #tpu.dot_dimension_numbers<[1], [0], [0], [1], [0, 0, 1, 1], [], []>} : vector<8x32xbf16>, vector<32x128xbf16>, vector<8x128xf32> -> vector<8x128xf32>
    %c0_32 = arith.constant 0 : index
    %c0_33 = arith.constant 0 : index
    %c0_34 = arith.constant 0 : index
    %41 = vector.load %arg11[%c0_32, %c0_33, %c0_34] : memref<8x8x128xf32, #tpu.memory_space<vmem>>, vector<1x8x128xf32>
    %42 = vector.shape_cast %41 : vector<1x8x128xf32> to vector<8x128xf32>
    %43 = arith.addf %42, %40 : vector<8x128xf32>
    %44 = arith.mulf %43, %33 : vector<8x128xf32>
    %45 = arith.negf %44 : vector<8x128xf32>
    %46 = math.exp %45 : vector<8x128xf32>
    %cst_35 = arith.constant 1.000000e+00 : f32
    %47 = vector.broadcast %cst_35 : f32 to vector<8x128xf32>
    %48 = arith.addf %47, %46 : vector<8x128xf32>
    %49 = arith.divf %47, %48 : vector<8x128xf32>
    %50 = vector.extract_strided_slice %49 {offsets = [0, 0], sizes = [8, 32], strides = [1, 1]} : vector<8x128xf32> to vector<8x32xf32>
    %51 = vector.extract_strided_slice %49 {offsets = [0, 32], sizes = [8, 32], strides = [1, 1]} : vector<8x128xf32> to vector<8x32xf32>
    %52 = vector.extract_strided_slice %49 {offsets = [0, 64], sizes = [8, 32], strides = [1, 1]} : vector<8x128xf32> to vector<8x32xf32>
    %cst_36 = arith.constant 2.000000e+00 : f32
    %53 = vector.broadcast %cst_36 : f32 to vector<8x32xf32>
    %54 = arith.mulf %53, %52 : vector<8x32xf32>
    %cst_37 = arith.constant 1.000000e+00 : f32
    %55 = vector.broadcast %cst_37 : f32 to vector<8x32xf32>
    %56 = arith.subf %54, %55 : vector<8x32xf32>
    %57 = vector.extract_strided_slice %49 {offsets = [0, 96], sizes = [8, 32], strides = [1, 1]} : vector<8x128xf32> to vector<8x32xf32>
    %58 = arith.mulf %51, %37 : vector<8x32xf32>
    %59 = arith.mulf %50, %56 : vector<8x32xf32>
    %60 = arith.addf %58, %59 : vector<8x32xf32>
    %61 = math.tanh %60 : vector<8x32xf32>
    %62 = arith.mulf %57, %61 : vector<8x32xf32>
    %c0_38 = arith.constant 0 : index
    %c0_39 = arith.constant 0 : index
    %c0_40 = arith.constant 0 : index
    %63 = vector.load %arg12[%c0_38, %c0_39, %c0_40] : memref<2x8x32xf32, #tpu.memory_space<vmem>>, vector<1x8x32xf32>
    %64 = vector.shape_cast %63 : vector<1x8x32xf32> to vector<8x32xf32>
    %65 = vector.shape_cast %62 : vector<8x32xf32> to vector<1x8x32xf32>
    tpu.vector_store %arg12[%c0_38, %c0_39, %c0_40], %65 {strides = array<i32>} : memref<2x8x32xf32, #tpu.memory_space<vmem>>, vector<1x8x32xf32>,
    %c0_41 = arith.constant 0 : index
    %c0_42 = arith.constant 0 : index
    %c0_43 = arith.constant 0 : index
    %66 = vector.load %arg13[%c0_41, %c0_42, %c0_43] : memref<2x8x32xf32, #tpu.memory_space<vmem>>, vector<1x8x32xf32>
    %67 = vector.shape_cast %66 : vector<1x8x32xf32> to vector<8x32xf32>
    %68 = vector.shape_cast %60 : vector<8x32xf32> to vector<1x8x32xf32>
    tpu.vector_store %arg13[%c0_41, %c0_42, %c0_43], %68 {strides = array<i32>} : memref<2x8x32xf32, #tpu.memory_space<vmem>>, vector<1x8x32xf32>,
    %c1 = arith.constant 1 : index
    %c0_44 = arith.constant 0 : index
    %c0_45 = arith.constant 0 : index
    %69 = vector.load %arg12[%c1, %c0_44, %c0_45] : memref<2x8x32xf32, #tpu.memory_space<vmem>>, vector<1x8x32xf32>
    %70 = vector.shape_cast %69 : vector<1x8x32xf32> to vector<8x32xf32>
    %c1_46 = arith.constant 1 : index
    %c0_47 = arith.constant 0 : index
    %c0_48 = arith.constant 0 : index
    %71 = vector.load %arg13[%c1_46, %c0_47, %c0_48] : memref<2x8x32xf32, #tpu.memory_space<vmem>>, vector<1x8x32xf32>
    %72 = vector.shape_cast %71 : vector<1x8x32xf32> to vector<8x32xf32>
    %73 = arith.truncf %70 : vector<8x32xf32> to vector<8x32xbf16>
    %c0_49 = arith.constant 0 : index
    %c0_50 = arith.constant 0 : index
    %74 = vector.load %arg5[%c0_49, %c0_50] : memref<32x128xbf16, #tpu.memory_space<vmem>>, vector<32x128xbf16>
    %cst_51 = arith.constant dense<0.000000e+00> : vector<8x128xf32>
    %75 = tpu.matmul %73, %74, %cst_51 {dimension_numbers = #tpu.dot_dimension_numbers<[1], [0], [0], [1], [0, 0, 1, 1], [], []>} : vector<8x32xbf16>, vector<32x128xbf16>, vector<8x128xf32> -> vector<8x128xf32>
    %76 = arith.truncf %62 : vector<8x32xf32> to vector<8x32xbf16>
    %c0_52 = arith.constant 0 : index
    %c0_53 = arith.constant 0 : index
    %77 = vector.load %arg3[%c0_52, %c0_53] : memref<32x128xbf16, #tpu.memory_space<vmem>>, vector<32x128xbf16>
    %cst_54 = arith.constant dense<0.000000e+00> : vector<8x128xf32>
    %78 = tpu.matmul %76, %77, %cst_54 {dimension_numbers = #tpu.dot_dimension_numbers<[1], [0], [0], [1], [0, 0, 1, 1], [], []>} : vector<8x32xbf16>, vector<32x128xbf16>, vector<8x128xf32> -> vector<8x128xf32>
    %79 = arith.addf %78, %75 : vector<8x128xf32>
    %80 = arith.addf %79, %24 : vector<8x128xf32>
    %81 = arith.mulf %80, %33 : vector<8x128xf32>
    %82 = arith.negf %81 : vector<8x128xf32>
    %83 = math.exp %82 : vector<8x128xf32>
    %cst_55 = arith.constant 1.000000e+00 : f32
    %84 = vector.broadcast %cst_55 : f32 to vector<8x128xf32>
    %85 = arith.addf %84, %83 : vector<8x128xf32>
    %86 = arith.divf %84, %85 : vector<8x128xf32>
    %87 = vector.extract_strided_slice %86 {offsets = [0, 0], sizes = [8, 32], strides = [1, 1]} : vector<8x128xf32> to vector<8x32xf32>
    %88 = vector.extract_strided_slice %86 {offsets = [0, 32], sizes = [8, 32], strides = [1, 1]} : vector<8x128xf32> to vector<8x32xf32>
    %89 = vector.extract_strided_slice %86 {offsets = [0, 64], sizes = [8, 32], strides = [1, 1]} : vector<8x128xf32> to vector<8x32xf32>
    %cst_56 = arith.constant 2.000000e+00 : f32
    %90 = vector.broadcast %cst_56 : f32 to vector<8x32xf32>
    %91 = arith.mulf %90, %89 : vector<8x32xf32>
    %cst_57 = arith.constant 1.000000e+00 : f32
    %92 = vector.broadcast %cst_57 : f32 to vector<8x32xf32>
    %93 = arith.subf %91, %92 : vector<8x32xf32>
    %94 = vector.extract_strided_slice %86 {offsets = [0, 96], sizes = [8, 32], strides = [1, 1]} : vector<8x128xf32> to vector<8x32xf32>
    %95 = arith.mulf %88, %72 : vector<8x32xf32>
    %96 = arith.mulf %87, %93 : vector<8x32xf32>
    %97 = arith.addf %95, %96 : vector<8x32xf32>
    %98 = math.tanh %97 : vector<8x32xf32>
    %99 = arith.mulf %94, %98 : vector<8x32xf32>
    %c1_58 = arith.constant 1 : index
    %c0_59 = arith.constant 0 : index
    %c0_60 = arith.constant 0 : index
    %100 = vector.load %arg12[%c1_58, %c0_59, %c0_60] : memref<2x8x32xf32, #tpu.memory_space<vmem>>, vector<1x8x32xf32>
    %101 = vector.shape_cast %100 : vector<1x8x32xf32> to vector<8x32xf32>
    %102 = vector.shape_cast %99 : vector<8x32xf32> to vector<1x8x32xf32>
    tpu.vector_store %arg12[%c1_58, %c0_59, %c0_60], %102 {strides = array<i32>} : memref<2x8x32xf32, #tpu.memory_space<vmem>>, vector<1x8x32xf32>,
    %c1_61 = arith.constant 1 : index
    %c0_62 = arith.constant 0 : index
    %c0_63 = arith.constant 0 : index
    %103 = vector.load %arg13[%c1_61, %c0_62, %c0_63] : memref<2x8x32xf32, #tpu.memory_space<vmem>>, vector<1x8x32xf32>
    %104 = vector.shape_cast %103 : vector<1x8x32xf32> to vector<8x32xf32>
    %105 = vector.shape_cast %97 : vector<8x32xf32> to vector<1x8x32xf32>
    tpu.vector_store %arg13[%c1_61, %c0_62, %c0_63], %105 {strides = array<i32>} : memref<2x8x32xf32, #tpu.memory_space<vmem>>, vector<1x8x32xf32>,
    %c0_64 = arith.constant 0 : index
    %c0_65 = arith.constant 0 : index
    %c0_66 = arith.constant 0 : index
    %106 = vector.load %arg8[%c0_64, %c0_65, %c0_66] : memref<8x8x32xf32, #tpu.memory_space<vmem>>, vector<1x8x32xf32>
    %107 = vector.shape_cast %106 : vector<1x8x32xf32> to vector<8x32xf32>
    %108 = vector.shape_cast %99 : vector<8x32xf32> to vector<1x8x32xf32>
    tpu.vector_store %arg8[%c0_64, %c0_65, %c0_66], %108 {strides = array<i32>} : memref<8x8x32xf32, #tpu.memory_space<vmem>>, vector<1x8x32xf32>,
    %c0_67 = arith.constant 0 : index
    %c0_68 = arith.constant 0 : index
    %c0_69 = arith.constant 0 : index
    %109 = vector.load %arg12[%c0_67, %c0_68, %c0_69] : memref<2x8x32xf32, #tpu.memory_space<vmem>>, vector<1x8x32xf32>
    %110 = vector.shape_cast %109 : vector<1x8x32xf32> to vector<8x32xf32>
    %c0_70 = arith.constant 0 : index
    %c0_71 = arith.constant 0 : index
    %c0_72 = arith.constant 0 : index
    %111 = vector.load %arg13[%c0_70, %c0_71, %c0_72] : memref<2x8x32xf32, #tpu.memory_space<vmem>>, vector<1x8x32xf32>
    %112 = vector.shape_cast %111 : vector<1x8x32xf32> to vector<8x32xf32>
    %113 = arith.truncf %110 : vector<8x32xf32> to vector<8x32xbf16>
    %c0_73 = arith.constant 0 : index
    %c0_74 = arith.constant 0 : index
    %114 = vector.load %arg4[%c0_73, %c0_74] : memref<32x128xbf16, #tpu.memory_space<vmem>>, vector<32x128xbf16>
    %cst_75 = arith.constant dense<0.000000e+00> : vector<8x128xf32>
    %115 = tpu.matmul %113, %114, %cst_75 {dimension_numbers = #tpu.dot_dimension_numbers<[1], [0], [0], [1], [0, 0, 1, 1], [], []>} : vector<8x32xbf16>, vector<32x128xbf16>, vector<8x128xf32> -> vector<8x128xf32>
    %c1_76 = arith.constant 1 : index
    %c0_77 = arith.constant 0 : index
    %c0_78 = arith.constant 0 : index
    %116 = vector.load %arg11[%c1_76, %c0_77, %c0_78] : memref<8x8x128xf32, #tpu.memory_space<vmem>>, vector<1x8x128xf32>
    %117 = vector.shape_cast %116 : vector<1x8x128xf32> to vector<8x128xf32>
    %118 = arith.addf %117, %115 : vector<8x128xf32>
    %119 = arith.mulf %118, %33 : vector<8x128xf32>
    %120 = arith.negf %119 : vector<8x128xf32>
    %121 = math.exp %120 : vector<8x128xf32>
    %cst_79 = arith.constant 1.000000e+00 : f32
    %122 = vector.broadcast %cst_79 : f32 to vector<8x128xf32>
    %123 = arith.addf %122, %121 : vector<8x128xf32>
    %124 = arith.divf %122, %123 : vector<8x128xf32>
    %125 = vector.extract_strided_slice %124 {offsets = [0, 0], sizes = [8, 32], strides = [1, 1]} : vector<8x128xf32> to vector<8x32xf32>
    %126 = vector.extract_strided_slice %124 {offsets = [0, 32], sizes = [8, 32], strides = [1, 1]} : vector<8x128xf32> to vector<8x32xf32>
    %127 = vector.extract_strided_slice %124 {offsets = [0, 64], sizes = [8, 32], strides = [1, 1]} : vector<8x128xf32> to vector<8x32xf32>
    %cst_80 = arith.constant 2.000000e+00 : f32
    %128 = vector.broadcast %cst_80 : f32 to vector<8x32xf32>
    %129 = arith.mulf %128, %127 : vector<8x32xf32>
    %cst_81 = arith.constant 1.000000e+00 : f32
    %130 = vector.broadcast %cst_81 : f32 to vector<8x32xf32>
    %131 = arith.subf %129, %130 : vector<8x32xf32>
    %132 = vector.extract_strided_slice %124 {offsets = [0, 96], sizes = [8, 32], strides = [1, 1]} : vector<8x128xf32> to vector<8x32xf32>
    %133 = arith.mulf %126, %112 : vector<8x32xf32>
    %134 = arith.mulf %125, %131 : vector<8x32xf32>
    %135 = arith.addf %133, %134 : vector<8x32xf32>
    %136 = math.tanh %135 : vector<8x32xf32>
    %137 = arith.mulf %132, %136 : vector<8x32xf32>
    %c0_82 = arith.constant 0 : index
    %c0_83 = arith.constant 0 : index
    %c0_84 = arith.constant 0 : index
    %138 = vector.load %arg12[%c0_82, %c0_83, %c0_84] : memref<2x8x32xf32, #tpu.memory_space<vmem>>, vector<1x8x32xf32>
    %139 = vector.shape_cast %138 : vector<1x8x32xf32> to vector<8x32xf32>
    %140 = vector.shape_cast %137 : vector<8x32xf32> to vector<1x8x32xf32>
    tpu.vector_store %arg12[%c0_82, %c0_83, %c0_84], %140 {strides = array<i32>} : memref<2x8x32xf32, #tpu.memory_space<vmem>>, vector<1x8x32xf32>,
    %c0_85 = arith.constant 0 : index
    %c0_86 = arith.constant 0 : index
    %c0_87 = arith.constant 0 : index
    %141 = vector.load %arg13[%c0_85, %c0_86, %c0_87] : memref<2x8x32xf32, #tpu.memory_space<vmem>>, vector<1x8x32xf32>
    %142 = vector.shape_cast %141 : vector<1x8x32xf32> to vector<8x32xf32>
    %143 = vector.shape_cast %135 : vector<8x32xf32> to vector<1x8x32xf32>
    tpu.vector_store %arg13[%c0_85, %c0_86, %c0_87], %143 {strides = array<i32>} : memref<2x8x32xf32, #tpu.memory_space<vmem>>, vector<1x8x32xf32>,
    %c1_88 = arith.constant 1 : index
    %c0_89 = arith.constant 0 : index
    %c0_90 = arith.constant 0 : index
    %144 = vector.load %arg12[%c1_88, %c0_89, %c0_90] : memref<2x8x32xf32, #tpu.memory_space<vmem>>, vector<1x8x32xf32>
    %145 = vector.shape_cast %144 : vector<1x8x32xf32> to vector<8x32xf32>
    %c1_91 = arith.constant 1 : index
    %c0_92 = arith.constant 0 : index
    %c0_93 = arith.constant 0 : index
    %146 = vector.load %arg13[%c1_91, %c0_92, %c0_93] : memref<2x8x32xf32, #tpu.memory_space<vmem>>, vector<1x8x32xf32>
    %147 = vector.shape_cast %146 : vector<1x8x32xf32> to vector<8x32xf32>
    %148 = arith.truncf %145 : vector<8x32xf32> to vector<8x32xbf16>
    %c0_94 = arith.constant 0 : index
    %c0_95 = arith.constant 0 : index
    %149 = vector.load %arg5[%c0_94, %c0_95] : memref<32x128xbf16, #tpu.memory_space<vmem>>, vector<32x128xbf16>
    %cst_96 = arith.constant dense<0.000000e+00> : vector<8x128xf32>
    %150 = tpu.matmul %148, %149, %cst_96 {dimension_numbers = #tpu.dot_dimension_numbers<[1], [0], [0], [1], [0, 0, 1, 1], [], []>} : vector<8x32xbf16>, vector<32x128xbf16>, vector<8x128xf32> -> vector<8x128xf32>
    %151 = arith.truncf %137 : vector<8x32xf32> to vector<8x32xbf16>
    %c0_97 = arith.constant 0 : index
    %c0_98 = arith.constant 0 : index
    %152 = vector.load %arg3[%c0_97, %c0_98] : memref<32x128xbf16, #tpu.memory_space<vmem>>, vector<32x128xbf16>
    %cst_99 = arith.constant dense<0.000000e+00> : vector<8x128xf32>
    %153 = tpu.matmul %151, %152, %cst_99 {dimension_numbers = #tpu.dot_dimension_numbers<[1], [0], [0], [1], [0, 0, 1, 1], [], []>} : vector<8x32xbf16>, vector<32x128xbf16>, vector<8x128xf32> -> vector<8x128xf32>
    %154 = arith.addf %153, %150 : vector<8x128xf32>
    %155 = arith.addf %154, %24 : vector<8x128xf32>
    %156 = arith.mulf %155, %33 : vector<8x128xf32>
    %157 = arith.negf %156 : vector<8x128xf32>
    %158 = math.exp %157 : vector<8x128xf32>
    %cst_100 = arith.constant 1.000000e+00 : f32
    %159 = vector.broadcast %cst_100 : f32 to vector<8x128xf32>
    %160 = arith.addf %159, %158 : vector<8x128xf32>
    %161 = arith.divf %159, %160 : vector<8x128xf32>
    %162 = vector.extract_strided_slice %161 {offsets = [0, 0], sizes = [8, 32], strides = [1, 1]} : vector<8x128xf32> to vector<8x32xf32>
    %163 = vector.extract_strided_slice %161 {offsets = [0, 32], sizes = [8, 32], strides = [1, 1]} : vector<8x128xf32> to vector<8x32xf32>
    %164 = vector.extract_strided_slice %161 {offsets = [0, 64], sizes = [8, 32], strides = [1, 1]} : vector<8x128xf32> to vector<8x32xf32>
    %cst_101 = arith.constant 2.000000e+00 : f32
    %165 = vector.broadcast %cst_101 : f32 to vector<8x32xf32>
    %166 = arith.mulf %165, %164 : vector<8x32xf32>
    %cst_102 = arith.constant 1.000000e+00 : f32
    %167 = vector.broadcast %cst_102 : f32 to vector<8x32xf32>
    %168 = arith.subf %166, %167 : vector<8x32xf32>
    %169 = vector.extract_strided_slice %161 {offsets = [0, 96], sizes = [8, 32], strides = [1, 1]} : vector<8x128xf32> to vector<8x32xf32>
    %170 = arith.mulf %163, %147 : vector<8x32xf32>
    %171 = arith.mulf %162, %168 : vector<8x32xf32>
    %172 = arith.addf %170, %171 : vector<8x32xf32>
    %173 = math.tanh %172 : vector<8x32xf32>
    %174 = arith.mulf %169, %173 : vector<8x32xf32>
    %c1_103 = arith.constant 1 : index
    %c0_104 = arith.constant 0 : index
    %c0_105 = arith.constant 0 : index
    %175 = vector.load %arg12[%c1_103, %c0_104, %c0_105] : memref<2x8x32xf32, #tpu.memory_space<vmem>>, vector<1x8x32xf32>
    %176 = vector.shape_cast %175 : vector<1x8x32xf32> to vector<8x32xf32>
    %177 = vector.shape_cast %174 : vector<8x32xf32> to vector<1x8x32xf32>
    tpu.vector_store %arg12[%c1_103, %c0_104, %c0_105], %177 {strides = array<i32>} : memref<2x8x32xf32, #tpu.memory_space<vmem>>, vector<1x8x32xf32>,
    %c1_106 = arith.constant 1 : index
    %c0_107 = arith.constant 0 : index
    %c0_108 = arith.constant 0 : index
    %178 = vector.load %arg13[%c1_106, %c0_107, %c0_108] : memref<2x8x32xf32, #tpu.memory_space<vmem>>, vector<1x8x32xf32>
    %179 = vector.shape_cast %178 : vector<1x8x32xf32> to vector<8x32xf32>
    %180 = vector.shape_cast %172 : vector<8x32xf32> to vector<1x8x32xf32>
    tpu.vector_store %arg13[%c1_106, %c0_107, %c0_108], %180 {strides = array<i32>} : memref<2x8x32xf32, #tpu.memory_space<vmem>>, vector<1x8x32xf32>,
    %c1_109 = arith.constant 1 : index
    %c0_110 = arith.constant 0 : index
    %c0_111 = arith.constant 0 : index
    %181 = vector.load %arg8[%c1_109, %c0_110, %c0_111] : memref<8x8x32xf32, #tpu.memory_space<vmem>>, vector<1x8x32xf32>
    %182 = vector.shape_cast %181 : vector<1x8x32xf32> to vector<8x32xf32>
    %183 = vector.shape_cast %174 : vector<8x32xf32> to vector<1x8x32xf32>
    tpu.vector_store %arg8[%c1_109, %c0_110, %c0_111], %183 {strides = array<i32>} : memref<8x8x32xf32, #tpu.memory_space<vmem>>, vector<1x8x32xf32>,
    %c0_112 = arith.constant 0 : index
    %c0_113 = arith.constant 0 : index
    %c0_114 = arith.constant 0 : index
    %184 = vector.load %arg12[%c0_112, %c0_113, %c0_114] : memref<2x8x32xf32, #tpu.memory_space<vmem>>, vector<1x8x32xf32>
    %185 = vector.shape_cast %184 : vector<1x8x32xf32> to vector<8x32xf32>
    %c0_115 = arith.constant 0 : index
    %c0_116 = arith.constant 0 : index
    %c0_117 = arith.constant 0 : index
    %186 = vector.load %arg13[%c0_115, %c0_116, %c0_117] : memref<2x8x32xf32, #tpu.memory_space<vmem>>, vector<1x8x32xf32>
    %187 = vector.shape_cast %186 : vector<1x8x32xf32> to vector<8x32xf32>
    %188 = arith.truncf %185 : vector<8x32xf32> to vector<8x32xbf16>
    %c0_118 = arith.constant 0 : index
    %c0_119 = arith.constant 0 : index
    %189 = vector.load %arg4[%c0_118, %c0_119] : memref<32x128xbf16, #tpu.memory_space<vmem>>, vector<32x128xbf16>
    %cst_120 = arith.constant dense<0.000000e+00> : vector<8x128xf32>
    %190 = tpu.matmul %188, %189, %cst_120 {dimension_numbers = #tpu.dot_dimension_numbers<[1], [0], [0], [1], [0, 0, 1, 1], [], []>} : vector<8x32xbf16>, vector<32x128xbf16>, vector<8x128xf32> -> vector<8x128xf32>
    %c2 = arith.constant 2 : index
    %c0_121 = arith.constant 0 : index
    %c0_122 = arith.constant 0 : index
    %191 = vector.load %arg11[%c2, %c0_121, %c0_122] : memref<8x8x128xf32, #tpu.memory_space<vmem>>, vector<1x8x128xf32>
    %192 = vector.shape_cast %191 : vector<1x8x128xf32> to vector<8x128xf32>
    %193 = arith.addf %192, %190 : vector<8x128xf32>
    %194 = arith.mulf %193, %33 : vector<8x128xf32>
    %195 = arith.negf %194 : vector<8x128xf32>
    %196 = math.exp %195 : vector<8x128xf32>
    %cst_123 = arith.constant 1.000000e+00 : f32
    %197 = vector.broadcast %cst_123 : f32 to vector<8x128xf32>
    %198 = arith.addf %197, %196 : vector<8x128xf32>
    %199 = arith.divf %197, %198 : vector<8x128xf32>
    %200 = vector.extract_strided_slice %199 {offsets = [0, 0], sizes = [8, 32], strides = [1, 1]} : vector<8x128xf32> to vector<8x32xf32>
    %201 = vector.extract_strided_slice %199 {offsets = [0, 32], sizes = [8, 32], strides = [1, 1]} : vector<8x128xf32> to vector<8x32xf32>
    %202 = vector.extract_strided_slice %199 {offsets = [0, 64], sizes = [8, 32], strides = [1, 1]} : vector<8x128xf32> to vector<8x32xf32>
    %cst_124 = arith.constant 2.000000e+00 : f32
    %203 = vector.broadcast %cst_124 : f32 to vector<8x32xf32>
    %204 = arith.mulf %203, %202 : vector<8x32xf32>
    %cst_125 = arith.constant 1.000000e+00 : f32
    %205 = vector.broadcast %cst_125 : f32 to vector<8x32xf32>
    %206 = arith.subf %204, %205 : vector<8x32xf32>
    %207 = vector.extract_strided_slice %199 {offsets = [0, 96], sizes = [8, 32], strides = [1, 1]} : vector<8x128xf32> to vector<8x32xf32>
    %208 = arith.mulf %201, %187 : vector<8x32xf32>
    %209 = arith.mulf %200, %206 : vector<8x32xf32>
    %210 = arith.addf %208, %209 : vector<8x32xf32>
    %211 = math.tanh %210 : vector<8x32xf32>
    %212 = arith.mulf %207, %211 : vector<8x32xf32>
    %c0_126 = arith.constant 0 : index
    %c0_127 = arith.constant 0 : index
    %c0_128 = arith.constant 0 : index
    %213 = vector.load %arg12[%c0_126, %c0_127, %c0_128] : memref<2x8x32xf32, #tpu.memory_space<vmem>>, vector<1x8x32xf32>
    %214 = vector.shape_cast %213 : vector<1x8x32xf32> to vector<8x32xf32>
    %215 = vector.shape_cast %212 : vector<8x32xf32> to vector<1x8x32xf32>
    tpu.vector_store %arg12[%c0_126, %c0_127, %c0_128], %215 {strides = array<i32>} : memref<2x8x32xf32, #tpu.memory_space<vmem>>, vector<1x8x32xf32>,
    %c0_129 = arith.constant 0 : index
    %c0_130 = arith.constant 0 : index
    %c0_131 = arith.constant 0 : index
    %216 = vector.load %arg13[%c0_129, %c0_130, %c0_131] : memref<2x8x32xf32, #tpu.memory_space<vmem>>, vector<1x8x32xf32>
    %217 = vector.shape_cast %216 : vector<1x8x32xf32> to vector<8x32xf32>
    %218 = vector.shape_cast %210 : vector<8x32xf32> to vector<1x8x32xf32>
    tpu.vector_store %arg13[%c0_129, %c0_130, %c0_131], %218 {strides = array<i32>} : memref<2x8x32xf32, #tpu.memory_space<vmem>>, vector<1x8x32xf32>,
    %c1_132 = arith.constant 1 : index
    %c0_133 = arith.constant 0 : index
    %c0_134 = arith.constant 0 : index
    %219 = vector.load %arg12[%c1_132, %c0_133, %c0_134] : memref<2x8x32xf32, #tpu.memory_space<vmem>>, vector<1x8x32xf32>
    %220 = vector.shape_cast %219 : vector<1x8x32xf32> to vector<8x32xf32>
    %c1_135 = arith.constant 1 : index
    %c0_136 = arith.constant 0 : index
    %c0_137 = arith.constant 0 : index
    %221 = vector.load %arg13[%c1_135, %c0_136, %c0_137] : memref<2x8x32xf32, #tpu.memory_space<vmem>>, vector<1x8x32xf32>
    %222 = vector.shape_cast %221 : vector<1x8x32xf32> to vector<8x32xf32>
    %223 = arith.truncf %220 : vector<8x32xf32> to vector<8x32xbf16>
    %c0_138 = arith.constant 0 : index
    %c0_139 = arith.constant 0 : index
    %224 = vector.load %arg5[%c0_138, %c0_139] : memref<32x128xbf16, #tpu.memory_space<vmem>>, vector<32x128xbf16>
    %cst_140 = arith.constant dense<0.000000e+00> : vector<8x128xf32>
    %225 = tpu.matmul %223, %224, %cst_140 {dimension_numbers = #tpu.dot_dimension_numbers<[1], [0], [0], [1], [0, 0, 1, 1], [], []>} : vector<8x32xbf16>, vector<32x128xbf16>, vector<8x128xf32> -> vector<8x128xf32>
    %226 = arith.truncf %212 : vector<8x32xf32> to vector<8x32xbf16>
    %c0_141 = arith.constant 0 : index
    %c0_142 = arith.constant 0 : index
    %227 = vector.load %arg3[%c0_141, %c0_142] : memref<32x128xbf16, #tpu.memory_space<vmem>>, vector<32x128xbf16>
    %cst_143 = arith.constant dense<0.000000e+00> : vector<8x128xf32>
    %228 = tpu.matmul %226, %227, %cst_143 {dimension_numbers = #tpu.dot_dimension_numbers<[1], [0], [0], [1], [0, 0, 1, 1], [], []>} : vector<8x32xbf16>, vector<32x128xbf16>, vector<8x128xf32> -> vector<8x128xf32>
    %229 = arith.addf %228, %225 : vector<8x128xf32>
    %230 = arith.addf %229, %24 : vector<8x128xf32>
    %231 = arith.mulf %230, %33 : vector<8x128xf32>
    %232 = arith.negf %231 : vector<8x128xf32>
    %233 = math.exp %232 : vector<8x128xf32>
    %cst_144 = arith.constant 1.000000e+00 : f32
    %234 = vector.broadcast %cst_144 : f32 to vector<8x128xf32>
    %235 = arith.addf %234, %233 : vector<8x128xf32>
    %236 = arith.divf %234, %235 : vector<8x128xf32>
    %237 = vector.extract_strided_slice %236 {offsets = [0, 0], sizes = [8, 32], strides = [1, 1]} : vector<8x128xf32> to vector<8x32xf32>
    %238 = vector.extract_strided_slice %236 {offsets = [0, 32], sizes = [8, 32], strides = [1, 1]} : vector<8x128xf32> to vector<8x32xf32>
    %239 = vector.extract_strided_slice %236 {offsets = [0, 64], sizes = [8, 32], strides = [1, 1]} : vector<8x128xf32> to vector<8x32xf32>
    %cst_145 = arith.constant 2.000000e+00 : f32
    %240 = vector.broadcast %cst_145 : f32 to vector<8x32xf32>
    %241 = arith.mulf %240, %239 : vector<8x32xf32>
    %cst_146 = arith.constant 1.000000e+00 : f32
    %242 = vector.broadcast %cst_146 : f32 to vector<8x32xf32>
    %243 = arith.subf %241, %242 : vector<8x32xf32>
    %244 = vector.extract_strided_slice %236 {offsets = [0, 96], sizes = [8, 32], strides = [1, 1]} : vector<8x128xf32> to vector<8x32xf32>
    %245 = arith.mulf %238, %222 : vector<8x32xf32>
    %246 = arith.mulf %237, %243 : vector<8x32xf32>
    %247 = arith.addf %245, %246 : vector<8x32xf32>
    %248 = math.tanh %247 : vector<8x32xf32>
    %249 = arith.mulf %244, %248 : vector<8x32xf32>
    %c1_147 = arith.constant 1 : index
    %c0_148 = arith.constant 0 : index
    %c0_149 = arith.constant 0 : index
    %250 = vector.load %arg12[%c1_147, %c0_148, %c0_149] : memref<2x8x32xf32, #tpu.memory_space<vmem>>, vector<1x8x32xf32>
    %251 = vector.shape_cast %250 : vector<1x8x32xf32> to vector<8x32xf32>
    %252 = vector.shape_cast %249 : vector<8x32xf32> to vector<1x8x32xf32>
    tpu.vector_store %arg12[%c1_147, %c0_148, %c0_149], %252 {strides = array<i32>} : memref<2x8x32xf32, #tpu.memory_space<vmem>>, vector<1x8x32xf32>,
    %c1_150 = arith.constant 1 : index
    %c0_151 = arith.constant 0 : index
    %c0_152 = arith.constant 0 : index
    %253 = vector.load %arg13[%c1_150, %c0_151, %c0_152] : memref<2x8x32xf32, #tpu.memory_space<vmem>>, vector<1x8x32xf32>
    %254 = vector.shape_cast %253 : vector<1x8x32xf32> to vector<8x32xf32>
    %255 = vector.shape_cast %247 : vector<8x32xf32> to vector<1x8x32xf32>
    tpu.vector_store %arg13[%c1_150, %c0_151, %c0_152], %255 {strides = array<i32>} : memref<2x8x32xf32, #tpu.memory_space<vmem>>, vector<1x8x32xf32>,
    %c2_153 = arith.constant 2 : index
    %c0_154 = arith.constant 0 : index
    %c0_155 = arith.constant 0 : index
    %256 = vector.load %arg8[%c2_153, %c0_154, %c0_155] : memref<8x8x32xf32, #tpu.memory_space<vmem>>, vector<1x8x32xf32>
    %257 = vector.shape_cast %256 : vector<1x8x32xf32> to vector<8x32xf32>
    %258 = vector.shape_cast %249 : vector<8x32xf32> to vector<1x8x32xf32>
    tpu.vector_store %arg8[%c2_153, %c0_154, %c0_155], %258 {strides = array<i32>} : memref<8x8x32xf32, #tpu.memory_space<vmem>>, vector<1x8x32xf32>,
    %c0_156 = arith.constant 0 : index
    %c0_157 = arith.constant 0 : index
    %c0_158 = arith.constant 0 : index
    %259 = vector.load %arg12[%c0_156, %c0_157, %c0_158] : memref<2x8x32xf32, #tpu.memory_space<vmem>>, vector<1x8x32xf32>
    %260 = vector.shape_cast %259 : vector<1x8x32xf32> to vector<8x32xf32>
    %c0_159 = arith.constant 0 : index
    %c0_160 = arith.constant 0 : index
    %c0_161 = arith.constant 0 : index
    %261 = vector.load %arg13[%c0_159, %c0_160, %c0_161] : memref<2x8x32xf32, #tpu.memory_space<vmem>>, vector<1x8x32xf32>
    %262 = vector.shape_cast %261 : vector<1x8x32xf32> to vector<8x32xf32>
    %263 = arith.truncf %260 : vector<8x32xf32> to vector<8x32xbf16>
    %c0_162 = arith.constant 0 : index
    %c0_163 = arith.constant 0 : index
    %264 = vector.load %arg4[%c0_162, %c0_163] : memref<32x128xbf16, #tpu.memory_space<vmem>>, vector<32x128xbf16>
    %cst_164 = arith.constant dense<0.000000e+00> : vector<8x128xf32>
    %265 = tpu.matmul %263, %264, %cst_164 {dimension_numbers = #tpu.dot_dimension_numbers<[1], [0], [0], [1], [0, 0, 1, 1], [], []>} : vector<8x32xbf16>, vector<32x128xbf16>, vector<8x128xf32> -> vector<8x128xf32>
    %c3 = arith.constant 3 : index
    %c0_165 = arith.constant 0 : index
    %c0_166 = arith.constant 0 : index
    %266 = vector.load %arg11[%c3, %c0_165, %c0_166] : memref<8x8x128xf32, #tpu.memory_space<vmem>>, vector<1x8x128xf32>
    %267 = vector.shape_cast %266 : vector<1x8x128xf32> to vector<8x128xf32>
    %268 = arith.addf %267, %265 : vector<8x128xf32>
    %269 = arith.mulf %268, %33 : vector<8x128xf32>
    %270 = arith.negf %269 : vector<8x128xf32>
    %271 = math.exp %270 : vector<8x128xf32>
    %cst_167 = arith.constant 1.000000e+00 : f32
    %272 = vector.broadcast %cst_167 : f32 to vector<8x128xf32>
    %273 = arith.addf %272, %271 : vector<8x128xf32>
    %274 = arith.divf %272, %273 : vector<8x128xf32>
    %275 = vector.extract_strided_slice %274 {offsets = [0, 0], sizes = [8, 32], strides = [1, 1]} : vector<8x128xf32> to vector<8x32xf32>
    %276 = vector.extract_strided_slice %274 {offsets = [0, 32], sizes = [8, 32], strides = [1, 1]} : vector<8x128xf32> to vector<8x32xf32>
    %277 = vector.extract_strided_slice %274 {offsets = [0, 64], sizes = [8, 32], strides = [1, 1]} : vector<8x128xf32> to vector<8x32xf32>
    %cst_168 = arith.constant 2.000000e+00 : f32
    %278 = vector.broadcast %cst_168 : f32 to vector<8x32xf32>
    %279 = arith.mulf %278, %277 : vector<8x32xf32>
    %cst_169 = arith.constant 1.000000e+00 : f32
    %280 = vector.broadcast %cst_169 : f32 to vector<8x32xf32>
    %281 = arith.subf %279, %280 : vector<8x32xf32>
    %282 = vector.extract_strided_slice %274 {offsets = [0, 96], sizes = [8, 32], strides = [1, 1]} : vector<8x128xf32> to vector<8x32xf32>
    %283 = arith.mulf %276, %262 : vector<8x32xf32>
    %284 = arith.mulf %275, %281 : vector<8x32xf32>
    %285 = arith.addf %283, %284 : vector<8x32xf32>
    %286 = math.tanh %285 : vector<8x32xf32>
    %287 = arith.mulf %282, %286 : vector<8x32xf32>
    %c0_170 = arith.constant 0 : index
    %c0_171 = arith.constant 0 : index
    %c0_172 = arith.constant 0 : index
    %288 = vector.load %arg12[%c0_170, %c0_171, %c0_172] : memref<2x8x32xf32, #tpu.memory_space<vmem>>, vector<1x8x32xf32>
    %289 = vector.shape_cast %288 : vector<1x8x32xf32> to vector<8x32xf32>
    %290 = vector.shape_cast %287 : vector<8x32xf32> to vector<1x8x32xf32>
    tpu.vector_store %arg12[%c0_170, %c0_171, %c0_172], %290 {strides = array<i32>} : memref<2x8x32xf32, #tpu.memory_space<vmem>>, vector<1x8x32xf32>,
    %c0_173 = arith.constant 0 : index
    %c0_174 = arith.constant 0 : index
    %c0_175 = arith.constant 0 : index
    %291 = vector.load %arg13[%c0_173, %c0_174, %c0_175] : memref<2x8x32xf32, #tpu.memory_space<vmem>>, vector<1x8x32xf32>
    %292 = vector.shape_cast %291 : vector<1x8x32xf32> to vector<8x32xf32>
    %293 = vector.shape_cast %285 : vector<8x32xf32> to vector<1x8x32xf32>
    tpu.vector_store %arg13[%c0_173, %c0_174, %c0_175], %293 {strides = array<i32>} : memref<2x8x32xf32, #tpu.memory_space<vmem>>, vector<1x8x32xf32>,
    %c1_176 = arith.constant 1 : index
    %c0_177 = arith.constant 0 : index
    %c0_178 = arith.constant 0 : index
    %294 = vector.load %arg12[%c1_176, %c0_177, %c0_178] : memref<2x8x32xf32, #tpu.memory_space<vmem>>, vector<1x8x32xf32>
    %295 = vector.shape_cast %294 : vector<1x8x32xf32> to vector<8x32xf32>
    %c1_179 = arith.constant 1 : index
    %c0_180 = arith.constant 0 : index
    %c0_181 = arith.constant 0 : index
    %296 = vector.load %arg13[%c1_179, %c0_180, %c0_181] : memref<2x8x32xf32, #tpu.memory_space<vmem>>, vector<1x8x32xf32>
    %297 = vector.shape_cast %296 : vector<1x8x32xf32> to vector<8x32xf32>
    %298 = arith.truncf %295 : vector<8x32xf32> to vector<8x32xbf16>
    %c0_182 = arith.constant 0 : index
    %c0_183 = arith.constant 0 : index
    %299 = vector.load %arg5[%c0_182, %c0_183] : memref<32x128xbf16, #tpu.memory_space<vmem>>, vector<32x128xbf16>
    %cst_184 = arith.constant dense<0.000000e+00> : vector<8x128xf32>
    %300 = tpu.matmul %298, %299, %cst_184 {dimension_numbers = #tpu.dot_dimension_numbers<[1], [0], [0], [1], [0, 0, 1, 1], [], []>} : vector<8x32xbf16>, vector<32x128xbf16>, vector<8x128xf32> -> vector<8x128xf32>
    %301 = arith.truncf %287 : vector<8x32xf32> to vector<8x32xbf16>
    %c0_185 = arith.constant 0 : index
    %c0_186 = arith.constant 0 : index
    %302 = vector.load %arg3[%c0_185, %c0_186] : memref<32x128xbf16, #tpu.memory_space<vmem>>, vector<32x128xbf16>
    %cst_187 = arith.constant dense<0.000000e+00> : vector<8x128xf32>
    %303 = tpu.matmul %301, %302, %cst_187 {dimension_numbers = #tpu.dot_dimension_numbers<[1], [0], [0], [1], [0, 0, 1, 1], [], []>} : vector<8x32xbf16>, vector<32x128xbf16>, vector<8x128xf32> -> vector<8x128xf32>
    %304 = arith.addf %303, %300 : vector<8x128xf32>
    %305 = arith.addf %304, %24 : vector<8x128xf32>
    %306 = arith.mulf %305, %33 : vector<8x128xf32>
    %307 = arith.negf %306 : vector<8x128xf32>
    %308 = math.exp %307 : vector<8x128xf32>
    %cst_188 = arith.constant 1.000000e+00 : f32
    %309 = vector.broadcast %cst_188 : f32 to vector<8x128xf32>
    %310 = arith.addf %309, %308 : vector<8x128xf32>
    %311 = arith.divf %309, %310 : vector<8x128xf32>
    %312 = vector.extract_strided_slice %311 {offsets = [0, 0], sizes = [8, 32], strides = [1, 1]} : vector<8x128xf32> to vector<8x32xf32>
    %313 = vector.extract_strided_slice %311 {offsets = [0, 32], sizes = [8, 32], strides = [1, 1]} : vector<8x128xf32> to vector<8x32xf32>
    %314 = vector.extract_strided_slice %311 {offsets = [0, 64], sizes = [8, 32], strides = [1, 1]} : vector<8x128xf32> to vector<8x32xf32>
    %cst_189 = arith.constant 2.000000e+00 : f32
    %315 = vector.broadcast %cst_189 : f32 to vector<8x32xf32>
    %316 = arith.mulf %315, %314 : vector<8x32xf32>
    %cst_190 = arith.constant 1.000000e+00 : f32
    %317 = vector.broadcast %cst_190 : f32 to vector<8x32xf32>
    %318 = arith.subf %316, %317 : vector<8x32xf32>
    %319 = vector.extract_strided_slice %311 {offsets = [0, 96], sizes = [8, 32], strides = [1, 1]} : vector<8x128xf32> to vector<8x32xf32>
    %320 = arith.mulf %313, %297 : vector<8x32xf32>
    %321 = arith.mulf %312, %318 : vector<8x32xf32>
    %322 = arith.addf %320, %321 : vector<8x32xf32>
    %323 = math.tanh %322 : vector<8x32xf32>
    %324 = arith.mulf %319, %323 : vector<8x32xf32>
    %c1_191 = arith.constant 1 : index
    %c0_192 = arith.constant 0 : index
    %c0_193 = arith.constant 0 : index
    %325 = vector.load %arg12[%c1_191, %c0_192, %c0_193] : memref<2x8x32xf32, #tpu.memory_space<vmem>>, vector<1x8x32xf32>
    %326 = vector.shape_cast %325 : vector<1x8x32xf32> to vector<8x32xf32>
    %327 = vector.shape_cast %324 : vector<8x32xf32> to vector<1x8x32xf32>
    tpu.vector_store %arg12[%c1_191, %c0_192, %c0_193], %327 {strides = array<i32>} : memref<2x8x32xf32, #tpu.memory_space<vmem>>, vector<1x8x32xf32>,
    %c1_194 = arith.constant 1 : index
    %c0_195 = arith.constant 0 : index
    %c0_196 = arith.constant 0 : index
    %328 = vector.load %arg13[%c1_194, %c0_195, %c0_196] : memref<2x8x32xf32, #tpu.memory_space<vmem>>, vector<1x8x32xf32>
    %329 = vector.shape_cast %328 : vector<1x8x32xf32> to vector<8x32xf32>
    %330 = vector.shape_cast %322 : vector<8x32xf32> to vector<1x8x32xf32>
    tpu.vector_store %arg13[%c1_194, %c0_195, %c0_196], %330 {strides = array<i32>} : memref<2x8x32xf32, #tpu.memory_space<vmem>>, vector<1x8x32xf32>,
    %c3_197 = arith.constant 3 : index
    %c0_198 = arith.constant 0 : index
    %c0_199 = arith.constant 0 : index
    %331 = vector.load %arg8[%c3_197, %c0_198, %c0_199] : memref<8x8x32xf32, #tpu.memory_space<vmem>>, vector<1x8x32xf32>
    %332 = vector.shape_cast %331 : vector<1x8x32xf32> to vector<8x32xf32>
    %333 = vector.shape_cast %324 : vector<8x32xf32> to vector<1x8x32xf32>
    tpu.vector_store %arg8[%c3_197, %c0_198, %c0_199], %333 {strides = array<i32>} : memref<8x8x32xf32, #tpu.memory_space<vmem>>, vector<1x8x32xf32>,
    %c0_200 = arith.constant 0 : index
    %c0_201 = arith.constant 0 : index
    %c0_202 = arith.constant 0 : index
    %334 = vector.load %arg12[%c0_200, %c0_201, %c0_202] : memref<2x8x32xf32, #tpu.memory_space<vmem>>, vector<1x8x32xf32>
    %335 = vector.shape_cast %334 : vector<1x8x32xf32> to vector<8x32xf32>
    %c0_203 = arith.constant 0 : index
    %c0_204 = arith.constant 0 : index
    %c0_205 = arith.constant 0 : index
    %336 = vector.load %arg13[%c0_203, %c0_204, %c0_205] : memref<2x8x32xf32, #tpu.memory_space<vmem>>, vector<1x8x32xf32>
    %337 = vector.shape_cast %336 : vector<1x8x32xf32> to vector<8x32xf32>
    %338 = arith.truncf %335 : vector<8x32xf32> to vector<8x32xbf16>
    %c0_206 = arith.constant 0 : index
    %c0_207 = arith.constant 0 : index
    %339 = vector.load %arg4[%c0_206, %c0_207] : memref<32x128xbf16, #tpu.memory_space<vmem>>, vector<32x128xbf16>
    %cst_208 = arith.constant dense<0.000000e+00> : vector<8x128xf32>
    %340 = tpu.matmul %338, %339, %cst_208 {dimension_numbers = #tpu.dot_dimension_numbers<[1], [0], [0], [1], [0, 0, 1, 1], [], []>} : vector<8x32xbf16>, vector<32x128xbf16>, vector<8x128xf32> -> vector<8x128xf32>
    %c4 = arith.constant 4 : index
    %c0_209 = arith.constant 0 : index
    %c0_210 = arith.constant 0 : index
    %341 = vector.load %arg11[%c4, %c0_209, %c0_210] : memref<8x8x128xf32, #tpu.memory_space<vmem>>, vector<1x8x128xf32>
    %342 = vector.shape_cast %341 : vector<1x8x128xf32> to vector<8x128xf32>
    %343 = arith.addf %342, %340 : vector<8x128xf32>
    %344 = arith.mulf %343, %33 : vector<8x128xf32>
    %345 = arith.negf %344 : vector<8x128xf32>
    %346 = math.exp %345 : vector<8x128xf32>
    %cst_211 = arith.constant 1.000000e+00 : f32
    %347 = vector.broadcast %cst_211 : f32 to vector<8x128xf32>
    %348 = arith.addf %347, %346 : vector<8x128xf32>
    %349 = arith.divf %347, %348 : vector<8x128xf32>
    %350 = vector.extract_strided_slice %349 {offsets = [0, 0], sizes = [8, 32], strides = [1, 1]} : vector<8x128xf32> to vector<8x32xf32>
    %351 = vector.extract_strided_slice %349 {offsets = [0, 32], sizes = [8, 32], strides = [1, 1]} : vector<8x128xf32> to vector<8x32xf32>
    %352 = vector.extract_strided_slice %349 {offsets = [0, 64], sizes = [8, 32], strides = [1, 1]} : vector<8x128xf32> to vector<8x32xf32>
    %cst_212 = arith.constant 2.000000e+00 : f32
    %353 = vector.broadcast %cst_212 : f32 to vector<8x32xf32>
    %354 = arith.mulf %353, %352 : vector<8x32xf32>
    %cst_213 = arith.constant 1.000000e+00 : f32
    %355 = vector.broadcast %cst_213 : f32 to vector<8x32xf32>
    %356 = arith.subf %354, %355 : vector<8x32xf32>
    %357 = vector.extract_strided_slice %349 {offsets = [0, 96], sizes = [8, 32], strides = [1, 1]} : vector<8x128xf32> to vector<8x32xf32>
    %358 = arith.mulf %351, %337 : vector<8x32xf32>
    %359 = arith.mulf %350, %356 : vector<8x32xf32>
    %360 = arith.addf %358, %359 : vector<8x32xf32>
    %361 = math.tanh %360 : vector<8x32xf32>
    %362 = arith.mulf %357, %361 : vector<8x32xf32>
    %c0_214 = arith.constant 0 : index
    %c0_215 = arith.constant 0 : index
    %c0_216 = arith.constant 0 : index
    %363 = vector.load %arg12[%c0_214, %c0_215, %c0_216] : memref<2x8x32xf32, #tpu.memory_space<vmem>>, vector<1x8x32xf32>
    %364 = vector.shape_cast %363 : vector<1x8x32xf32> to vector<8x32xf32>
    %365 = vector.shape_cast %362 : vector<8x32xf32> to vector<1x8x32xf32>
    tpu.vector_store %arg12[%c0_214, %c0_215, %c0_216], %365 {strides = array<i32>} : memref<2x8x32xf32, #tpu.memory_space<vmem>>, vector<1x8x32xf32>,
    %c0_217 = arith.constant 0 : index
    %c0_218 = arith.constant 0 : index
    %c0_219 = arith.constant 0 : index
    %366 = vector.load %arg13[%c0_217, %c0_218, %c0_219] : memref<2x8x32xf32, #tpu.memory_space<vmem>>, vector<1x8x32xf32>
    %367 = vector.shape_cast %366 : vector<1x8x32xf32> to vector<8x32xf32>
    %368 = vector.shape_cast %360 : vector<8x32xf32> to vector<1x8x32xf32>
    tpu.vector_store %arg13[%c0_217, %c0_218, %c0_219], %368 {strides = array<i32>} : memref<2x8x32xf32, #tpu.memory_space<vmem>>, vector<1x8x32xf32>,
    %c1_220 = arith.constant 1 : index
    %c0_221 = arith.constant 0 : index
    %c0_222 = arith.constant 0 : index
    %369 = vector.load %arg12[%c1_220, %c0_221, %c0_222] : memref<2x8x32xf32, #tpu.memory_space<vmem>>, vector<1x8x32xf32>
    %370 = vector.shape_cast %369 : vector<1x8x32xf32> to vector<8x32xf32>
    %c1_223 = arith.constant 1 : index
    %c0_224 = arith.constant 0 : index
    %c0_225 = arith.constant 0 : index
    %371 = vector.load %arg13[%c1_223, %c0_224, %c0_225] : memref<2x8x32xf32, #tpu.memory_space<vmem>>, vector<1x8x32xf32>
    %372 = vector.shape_cast %371 : vector<1x8x32xf32> to vector<8x32xf32>
    %373 = arith.truncf %370 : vector<8x32xf32> to vector<8x32xbf16>
    %c0_226 = arith.constant 0 : index
    %c0_227 = arith.constant 0 : index
    %374 = vector.load %arg5[%c0_226, %c0_227] : memref<32x128xbf16, #tpu.memory_space<vmem>>, vector<32x128xbf16>
    %cst_228 = arith.constant dense<0.000000e+00> : vector<8x128xf32>
    %375 = tpu.matmul %373, %374, %cst_228 {dimension_numbers = #tpu.dot_dimension_numbers<[1], [0], [0], [1], [0, 0, 1, 1], [], []>} : vector<8x32xbf16>, vector<32x128xbf16>, vector<8x128xf32> -> vector<8x128xf32>
    %376 = arith.truncf %362 : vector<8x32xf32> to vector<8x32xbf16>
    %c0_229 = arith.constant 0 : index
    %c0_230 = arith.constant 0 : index
    %377 = vector.load %arg3[%c0_229, %c0_230] : memref<32x128xbf16, #tpu.memory_space<vmem>>, vector<32x128xbf16>
    %cst_231 = arith.constant dense<0.000000e+00> : vector<8x128xf32>
    %378 = tpu.matmul %376, %377, %cst_231 {dimension_numbers = #tpu.dot_dimension_numbers<[1], [0], [0], [1], [0, 0, 1, 1], [], []>} : vector<8x32xbf16>, vector<32x128xbf16>, vector<8x128xf32> -> vector<8x128xf32>
    %379 = arith.addf %378, %375 : vector<8x128xf32>
    %380 = arith.addf %379, %24 : vector<8x128xf32>
    %381 = arith.mulf %380, %33 : vector<8x128xf32>
    %382 = arith.negf %381 : vector<8x128xf32>
    %383 = math.exp %382 : vector<8x128xf32>
    %cst_232 = arith.constant 1.000000e+00 : f32
    %384 = vector.broadcast %cst_232 : f32 to vector<8x128xf32>
    %385 = arith.addf %384, %383 : vector<8x128xf32>
    %386 = arith.divf %384, %385 : vector<8x128xf32>
    %387 = vector.extract_strided_slice %386 {offsets = [0, 0], sizes = [8, 32], strides = [1, 1]} : vector<8x128xf32> to vector<8x32xf32>
    %388 = vector.extract_strided_slice %386 {offsets = [0, 32], sizes = [8, 32], strides = [1, 1]} : vector<8x128xf32> to vector<8x32xf32>
    %389 = vector.extract_strided_slice %386 {offsets = [0, 64], sizes = [8, 32], strides = [1, 1]} : vector<8x128xf32> to vector<8x32xf32>
    %cst_233 = arith.constant 2.000000e+00 : f32
    %390 = vector.broadcast %cst_233 : f32 to vector<8x32xf32>
    %391 = arith.mulf %390, %389 : vector<8x32xf32>
    %cst_234 = arith.constant 1.000000e+00 : f32
    %392 = vector.broadcast %cst_234 : f32 to vector<8x32xf32>
    %393 = arith.subf %391, %392 : vector<8x32xf32>
    %394 = vector.extract_strided_slice %386 {offsets = [0, 96], sizes = [8, 32], strides = [1, 1]} : vector<8x128xf32> to vector<8x32xf32>
    %395 = arith.mulf %388, %372 : vector<8x32xf32>
    %396 = arith.mulf %387, %393 : vector<8x32xf32>
    %397 = arith.addf %395, %396 : vector<8x32xf32>
    %398 = math.tanh %397 : vector<8x32xf32>
    %399 = arith.mulf %394, %398 : vector<8x32xf32>
    %c1_235 = arith.constant 1 : index
    %c0_236 = arith.constant 0 : index
    %c0_237 = arith.constant 0 : index
    %400 = vector.load %arg12[%c1_235, %c0_236, %c0_237] : memref<2x8x32xf32, #tpu.memory_space<vmem>>, vector<1x8x32xf32>
    %401 = vector.shape_cast %400 : vector<1x8x32xf32> to vector<8x32xf32>
    %402 = vector.shape_cast %399 : vector<8x32xf32> to vector<1x8x32xf32>
    tpu.vector_store %arg12[%c1_235, %c0_236, %c0_237], %402 {strides = array<i32>} : memref<2x8x32xf32, #tpu.memory_space<vmem>>, vector<1x8x32xf32>,
    %c1_238 = arith.constant 1 : index
    %c0_239 = arith.constant 0 : index
    %c0_240 = arith.constant 0 : index
    %403 = vector.load %arg13[%c1_238, %c0_239, %c0_240] : memref<2x8x32xf32, #tpu.memory_space<vmem>>, vector<1x8x32xf32>
    %404 = vector.shape_cast %403 : vector<1x8x32xf32> to vector<8x32xf32>
    %405 = vector.shape_cast %397 : vector<8x32xf32> to vector<1x8x32xf32>
    tpu.vector_store %arg13[%c1_238, %c0_239, %c0_240], %405 {strides = array<i32>} : memref<2x8x32xf32, #tpu.memory_space<vmem>>, vector<1x8x32xf32>,
    %c4_241 = arith.constant 4 : index
    %c0_242 = arith.constant 0 : index
    %c0_243 = arith.constant 0 : index
    %406 = vector.load %arg8[%c4_241, %c0_242, %c0_243] : memref<8x8x32xf32, #tpu.memory_space<vmem>>, vector<1x8x32xf32>
    %407 = vector.shape_cast %406 : vector<1x8x32xf32> to vector<8x32xf32>
    %408 = vector.shape_cast %399 : vector<8x32xf32> to vector<1x8x32xf32>
    tpu.vector_store %arg8[%c4_241, %c0_242, %c0_243], %408 {strides = array<i32>} : memref<8x8x32xf32, #tpu.memory_space<vmem>>, vector<1x8x32xf32>,
    %c0_244 = arith.constant 0 : index
    %c0_245 = arith.constant 0 : index
    %c0_246 = arith.constant 0 : index
    %409 = vector.load %arg12[%c0_244, %c0_245, %c0_246] : memref<2x8x32xf32, #tpu.memory_space<vmem>>, vector<1x8x32xf32>
    %410 = vector.shape_cast %409 : vector<1x8x32xf32> to vector<8x32xf32>
    %c0_247 = arith.constant 0 : index
    %c0_248 = arith.constant 0 : index
    %c0_249 = arith.constant 0 : index
    %411 = vector.load %arg13[%c0_247, %c0_248, %c0_249] : memref<2x8x32xf32, #tpu.memory_space<vmem>>, vector<1x8x32xf32>
    %412 = vector.shape_cast %411 : vector<1x8x32xf32> to vector<8x32xf32>
    %413 = arith.truncf %410 : vector<8x32xf32> to vector<8x32xbf16>
    %c0_250 = arith.constant 0 : index
    %c0_251 = arith.constant 0 : index
    %414 = vector.load %arg4[%c0_250, %c0_251] : memref<32x128xbf16, #tpu.memory_space<vmem>>, vector<32x128xbf16>
    %cst_252 = arith.constant dense<0.000000e+00> : vector<8x128xf32>
    %415 = tpu.matmul %413, %414, %cst_252 {dimension_numbers = #tpu.dot_dimension_numbers<[1], [0], [0], [1], [0, 0, 1, 1], [], []>} : vector<8x32xbf16>, vector<32x128xbf16>, vector<8x128xf32> -> vector<8x128xf32>
    %c5 = arith.constant 5 : index
    %c0_253 = arith.constant 0 : index
    %c0_254 = arith.constant 0 : index
    %416 = vector.load %arg11[%c5, %c0_253, %c0_254] : memref<8x8x128xf32, #tpu.memory_space<vmem>>, vector<1x8x128xf32>
    %417 = vector.shape_cast %416 : vector<1x8x128xf32> to vector<8x128xf32>
    %418 = arith.addf %417, %415 : vector<8x128xf32>
    %419 = arith.mulf %418, %33 : vector<8x128xf32>
    %420 = arith.negf %419 : vector<8x128xf32>
    %421 = math.exp %420 : vector<8x128xf32>
    %cst_255 = arith.constant 1.000000e+00 : f32
    %422 = vector.broadcast %cst_255 : f32 to vector<8x128xf32>
    %423 = arith.addf %422, %421 : vector<8x128xf32>
    %424 = arith.divf %422, %423 : vector<8x128xf32>
    %425 = vector.extract_strided_slice %424 {offsets = [0, 0], sizes = [8, 32], strides = [1, 1]} : vector<8x128xf32> to vector<8x32xf32>
    %426 = vector.extract_strided_slice %424 {offsets = [0, 32], sizes = [8, 32], strides = [1, 1]} : vector<8x128xf32> to vector<8x32xf32>
    %427 = vector.extract_strided_slice %424 {offsets = [0, 64], sizes = [8, 32], strides = [1, 1]} : vector<8x128xf32> to vector<8x32xf32>
    %cst_256 = arith.constant 2.000000e+00 : f32
    %428 = vector.broadcast %cst_256 : f32 to vector<8x32xf32>
    %429 = arith.mulf %428, %427 : vector<8x32xf32>
    %cst_257 = arith.constant 1.000000e+00 : f32
    %430 = vector.broadcast %cst_257 : f32 to vector<8x32xf32>
    %431 = arith.subf %429, %430 : vector<8x32xf32>
    %432 = vector.extract_strided_slice %424 {offsets = [0, 96], sizes = [8, 32], strides = [1, 1]} : vector<8x128xf32> to vector<8x32xf32>
    %433 = arith.mulf %426, %412 : vector<8x32xf32>
    %434 = arith.mulf %425, %431 : vector<8x32xf32>
    %435 = arith.addf %433, %434 : vector<8x32xf32>
    %436 = math.tanh %435 : vector<8x32xf32>
    %437 = arith.mulf %432, %436 : vector<8x32xf32>
    %c0_258 = arith.constant 0 : index
    %c0_259 = arith.constant 0 : index
    %c0_260 = arith.constant 0 : index
    %438 = vector.load %arg12[%c0_258, %c0_259, %c0_260] : memref<2x8x32xf32, #tpu.memory_space<vmem>>, vector<1x8x32xf32>
    %439 = vector.shape_cast %438 : vector<1x8x32xf32> to vector<8x32xf32>
    %440 = vector.shape_cast %437 : vector<8x32xf32> to vector<1x8x32xf32>
    tpu.vector_store %arg12[%c0_258, %c0_259, %c0_260], %440 {strides = array<i32>} : memref<2x8x32xf32, #tpu.memory_space<vmem>>, vector<1x8x32xf32>,
    %c0_261 = arith.constant 0 : index
    %c0_262 = arith.constant 0 : index
    %c0_263 = arith.constant 0 : index
    %441 = vector.load %arg13[%c0_261, %c0_262, %c0_263] : memref<2x8x32xf32, #tpu.memory_space<vmem>>, vector<1x8x32xf32>
    %442 = vector.shape_cast %441 : vector<1x8x32xf32> to vector<8x32xf32>
    %443 = vector.shape_cast %435 : vector<8x32xf32> to vector<1x8x32xf32>
    tpu.vector_store %arg13[%c0_261, %c0_262, %c0_263], %443 {strides = array<i32>} : memref<2x8x32xf32, #tpu.memory_space<vmem>>, vector<1x8x32xf32>,
    %c1_264 = arith.constant 1 : index
    %c0_265 = arith.constant 0 : index
    %c0_266 = arith.constant 0 : index
    %444 = vector.load %arg12[%c1_264, %c0_265, %c0_266] : memref<2x8x32xf32, #tpu.memory_space<vmem>>, vector<1x8x32xf32>
    %445 = vector.shape_cast %444 : vector<1x8x32xf32> to vector<8x32xf32>
    %c1_267 = arith.constant 1 : index
    %c0_268 = arith.constant 0 : index
    %c0_269 = arith.constant 0 : index
    %446 = vector.load %arg13[%c1_267, %c0_268, %c0_269] : memref<2x8x32xf32, #tpu.memory_space<vmem>>, vector<1x8x32xf32>
    %447 = vector.shape_cast %446 : vector<1x8x32xf32> to vector<8x32xf32>
    %448 = arith.truncf %445 : vector<8x32xf32> to vector<8x32xbf16>
    %c0_270 = arith.constant 0 : index
    %c0_271 = arith.constant 0 : index
    %449 = vector.load %arg5[%c0_270, %c0_271] : memref<32x128xbf16, #tpu.memory_space<vmem>>, vector<32x128xbf16>
    %cst_272 = arith.constant dense<0.000000e+00> : vector<8x128xf32>
    %450 = tpu.matmul %448, %449, %cst_272 {dimension_numbers = #tpu.dot_dimension_numbers<[1], [0], [0], [1], [0, 0, 1, 1], [], []>} : vector<8x32xbf16>, vector<32x128xbf16>, vector<8x128xf32> -> vector<8x128xf32>
    %451 = arith.truncf %437 : vector<8x32xf32> to vector<8x32xbf16>
    %c0_273 = arith.constant 0 : index
    %c0_274 = arith.constant 0 : index
    %452 = vector.load %arg3[%c0_273, %c0_274] : memref<32x128xbf16, #tpu.memory_space<vmem>>, vector<32x128xbf16>
    %cst_275 = arith.constant dense<0.000000e+00> : vector<8x128xf32>
    %453 = tpu.matmul %451, %452, %cst_275 {dimension_numbers = #tpu.dot_dimension_numbers<[1], [0], [0], [1], [0, 0, 1, 1], [], []>} : vector<8x32xbf16>, vector<32x128xbf16>, vector<8x128xf32> -> vector<8x128xf32>
    %454 = arith.addf %453, %450 : vector<8x128xf32>
    %455 = arith.addf %454, %24 : vector<8x128xf32>
    %456 = arith.mulf %455, %33 : vector<8x128xf32>
    %457 = arith.negf %456 : vector<8x128xf32>
    %458 = math.exp %457 : vector<8x128xf32>
    %cst_276 = arith.constant 1.000000e+00 : f32
    %459 = vector.broadcast %cst_276 : f32 to vector<8x128xf32>
    %460 = arith.addf %459, %458 : vector<8x128xf32>
    %461 = arith.divf %459, %460 : vector<8x128xf32>
    %462 = vector.extract_strided_slice %461 {offsets = [0, 0], sizes = [8, 32], strides = [1, 1]} : vector<8x128xf32> to vector<8x32xf32>
    %463 = vector.extract_strided_slice %461 {offsets = [0, 32], sizes = [8, 32], strides = [1, 1]} : vector<8x128xf32> to vector<8x32xf32>
    %464 = vector.extract_strided_slice %461 {offsets = [0, 64], sizes = [8, 32], strides = [1, 1]} : vector<8x128xf32> to vector<8x32xf32>
    %cst_277 = arith.constant 2.000000e+00 : f32
    %465 = vector.broadcast %cst_277 : f32 to vector<8x32xf32>
    %466 = arith.mulf %465, %464 : vector<8x32xf32>
    %cst_278 = arith.constant 1.000000e+00 : f32
    %467 = vector.broadcast %cst_278 : f32 to vector<8x32xf32>
    %468 = arith.subf %466, %467 : vector<8x32xf32>
    %469 = vector.extract_strided_slice %461 {offsets = [0, 96], sizes = [8, 32], strides = [1, 1]} : vector<8x128xf32> to vector<8x32xf32>
    %470 = arith.mulf %463, %447 : vector<8x32xf32>
    %471 = arith.mulf %462, %468 : vector<8x32xf32>
    %472 = arith.addf %470, %471 : vector<8x32xf32>
    %473 = math.tanh %472 : vector<8x32xf32>
    %474 = arith.mulf %469, %473 : vector<8x32xf32>
    %c1_279 = arith.constant 1 : index
    %c0_280 = arith.constant 0 : index
    %c0_281 = arith.constant 0 : index
    %475 = vector.load %arg12[%c1_279, %c0_280, %c0_281] : memref<2x8x32xf32, #tpu.memory_space<vmem>>, vector<1x8x32xf32>
    %476 = vector.shape_cast %475 : vector<1x8x32xf32> to vector<8x32xf32>
    %477 = vector.shape_cast %474 : vector<8x32xf32> to vector<1x8x32xf32>
    tpu.vector_store %arg12[%c1_279, %c0_280, %c0_281], %477 {strides = array<i32>} : memref<2x8x32xf32, #tpu.memory_space<vmem>>, vector<1x8x32xf32>,
    %c1_282 = arith.constant 1 : index
    %c0_283 = arith.constant 0 : index
    %c0_284 = arith.constant 0 : index
    %478 = vector.load %arg13[%c1_282, %c0_283, %c0_284] : memref<2x8x32xf32, #tpu.memory_space<vmem>>, vector<1x8x32xf32>
    %479 = vector.shape_cast %478 : vector<1x8x32xf32> to vector<8x32xf32>
    %480 = vector.shape_cast %472 : vector<8x32xf32> to vector<1x8x32xf32>
    tpu.vector_store %arg13[%c1_282, %c0_283, %c0_284], %480 {strides = array<i32>} : memref<2x8x32xf32, #tpu.memory_space<vmem>>, vector<1x8x32xf32>,
    %c5_285 = arith.constant 5 : index
    %c0_286 = arith.constant 0 : index
    %c0_287 = arith.constant 0 : index
    %481 = vector.load %arg8[%c5_285, %c0_286, %c0_287] : memref<8x8x32xf32, #tpu.memory_space<vmem>>, vector<1x8x32xf32>
    %482 = vector.shape_cast %481 : vector<1x8x32xf32> to vector<8x32xf32>
    %483 = vector.shape_cast %474 : vector<8x32xf32> to vector<1x8x32xf32>
    tpu.vector_store %arg8[%c5_285, %c0_286, %c0_287], %483 {strides = array<i32>} : memref<8x8x32xf32, #tpu.memory_space<vmem>>, vector<1x8x32xf32>,
    %c0_288 = arith.constant 0 : index
    %c0_289 = arith.constant 0 : index
    %c0_290 = arith.constant 0 : index
    %484 = vector.load %arg12[%c0_288, %c0_289, %c0_290] : memref<2x8x32xf32, #tpu.memory_space<vmem>>, vector<1x8x32xf32>
    %485 = vector.shape_cast %484 : vector<1x8x32xf32> to vector<8x32xf32>
    %c0_291 = arith.constant 0 : index
    %c0_292 = arith.constant 0 : index
    %c0_293 = arith.constant 0 : index
    %486 = vector.load %arg13[%c0_291, %c0_292, %c0_293] : memref<2x8x32xf32, #tpu.memory_space<vmem>>, vector<1x8x32xf32>
    %487 = vector.shape_cast %486 : vector<1x8x32xf32> to vector<8x32xf32>
    %488 = arith.truncf %485 : vector<8x32xf32> to vector<8x32xbf16>
    %c0_294 = arith.constant 0 : index
    %c0_295 = arith.constant 0 : index
    %489 = vector.load %arg4[%c0_294, %c0_295] : memref<32x128xbf16, #tpu.memory_space<vmem>>, vector<32x128xbf16>
    %cst_296 = arith.constant dense<0.000000e+00> : vector<8x128xf32>
    %490 = tpu.matmul %488, %489, %cst_296 {dimension_numbers = #tpu.dot_dimension_numbers<[1], [0], [0], [1], [0, 0, 1, 1], [], []>} : vector<8x32xbf16>, vector<32x128xbf16>, vector<8x128xf32> -> vector<8x128xf32>
    %c6 = arith.constant 6 : index
    %c0_297 = arith.constant 0 : index
    %c0_298 = arith.constant 0 : index
    %491 = vector.load %arg11[%c6, %c0_297, %c0_298] : memref<8x8x128xf32, #tpu.memory_space<vmem>>, vector<1x8x128xf32>
    %492 = vector.shape_cast %491 : vector<1x8x128xf32> to vector<8x128xf32>
    %493 = arith.addf %492, %490 : vector<8x128xf32>
    %494 = arith.mulf %493, %33 : vector<8x128xf32>
    %495 = arith.negf %494 : vector<8x128xf32>
    %496 = math.exp %495 : vector<8x128xf32>
    %cst_299 = arith.constant 1.000000e+00 : f32
    %497 = vector.broadcast %cst_299 : f32 to vector<8x128xf32>
    %498 = arith.addf %497, %496 : vector<8x128xf32>
    %499 = arith.divf %497, %498 : vector<8x128xf32>
    %500 = vector.extract_strided_slice %499 {offsets = [0, 0], sizes = [8, 32], strides = [1, 1]} : vector<8x128xf32> to vector<8x32xf32>
    %501 = vector.extract_strided_slice %499 {offsets = [0, 32], sizes = [8, 32], strides = [1, 1]} : vector<8x128xf32> to vector<8x32xf32>
    %502 = vector.extract_strided_slice %499 {offsets = [0, 64], sizes = [8, 32], strides = [1, 1]} : vector<8x128xf32> to vector<8x32xf32>
    %cst_300 = arith.constant 2.000000e+00 : f32
    %503 = vector.broadcast %cst_300 : f32 to vector<8x32xf32>
    %504 = arith.mulf %503, %502 : vector<8x32xf32>
    %cst_301 = arith.constant 1.000000e+00 : f32
    %505 = vector.broadcast %cst_301 : f32 to vector<8x32xf32>
    %506 = arith.subf %504, %505 : vector<8x32xf32>
    %507 = vector.extract_strided_slice %499 {offsets = [0, 96], sizes = [8, 32], strides = [1, 1]} : vector<8x128xf32> to vector<8x32xf32>
    %508 = arith.mulf %501, %487 : vector<8x32xf32>
    %509 = arith.mulf %500, %506 : vector<8x32xf32>
    %510 = arith.addf %508, %509 : vector<8x32xf32>
    %511 = math.tanh %510 : vector<8x32xf32>
    %512 = arith.mulf %507, %511 : vector<8x32xf32>
    %c0_302 = arith.constant 0 : index
    %c0_303 = arith.constant 0 : index
    %c0_304 = arith.constant 0 : index
    %513 = vector.load %arg12[%c0_302, %c0_303, %c0_304] : memref<2x8x32xf32, #tpu.memory_space<vmem>>, vector<1x8x32xf32>
    %514 = vector.shape_cast %513 : vector<1x8x32xf32> to vector<8x32xf32>
    %515 = vector.shape_cast %512 : vector<8x32xf32> to vector<1x8x32xf32>
    tpu.vector_store %arg12[%c0_302, %c0_303, %c0_304], %515 {strides = array<i32>} : memref<2x8x32xf32, #tpu.memory_space<vmem>>, vector<1x8x32xf32>,
    %c0_305 = arith.constant 0 : index
    %c0_306 = arith.constant 0 : index
    %c0_307 = arith.constant 0 : index
    %516 = vector.load %arg13[%c0_305, %c0_306, %c0_307] : memref<2x8x32xf32, #tpu.memory_space<vmem>>, vector<1x8x32xf32>
    %517 = vector.shape_cast %516 : vector<1x8x32xf32> to vector<8x32xf32>
    %518 = vector.shape_cast %510 : vector<8x32xf32> to vector<1x8x32xf32>
    tpu.vector_store %arg13[%c0_305, %c0_306, %c0_307], %518 {strides = array<i32>} : memref<2x8x32xf32, #tpu.memory_space<vmem>>, vector<1x8x32xf32>,
    %c1_308 = arith.constant 1 : index
    %c0_309 = arith.constant 0 : index
    %c0_310 = arith.constant 0 : index
    %519 = vector.load %arg12[%c1_308, %c0_309, %c0_310] : memref<2x8x32xf32, #tpu.memory_space<vmem>>, vector<1x8x32xf32>
    %520 = vector.shape_cast %519 : vector<1x8x32xf32> to vector<8x32xf32>
    %c1_311 = arith.constant 1 : index
    %c0_312 = arith.constant 0 : index
    %c0_313 = arith.constant 0 : index
    %521 = vector.load %arg13[%c1_311, %c0_312, %c0_313] : memref<2x8x32xf32, #tpu.memory_space<vmem>>, vector<1x8x32xf32>
    %522 = vector.shape_cast %521 : vector<1x8x32xf32> to vector<8x32xf32>
    %523 = arith.truncf %520 : vector<8x32xf32> to vector<8x32xbf16>
    %c0_314 = arith.constant 0 : index
    %c0_315 = arith.constant 0 : index
    %524 = vector.load %arg5[%c0_314, %c0_315] : memref<32x128xbf16, #tpu.memory_space<vmem>>, vector<32x128xbf16>
    %cst_316 = arith.constant dense<0.000000e+00> : vector<8x128xf32>
    %525 = tpu.matmul %523, %524, %cst_316 {dimension_numbers = #tpu.dot_dimension_numbers<[1], [0], [0], [1], [0, 0, 1, 1], [], []>} : vector<8x32xbf16>, vector<32x128xbf16>, vector<8x128xf32> -> vector<8x128xf32>
    %526 = arith.truncf %512 : vector<8x32xf32> to vector<8x32xbf16>
    %c0_317 = arith.constant 0 : index
    %c0_318 = arith.constant 0 : index
    %527 = vector.load %arg3[%c0_317, %c0_318] : memref<32x128xbf16, #tpu.memory_space<vmem>>, vector<32x128xbf16>
    %cst_319 = arith.constant dense<0.000000e+00> : vector<8x128xf32>
    %528 = tpu.matmul %526, %527, %cst_319 {dimension_numbers = #tpu.dot_dimension_numbers<[1], [0], [0], [1], [0, 0, 1, 1], [], []>} : vector<8x32xbf16>, vector<32x128xbf16>, vector<8x128xf32> -> vector<8x128xf32>
    %529 = arith.addf %528, %525 : vector<8x128xf32>
    %530 = arith.addf %529, %24 : vector<8x128xf32>
    %531 = arith.mulf %530, %33 : vector<8x128xf32>
    %532 = arith.negf %531 : vector<8x128xf32>
    %533 = math.exp %532 : vector<8x128xf32>
    %cst_320 = arith.constant 1.000000e+00 : f32
    %534 = vector.broadcast %cst_320 : f32 to vector<8x128xf32>
    %535 = arith.addf %534, %533 : vector<8x128xf32>
    %536 = arith.divf %534, %535 : vector<8x128xf32>
    %537 = vector.extract_strided_slice %536 {offsets = [0, 0], sizes = [8, 32], strides = [1, 1]} : vector<8x128xf32> to vector<8x32xf32>
    %538 = vector.extract_strided_slice %536 {offsets = [0, 32], sizes = [8, 32], strides = [1, 1]} : vector<8x128xf32> to vector<8x32xf32>
    %539 = vector.extract_strided_slice %536 {offsets = [0, 64], sizes = [8, 32], strides = [1, 1]} : vector<8x128xf32> to vector<8x32xf32>
    %cst_321 = arith.constant 2.000000e+00 : f32
    %540 = vector.broadcast %cst_321 : f32 to vector<8x32xf32>
    %541 = arith.mulf %540, %539 : vector<8x32xf32>
    %cst_322 = arith.constant 1.000000e+00 : f32
    %542 = vector.broadcast %cst_322 : f32 to vector<8x32xf32>
    %543 = arith.subf %541, %542 : vector<8x32xf32>
    %544 = vector.extract_strided_slice %536 {offsets = [0, 96], sizes = [8, 32], strides = [1, 1]} : vector<8x128xf32> to vector<8x32xf32>
    %545 = arith.mulf %538, %522 : vector<8x32xf32>
    %546 = arith.mulf %537, %543 : vector<8x32xf32>
    %547 = arith.addf %545, %546 : vector<8x32xf32>
    %548 = math.tanh %547 : vector<8x32xf32>
    %549 = arith.mulf %544, %548 : vector<8x32xf32>
    %c1_323 = arith.constant 1 : index
    %c0_324 = arith.constant 0 : index
    %c0_325 = arith.constant 0 : index
    %550 = vector.load %arg12[%c1_323, %c0_324, %c0_325] : memref<2x8x32xf32, #tpu.memory_space<vmem>>, vector<1x8x32xf32>
    %551 = vector.shape_cast %550 : vector<1x8x32xf32> to vector<8x32xf32>
    %552 = vector.shape_cast %549 : vector<8x32xf32> to vector<1x8x32xf32>
    tpu.vector_store %arg12[%c1_323, %c0_324, %c0_325], %552 {strides = array<i32>} : memref<2x8x32xf32, #tpu.memory_space<vmem>>, vector<1x8x32xf32>,
    %c1_326 = arith.constant 1 : index
    %c0_327 = arith.constant 0 : index
    %c0_328 = arith.constant 0 : index
    %553 = vector.load %arg13[%c1_326, %c0_327, %c0_328] : memref<2x8x32xf32, #tpu.memory_space<vmem>>, vector<1x8x32xf32>
    %554 = vector.shape_cast %553 : vector<1x8x32xf32> to vector<8x32xf32>
    %555 = vector.shape_cast %547 : vector<8x32xf32> to vector<1x8x32xf32>
    tpu.vector_store %arg13[%c1_326, %c0_327, %c0_328], %555 {strides = array<i32>} : memref<2x8x32xf32, #tpu.memory_space<vmem>>, vector<1x8x32xf32>,
    %c6_329 = arith.constant 6 : index
    %c0_330 = arith.constant 0 : index
    %c0_331 = arith.constant 0 : index
    %556 = vector.load %arg8[%c6_329, %c0_330, %c0_331] : memref<8x8x32xf32, #tpu.memory_space<vmem>>, vector<1x8x32xf32>
    %557 = vector.shape_cast %556 : vector<1x8x32xf32> to vector<8x32xf32>
    %558 = vector.shape_cast %549 : vector<8x32xf32> to vector<1x8x32xf32>
    tpu.vector_store %arg8[%c6_329, %c0_330, %c0_331], %558 {strides = array<i32>} : memref<8x8x32xf32, #tpu.memory_space<vmem>>, vector<1x8x32xf32>,
    %c0_332 = arith.constant 0 : index
    %c0_333 = arith.constant 0 : index
    %c0_334 = arith.constant 0 : index
    %559 = vector.load %arg12[%c0_332, %c0_333, %c0_334] : memref<2x8x32xf32, #tpu.memory_space<vmem>>, vector<1x8x32xf32>
    %560 = vector.shape_cast %559 : vector<1x8x32xf32> to vector<8x32xf32>
    %c0_335 = arith.constant 0 : index
    %c0_336 = arith.constant 0 : index
    %c0_337 = arith.constant 0 : index
    %561 = vector.load %arg13[%c0_335, %c0_336, %c0_337] : memref<2x8x32xf32, #tpu.memory_space<vmem>>, vector<1x8x32xf32>
    %562 = vector.shape_cast %561 : vector<1x8x32xf32> to vector<8x32xf32>
    %563 = arith.truncf %560 : vector<8x32xf32> to vector<8x32xbf16>
    %c0_338 = arith.constant 0 : index
    %c0_339 = arith.constant 0 : index
    %564 = vector.load %arg4[%c0_338, %c0_339] : memref<32x128xbf16, #tpu.memory_space<vmem>>, vector<32x128xbf16>
    %cst_340 = arith.constant dense<0.000000e+00> : vector<8x128xf32>
    %565 = tpu.matmul %563, %564, %cst_340 {dimension_numbers = #tpu.dot_dimension_numbers<[1], [0], [0], [1], [0, 0, 1, 1], [], []>} : vector<8x32xbf16>, vector<32x128xbf16>, vector<8x128xf32> -> vector<8x128xf32>
    %c7 = arith.constant 7 : index
    %c0_341 = arith.constant 0 : index
    %c0_342 = arith.constant 0 : index
    %566 = vector.load %arg11[%c7, %c0_341, %c0_342] : memref<8x8x128xf32, #tpu.memory_space<vmem>>, vector<1x8x128xf32>
    %567 = vector.shape_cast %566 : vector<1x8x128xf32> to vector<8x128xf32>
    %568 = arith.addf %567, %565 : vector<8x128xf32>
    %569 = arith.mulf %568, %33 : vector<8x128xf32>
    %570 = arith.negf %569 : vector<8x128xf32>
    %571 = math.exp %570 : vector<8x128xf32>
    %cst_343 = arith.constant 1.000000e+00 : f32
    %572 = vector.broadcast %cst_343 : f32 to vector<8x128xf32>
    %573 = arith.addf %572, %571 : vector<8x128xf32>
    %574 = arith.divf %572, %573 : vector<8x128xf32>
    %575 = vector.extract_strided_slice %574 {offsets = [0, 0], sizes = [8, 32], strides = [1, 1]} : vector<8x128xf32> to vector<8x32xf32>
    %576 = vector.extract_strided_slice %574 {offsets = [0, 32], sizes = [8, 32], strides = [1, 1]} : vector<8x128xf32> to vector<8x32xf32>
    %577 = vector.extract_strided_slice %574 {offsets = [0, 64], sizes = [8, 32], strides = [1, 1]} : vector<8x128xf32> to vector<8x32xf32>
    %cst_344 = arith.constant 2.000000e+00 : f32
    %578 = vector.broadcast %cst_344 : f32 to vector<8x32xf32>
    %579 = arith.mulf %578, %577 : vector<8x32xf32>
    %cst_345 = arith.constant 1.000000e+00 : f32
    %580 = vector.broadcast %cst_345 : f32 to vector<8x32xf32>
    %581 = arith.subf %579, %580 : vector<8x32xf32>
    %582 = vector.extract_strided_slice %574 {offsets = [0, 96], sizes = [8, 32], strides = [1, 1]} : vector<8x128xf32> to vector<8x32xf32>
    %583 = arith.mulf %576, %562 : vector<8x32xf32>
    %584 = arith.mulf %575, %581 : vector<8x32xf32>
    %585 = arith.addf %583, %584 : vector<8x32xf32>
    %586 = math.tanh %585 : vector<8x32xf32>
    %587 = arith.mulf %582, %586 : vector<8x32xf32>
    %c0_346 = arith.constant 0 : index
    %c0_347 = arith.constant 0 : index
    %c0_348 = arith.constant 0 : index
    %588 = vector.load %arg12[%c0_346, %c0_347, %c0_348] : memref<2x8x32xf32, #tpu.memory_space<vmem>>, vector<1x8x32xf32>
    %589 = vector.shape_cast %588 : vector<1x8x32xf32> to vector<8x32xf32>
    %590 = vector.shape_cast %587 : vector<8x32xf32> to vector<1x8x32xf32>
    tpu.vector_store %arg12[%c0_346, %c0_347, %c0_348], %590 {strides = array<i32>} : memref<2x8x32xf32, #tpu.memory_space<vmem>>, vector<1x8x32xf32>,
    %c0_349 = arith.constant 0 : index
    %c0_350 = arith.constant 0 : index
    %c0_351 = arith.constant 0 : index
    %591 = vector.load %arg13[%c0_349, %c0_350, %c0_351] : memref<2x8x32xf32, #tpu.memory_space<vmem>>, vector<1x8x32xf32>
    %592 = vector.shape_cast %591 : vector<1x8x32xf32> to vector<8x32xf32>
    %593 = vector.shape_cast %585 : vector<8x32xf32> to vector<1x8x32xf32>
    tpu.vector_store %arg13[%c0_349, %c0_350, %c0_351], %593 {strides = array<i32>} : memref<2x8x32xf32, #tpu.memory_space<vmem>>, vector<1x8x32xf32>,
    %c1_352 = arith.constant 1 : index
    %c0_353 = arith.constant 0 : index
    %c0_354 = arith.constant 0 : index
    %594 = vector.load %arg12[%c1_352, %c0_353, %c0_354] : memref<2x8x32xf32, #tpu.memory_space<vmem>>, vector<1x8x32xf32>
    %595 = vector.shape_cast %594 : vector<1x8x32xf32> to vector<8x32xf32>
    %c1_355 = arith.constant 1 : index
    %c0_356 = arith.constant 0 : index
    %c0_357 = arith.constant 0 : index
    %596 = vector.load %arg13[%c1_355, %c0_356, %c0_357] : memref<2x8x32xf32, #tpu.memory_space<vmem>>, vector<1x8x32xf32>
    %597 = vector.shape_cast %596 : vector<1x8x32xf32> to vector<8x32xf32>
    %598 = arith.truncf %595 : vector<8x32xf32> to vector<8x32xbf16>
    %c0_358 = arith.constant 0 : index
    %c0_359 = arith.constant 0 : index
    %599 = vector.load %arg5[%c0_358, %c0_359] : memref<32x128xbf16, #tpu.memory_space<vmem>>, vector<32x128xbf16>
    %cst_360 = arith.constant dense<0.000000e+00> : vector<8x128xf32>
    %600 = tpu.matmul %598, %599, %cst_360 {dimension_numbers = #tpu.dot_dimension_numbers<[1], [0], [0], [1], [0, 0, 1, 1], [], []>} : vector<8x32xbf16>, vector<32x128xbf16>, vector<8x128xf32> -> vector<8x128xf32>
    %601 = arith.truncf %587 : vector<8x32xf32> to vector<8x32xbf16>
    %c0_361 = arith.constant 0 : index
    %c0_362 = arith.constant 0 : index
    %602 = vector.load %arg3[%c0_361, %c0_362] : memref<32x128xbf16, #tpu.memory_space<vmem>>, vector<32x128xbf16>
    %cst_363 = arith.constant dense<0.000000e+00> : vector<8x128xf32>
    %603 = tpu.matmul %601, %602, %cst_363 {dimension_numbers = #tpu.dot_dimension_numbers<[1], [0], [0], [1], [0, 0, 1, 1], [], []>} : vector<8x32xbf16>, vector<32x128xbf16>, vector<8x128xf32> -> vector<8x128xf32>
    %604 = arith.addf %603, %600 : vector<8x128xf32>
    %605 = arith.addf %604, %24 : vector<8x128xf32>
    %606 = arith.mulf %605, %33 : vector<8x128xf32>
    %607 = arith.negf %606 : vector<8x128xf32>
    %608 = math.exp %607 : vector<8x128xf32>
    %cst_364 = arith.constant 1.000000e+00 : f32
    %609 = vector.broadcast %cst_364 : f32 to vector<8x128xf32>
    %610 = arith.addf %609, %608 : vector<8x128xf32>
    %611 = arith.divf %609, %610 : vector<8x128xf32>
    %612 = vector.extract_strided_slice %611 {offsets = [0, 0], sizes = [8, 32], strides = [1, 1]} : vector<8x128xf32> to vector<8x32xf32>
    %613 = vector.extract_strided_slice %611 {offsets = [0, 32], sizes = [8, 32], strides = [1, 1]} : vector<8x128xf32> to vector<8x32xf32>
    %614 = vector.extract_strided_slice %611 {offsets = [0, 64], sizes = [8, 32], strides = [1, 1]} : vector<8x128xf32> to vector<8x32xf32>
    %cst_365 = arith.constant 2.000000e+00 : f32
    %615 = vector.broadcast %cst_365 : f32 to vector<8x32xf32>
    %616 = arith.mulf %615, %614 : vector<8x32xf32>
    %cst_366 = arith.constant 1.000000e+00 : f32
    %617 = vector.broadcast %cst_366 : f32 to vector<8x32xf32>
    %618 = arith.subf %616, %617 : vector<8x32xf32>
    %619 = vector.extract_strided_slice %611 {offsets = [0, 96], sizes = [8, 32], strides = [1, 1]} : vector<8x128xf32> to vector<8x32xf32>
    %620 = arith.mulf %613, %597 : vector<8x32xf32>
    %621 = arith.mulf %612, %618 : vector<8x32xf32>
    %622 = arith.addf %620, %621 : vector<8x32xf32>
    %623 = math.tanh %622 : vector<8x32xf32>
    %624 = arith.mulf %619, %623 : vector<8x32xf32>
    %c1_367 = arith.constant 1 : index
    %c0_368 = arith.constant 0 : index
    %c0_369 = arith.constant 0 : index
    %625 = vector.load %arg12[%c1_367, %c0_368, %c0_369] : memref<2x8x32xf32, #tpu.memory_space<vmem>>, vector<1x8x32xf32>
    %626 = vector.shape_cast %625 : vector<1x8x32xf32> to vector<8x32xf32>
    %627 = vector.shape_cast %624 : vector<8x32xf32> to vector<1x8x32xf32>
    tpu.vector_store %arg12[%c1_367, %c0_368, %c0_369], %627 {strides = array<i32>} : memref<2x8x32xf32, #tpu.memory_space<vmem>>, vector<1x8x32xf32>,
    %c1_370 = arith.constant 1 : index
    %c0_371 = arith.constant 0 : index
    %c0_372 = arith.constant 0 : index
    %628 = vector.load %arg13[%c1_370, %c0_371, %c0_372] : memref<2x8x32xf32, #tpu.memory_space<vmem>>, vector<1x8x32xf32>
    %629 = vector.shape_cast %628 : vector<1x8x32xf32> to vector<8x32xf32>
    %630 = vector.shape_cast %622 : vector<8x32xf32> to vector<1x8x32xf32>
    tpu.vector_store %arg13[%c1_370, %c0_371, %c0_372], %630 {strides = array<i32>} : memref<2x8x32xf32, #tpu.memory_space<vmem>>, vector<1x8x32xf32>,
    %c7_373 = arith.constant 7 : index
    %c0_374 = arith.constant 0 : index
    %c0_375 = arith.constant 0 : index
    %631 = vector.load %arg8[%c7_373, %c0_374, %c0_375] : memref<8x8x32xf32, #tpu.memory_space<vmem>>, vector<1x8x32xf32>
    %632 = vector.shape_cast %631 : vector<1x8x32xf32> to vector<8x32xf32>
    %633 = vector.shape_cast %624 : vector<8x32xf32> to vector<1x8x32xf32>
    tpu.vector_store %arg8[%c7_373, %c0_374, %c0_375], %633 {strides = array<i32>} : memref<8x8x32xf32, #tpu.memory_space<vmem>>, vector<1x8x32xf32>,
    %c0_376 = arith.constant 0 : index
    %c0_377 = arith.constant 0 : index
    %c0_378 = arith.constant 0 : index
    %634 = vector.load %arg12[%c0_376, %c0_377, %c0_378] : memref<2x8x32xf32, #tpu.memory_space<vmem>>, vector<2x8x32xf32>
    %c0_379 = arith.constant 0 : index
    %c0_380 = arith.constant 0 : index
    %c0_381 = arith.constant 0 : index
    %635 = vector.load %arg9[%c0_379, %c0_380, %c0_381] : memref<2x8x32xf32, #tpu.memory_space<vmem>>, vector<2x8x32xf32>
    tpu.vector_store %arg9[%c0_379, %c0_380, %c0_381], %634 {strides = array<i32>} : memref<2x8x32xf32, #tpu.memory_space<vmem>>, vector<2x8x32xf32>,
    %c0_382 = arith.constant 0 : index
    %c0_383 = arith.constant 0 : index
    %c0_384 = arith.constant 0 : index
    %636 = vector.load %arg13[%c0_382, %c0_383, %c0_384] : memref<2x8x32xf32, #tpu.memory_space<vmem>>, vector<2x8x32xf32>
    %c0_385 = arith.constant 0 : index
    %c0_386 = arith.constant 0 : index
    %c0_387 = arith.constant 0 : index
    %637 = vector.load %arg10[%c0_385, %c0_386, %c0_387] : memref<2x8x32xf32, #tpu.memory_space<vmem>>, vector<2x8x32xf32>
    tpu.vector_store %arg10[%c0_385, %c0_386, %c0_387], %636 {strides = array<i32>} : memref<2x8x32xf32, #tpu.memory_space<vmem>>, vector<2x8x32xf32>,
    return
  }
}

</mosaic_0001>

<bundles_post_ra>
// kernel: tpu_custom_call.1
= control target key start
LH: loop header
LB: loop body
LE: loop exit
PB: predicated region body
PF: predicated region fallthrough
CT: control target
= control target key end

     0   :  { %16 = vsyncpa [#allocation6], 0  ;;  %v2582_v2 = vmov 0   ;;  %s3124_s0 = inlined_call_operand.vmem [shape: s32[64,1], index: 0, kind: input, shape index: {}]   ;;  %s3125_s1 = inlined_call_operand.vmem [shape: bf16[64,16], index: 1, kind: input, shape index: {}]   ;;  %s3126_s2 = inlined_call_operand.vmem [shape: bf16[16,128], index: 2, kind: input, shape index: {}]   ;;  %s3127_s3 = inlined_call_operand.vmem [shape: bf16[32,128], index: 3, kind: input, shape index: {}]   ;;  %s3128_s4 = inlined_call_operand.vmem [shape: bf16[32,128], index: 4, kind: input, shape index: {}]   ;;  %s3129_s5 = inlined_call_operand.vmem [shape: bf16[32,128], index: 5, kind: input, shape index: {}]   ;;  %s3130_s6 = inlined_call_operand.vmem [shape: f32[1,128], index: 6, kind: input, shape index: {}]   ;;  %s3131_s7 = inlined_call_operand.vmem [shape: f32[1,128], index: 7, kind: input, shape index: {}]   ;;  %s3132_s8 = inlined_call_operand.hbm [shape: f32[8,8,32], index: 8, kind: output, shape index: {0}]   ;;  %s3133_s9 = inlined_call_operand.hbm [shape: f32[2,8,32], index: 9, kind: output, shape index: {1}]   ;;  %s3134_s10 = inlined_call_operand.hbm [shape: f32[2,8,32], index: 10, kind: output, shape index: {2}]  }
   0x1   :  { %v40_v0 = vld [vmem:[%s3124_s0] sm:$0xff]  ;;  %v2342_v1 = vld [vmem:[%s3125_s1 + $0x18] sm:$0xff]  ;;  %2403 = vset.pattern.permute.xlu0 %v2582_v2  ;;  %2404 = vset.pattern.permute.xlu2 %v2582_v2 }
   0x2   :  { %17 = vsyncpa [#allocation8], 0  ;;  %51 = vperm.xlu0 %2403, %v40_v0   ;;  %151 = vmatpush.bf16.msra.mxu0 %v2342_v1  ;;  %v41_v3 = vld [vmem:[%s3124_s0 + $0x8] sm:$0xff]  ;;  %v2341_v4 = vld [vmem:[%s3125_s1 + $0x10] sm:$0xff]  ;;  %vm35_vm0 = vcmask 261120   ;;  %v2583_v8 = vmov 0.0   ;;  %v48_v12 = vlaneseq }
   0x3   :  { %2405 = vset.pattern.permute.xlu1 %v2582_v2  ;;  %v2340_v5 = vld [vmem:[%s3125_s1 + $0x8] sm:$0xff]  ;;  %v2339_v6 = vld [vmem:[%s3125_s1] sm:$0xff]  ;;  %36 = vst.msk [vmem:[#allocation3] sm:$0xff] %vm35_vm0, %v2583_v8  ;;  %vm134_vm3 = vcmask 523264   ;;  %vm192_vm4 = vcmask 130048   ;;  %v2584_v28 = vmov 1.0  }
   0x4   :  { %v2345_v7 = vld [vmem:[%s3128_s4 + $0x8] sm:$0xff]  ;;  %v2344_v9 = vld [vmem:[%s3128_s4] sm:$0xff]  ;;  %37 = vst.msk [vmem:[#allocation3 + $0x8] sm:$0xff] %vm35_vm0, %v2583_v8  ;;  %v2681_v14 = vand.u32 127, %v48_v12  ;;  %s2586_s12 = smov 32   ;;  %s2587_s13 = smov 96  }
   0x5   :  { %278 = vmatpush.bf16.msra.mxu2 %v2345_v7  ;;  %38 = vst.msk [vmem:[#allocation4] sm:$0xff] %vm35_vm0, %v2583_v8  ;;  %v2343_v19 = vld [vmem:[%s3126_s2] sm:$0xff]  ;;  %s2585_s2 = smov 64   ;;  %v2347_v55 = vld [vmem:[%s3129_s5 + $0x8] sm:$0xff]  ;;  %s2008_s20 = sshll.u32 %s3132_s8, 4  ;;  %s2009_s20 = int_to_ptr.hbm [resolvable:$true] %s2008_s20 }
   0x6   :  { %152 = vmatpush.bf16.msra.mxu0 %v2341_v4  ;;  %39 = vst.msk [vmem:[#allocation4 + $0x8] sm:$0xff] %vm35_vm0, %v2583_v8  ;;  %212 = vmatpush.bf16.msra.mxu1 %v2343_v19  ;;  %vm246_vm5 = vcmp.ge.s32.totalorder %v2681_v14, 64  ;;  %vm247_vm6 = vcmp.lt.s32.totalorder %v2681_v14, 96  ;;  %v2697_v25 = vld [vmem:[%s3130_s6] ss:$0 sm:$0xff]  ;;  %v2349_v56 = vld [vmem:[%s3127_s3 + $0x8] sm:$0xff] }
   0x7   :  { %vm248_vm7 = vmand %vm246_vm5, %vm247_vm6  ;;  %370 = vmatpush.bf16.msra.mxu3 %v2347_v55  ;;  %v2346_v57 = vld [vmem:[%s3129_s5] sm:$0xff]  ;;  %v2351_v59 = vld [vmem:[%s3128_s4 + $0x8] sm:$0xff]  ;;  %s2590_s21 = smov 8   ;;  %s2591_s22 = smov [#allocation7]  }
   0x8   :  { %v2700_v29 = vsel %vm248_vm7, 2.0, %v2584_v28  ;;  %v2348_v60 = vld [vmem:[%s3127_s3] sm:$0xff]  ;;  %s2019_s23 = sshll.u32 %s2591_s22, 4  ;;  %s2021_s26 = sshll.u32 %s3133_s9, 4  ;;  %s2020_s23 = int_to_ptr.vmem [resolvable:$true] %s2019_s23  ;;  %s2022_s26 = int_to_ptr.hbm [resolvable:$true] %s2021_s26 }
   0x9   :  { %279 = vmatpush.bf16.msra.mxu2 %v2344_v9  ;;  %v2350_v2 = vld [vmem:[%s3128_s4] sm:$0xff]  ;;  %s2034_s1 = sshll.u32 %s3134_s10, 4  ;;  %s2035_s1 = int_to_ptr.hbm [resolvable:$true] %s2034_s1 }
   0xa   :  { %54 = vperm.xlu0 %2403, %v41_v3   ;;  %153 = vmatpush.bf16.msra.mxu0 %v2340_v5  ;;  %v250_v10 = vld [vmem:[#allocation3] sm:$0xff] }
   0xb   :  { %v252_v11 = vpack.c.bf16 %v250_v10, %v250_v10  ;;  %v341_v58 = vld [vmem:[#allocation3 + $0x8] sm:$0xff]  ;;  %371 = vmatpush.bf16.msra.mxu3 %v2346_v57  ;;  %v2736_v10 = vld [vmem:[%s3131_s7] ss:$0 sm:$0xff] }
   0xc   :  { %v251_v47 = vld [vmem:[#allocation4] sm:$0xff]  ;;  %v344_v61 = vpack.c.bf16 %v341_v58, %v341_v58 }
   0xd   :  { %2099 = vmatmul.msk.bf16.vlgmr.msra.gmra.mxu2 %vm35_vm0, %v252_v11  ;;  %v343_v57 = vld [vmem:[#allocation4 + $0x8] sm:$0xff] }
   0xe   :  { %154 = vmatpush.bf16.msra.mxu0 %v2339_v6  ;;  %406 = vmatpush.bf16.msrb.mxu2 %v2349_v56  ;;  %v43_v56 = vld [vmem:[%s3124_s0 + $0x18] sm:$0xff] }
   0xf   :  { %496 = vmatpush.bf16.msrb.mxu3 %v2351_v59 }
  0x10   :  { %2110 = vmatmul.msk.bf16.vlgmr.msra.gmra.mxu3 %vm35_vm0, %v344_v61 }
  0x12   :  { %407 = vmatpush.bf16.msrb.mxu2 %v2348_v60 }
  0x13   :  { %497 = vmatpush.bf16.msrb.mxu3 %v2350_v2 }
  0x74   :  { %v52_v13 = vpop.permute.xlu0 %51 }
  0x75   :  { %vm74_vm1 = vcmp.eq.s32.totalorder %v52_v13, %v2681_v14 }
  0x76   :  { %v2055_v16 = vsel %vm74_vm1, 1.0, %v2583_v8 }
  0x7c   :  { %v55_v15 = vpop.permute.xlu0 %54 }
  0x7d   :  { %vm75_vm2 = vcmp.eq.s32.totalorder %v55_v15, %v2681_v14 }
  0x7e   :  { %v2056_v17 = vsel %vm75_vm2, 1.0, %v2583_v8 }
  0x7f   :  { %v98_v18 = vpack.c.bf16 %v2056_v17, %v2055_v16 }
  0x81   :  { %2079 = vmatmul.msk.bf16.vlgmr.msra.gmra.mxu0 %vm134_vm3, %v98_v18 }
  0x90   :  { %v281_v20 = vpop.f32.mrf.mxu2 }
  0x93   :  { %v373_v4 = vpop.f32.mrf.mxu3 }
  0x98   :  { %v283_v21 = vpop.f32.mrf.mxu2 }
  0x9b   :  { %v375_v7 = vpop.f32.mrf.mxu3 }
  0xfe   :  { %v156_v22 = vpop.f32.mrf.mxu0 }
 0x106   :  { %v158_v23 = vpop.f32.mrf.mxu0 }
 0x107   :  { %v176_v24 = vpack.c.bf16 %v158_v23, %v156_v22 }
 0x109   :  { %2087 = vmatmul.msk.bf16.vlgmr.msra.gmra.mxu1 %vm192_vm4, %v176_v24 }
 0x186   :  { %v214_v26 = vpop.f32.mrf.mxu1 }
 0x187   :  { %v215_v27 = vadd.f32 %v2697_v25, %v214_v26 }
 0x189   :  { %v286_v30 = vadd.f32 %v281_v20, %v215_v27 }
 0x18b   :  { %v287_v31 = vmul.f32 %v286_v30, %v2700_v29 }
 0x18d   :  { %v2100_v32 = vmul.f32 -1.442695, %v287_v31  ;;  %v42_v31 = vld [vmem:[%s3124_s0 + $0x10] sm:$0xff] }
 0x18e   :  { %v216_v15 = vpop.f32.mrf.mxu1 }
 0x18f   :  { %2408 = vpow2.f32 %v2100_v32  ;;  %v217_v17 = vadd.f32 %v2697_v25, %v216_v15 }
 0x195   :  { %v2409_v33 = vpop.eup %2408 }
 0x196   :  { %v291_v34 = vadd.f32 1.0, %v2409_v33 }
 0x198   :  { %2410 = vrcp.f32 %v291_v34  ;;  %v303_v38 = vand.u32 2147483648, %v291_v34  ;;  %v301_v40 = vand.u32 2147483647, %v291_v34  ;;  %vm297_vm9 = vweird.f32 %v291_v34 }
 0x19a   :  { %v304_v42 = vor.u32 1.1754944e-38, %v303_v38  ;;  %vm302_vm11 = vcmp.eq.f32.partialorder %v301_v40, 8.507059e+37 }
 0x19e   :  { %v2411_v35 = vpop.eup %2410 }
 0x19f   :  { %v293_v36 = vmul.f32 %v2411_v35, %v291_v34  ;;  %vm298_vm8 = vweird.f32 %v2411_v35 }
 0x1a0   :  { %vm299_vm10 = vmor %vm297_vm9, %vm298_vm8 }
 0x1a1   :  { %v294_v37 = vsub.f32 1.0, %v293_v36 }
 0x1a3   :  { %v295_v39 = vmul.f32 %v2411_v35, %v294_v37 }
 0x1a5   :  { %v296_v41 = vadd.f32 %v2411_v35, %v295_v39 }
 0x1a7   :  { %v300_v43 = vsel %vm299_vm10, %v2411_v35, %v296_v41 }
 0x1a8   :  { %v305_v44 = vsel %vm302_vm11, %v304_v42, %v300_v43 }
 0x1a9   :  { %v307_v45 = vmul.f32 2.0, %v305_v44 }
 0x1ab   :  { %v2101_v46 = vadd.f32 -1.0, %v307_v45 }
 0x1ad   :  { %315 = vrot.lane.b32.xlu1 %v2101_v46, %s2585_s2 }
 0x1b5   :  { %310 = vrot.lane.b32.xlu1 %v251_v47, %s2586_s12 }
 0x21f   :  { %v316_v48 = vpop.permute.xlu1 %315 }
 0x220   :  { %v318_v49 = vmul.f32 %v316_v48, %v305_v44 }
 0x222   :  { %320 = vrot.lane.b32.xlu2 %v318_v49, %s2586_s12 }
 0x227   :  { %v311_v50 = vpop.permute.xlu1 %310 }
 0x228   :  { %v313_v51 = vmul.f32 %v311_v50, %v305_v44 }
 0x27c   :  { %v321_v52 = vpop.permute.xlu2 %320 }
 0x27d   :  { %v323_v53 = vadd.f32 %v321_v52, %v313_v51 }
 0x27f   :  { %2412 = vtanh.f32 %v323_v53 }
 0x285   :  { %v2413_v54 = vpop.eup %2412 }
 0x286   :  { %326 = vrot.lane.b32.xlu2 %v2413_v54, %s2585_s2 }
 0x28e   :  { %336 = vrot.lane.b32.xlu2 %v323_v53, %s2587_s13 }
 0x296   :  { %57 = vperm.xlu2 %2404, %v42_v31   ;;  %v2353_v31 = vld [vmem:[%s3129_s5 + $0x8] sm:$0xff] }
 0x297   :  { %587 = vmatpush.bf16.msra.mxu2 %v2353_v31 }
 0x2e0   :  { %v327_v62 = vpop.permute.xlu2 %326 }
 0x2e1   :  { %v329_v63 = vmul.f32 %v327_v62, %v305_v44 }
 0x2e3   :  { %v377_v0 = vpack.c.bf16 %v329_v63, %v329_v63  ;;  %331 = vrot.lane.b32.xlu0 %v329_v63, %s2586_s12 }
 0x2e5   :  { %383 = vrot.lane.b32.xlu1 %v377_v0, %s2586_s12 }
 0x2e8   :  { %v337_v1 = vpop.permute.xlu2 %336 }
 0x2e9   :  { %339 = vst.msk [vmem:[#allocation4] sm:$0xff] %vm35_vm0, %v337_v1 }
 0x2f0   :  { %v469_v58 = vld [vmem:[#allocation4] sm:$0xff]  ;;  %v58_v61 = vpop.permute.xlu2 %57 }
 0x2f1   :  { %vm76_vm7 = vcmp.eq.s32.totalorder %v58_v61, %v2681_v14 }
 0x2f2   :  { %v2057_v0 = vsel %vm76_vm7, 1.0, %v2583_v8 }
 0x355   :  { %v332_v3 = vpop.permute.xlu0 %331 }
 0x356   :  { %334 = vst.msk [vmem:[#allocation3] sm:$0xff] %vm35_vm0, %v332_v3 }
 0x357   :  { %v384_v5 = vpop.permute.xlu1 %383 }
 0x358   :  { %2119 = vmatmul.msk.bf16.vlgmr.msrb.gmra.mxu2 %vm35_vm0, %v384_v5 }
 0x35d   :  { %v468_v6 = vld [vmem:[#allocation3] sm:$0xff] }
 0x35e   :  { %v470_v9 = vpack.c.bf16 %v468_v6, %v468_v6 }
 0x360   :  { %2130 = vmatmul.msk.bf16.vlgmr.msrb.gmra.mxu3 %vm35_vm0, %v470_v9 }
 0x3db   :  { %v409_v11 = vpop.f32.mrf.mxu2 }
 0x3dc   :  { %v410_v12 = vadd.f32 %v409_v11, %v373_v4 }
 0x3de   :  { %v413_v13 = vadd.f32 %v2736_v10, %v410_v12 }
 0x3e0   :  { %v414_v16 = vmul.f32 %v413_v13, %v2700_v29 }
 0x3e2   :  { %v2120_v18 = vmul.f32 -1.442695, %v414_v16 }
 0x3e3   :  { %v411_v19 = vpop.f32.mrf.mxu2  ;;  %v499_v20 = vpop.f32.mrf.mxu3 }
 0x3e4   :  { %2414 = vpow2.f32 %v2120_v18  ;;  %v505_v21 = vadd.f32 %v499_v20, %v217_v17 }
 0x3e6   :  { %v506_v22 = vmul.f32 %v505_v21, %v2700_v29 }
 0x3e8   :  { %v2131_v23 = vmul.f32 -1.442695, %v506_v22  ;;  %v44_v22 = vld [vmem:[%s3124_s0 + $0x20] sm:$0xff] }
 0x3ea   :  { %v2415_v24 = vpop.eup %2414  ;;  %2416 = vpow2.f32 %v2131_v23  ;;  %v47_v23 = vld [vmem:[%s3124_s0 + $0x38] sm:$0xff] }
 0x3eb   :  { %v418_v26 = vadd.f32 1.0, %v2415_v24  ;;  %v501_v27 = vpop.f32.mrf.mxu3 }
 0x3ed   :  { %2418 = vrcp.f32 %v418_v26  ;;  %v430_v35 = vand.u32 2147483648, %v418_v26  ;;  %v428_v37 = vand.u32 2147483647, %v418_v26  ;;  %vm424_vm13 = vweird.f32 %v418_v26 }
 0x3ef   :  { %v431_v41 = vor.u32 1.1754944e-38, %v430_v35  ;;  %vm429_vm15 = vcmp.eq.f32.partialorder %v428_v37, 8.507059e+37 }
 0x3f0   :  { %v2417_v28 = vpop.eup %2416 }
 0x3f1   :  { %v510_v30 = vadd.f32 1.0, %v2417_v28  ;;  %v46_v28 = vld [vmem:[%s3124_s0 + $0x30] sm:$0xff] }
 0x3f3   :  { %v2419_v32 = vpop.eup %2418  ;;  %2420 = vrcp.f32 %v510_v30  ;;  %v522_v45 = vand.u32 2147483648, %v510_v30  ;;  %v520_v48 = vand.u32 2147483647, %v510_v30  ;;  %vm516_vm2 = vweird.f32 %v510_v30 }
 0x3f4   :  { %v420_v33 = vmul.f32 %v2419_v32, %v418_v26  ;;  %vm425_vm12 = vweird.f32 %v2419_v32 }
 0x3f5   :  { %vm426_vm14 = vmor %vm424_vm13, %vm425_vm12  ;;  %v523_v51 = vor.u32 1.1754944e-38, %v522_v45  ;;  %vm521_vm6 = vcmp.eq.f32.partialorder %v520_v48, 8.507059e+37 }
 0x3f6   :  { %v421_v34 = vsub.f32 1.0, %v420_v33  ;;  %v2355_v33 = vld [vmem:[%s3127_s3 + $0x8] sm:$0xff] }
 0x3f7   :  { %623 = vmatpush.bf16.msra.mxu3 %v2355_v33 }
 0x3f8   :  { %v422_v36 = vmul.f32 %v2419_v32, %v421_v34  ;;  %v2354_v34 = vld [vmem:[%s3127_s3] sm:$0xff] }
 0x3f9   :  { %v2421_v38 = vpop.eup %2420 }
 0x3fa   :  { %v512_v39 = vmul.f32 %v2421_v38, %v510_v30  ;;  %v423_v40 = vadd.f32 %v2419_v32, %v422_v36  ;;  %vm517_vm1 = vweird.f32 %v2421_v38  ;;  %v45_v30 = vld [vmem:[%s3124_s0 + $0x28] sm:$0xff]  ;;  %s2592_s0 = smov [#allocation9]  }
 0x3fb   :  { %vm518_vm5 = vmor %vm516_vm2, %vm517_vm1  ;;  %624 = vmatpush.bf16.msra.mxu3 %v2354_v34  ;;  %s2032_s27 = sshll.u32 %s2592_s0, 4  ;;  %s2033_s27 = int_to_ptr.vmem [resolvable:$true] %s2032_s27 }
 0x3fc   :  { %v513_v42 = vsub.f32 1.0, %v512_v39  ;;  %v427_v43 = vsel %vm426_vm14, %v2419_v32, %v423_v40  ;;  %v2352_v32 = vld [vmem:[%s3129_s5] sm:$0xff]  ;;  %v2357_v40 = vld [vmem:[%s3128_s4 + $0x8] sm:$0xff] }
 0x3fd   :  { %v432_v44 = vsel %vm429_vm15, %v431_v41, %v427_v43  ;;  %588 = vmatpush.bf16.msra.mxu2 %v2352_v32  ;;  %v2356_v41 = vld [vmem:[%s3128_s4] sm:$0xff] }
 0x3fe   :  { %v434_v46 = vmul.f32 2.0, %v432_v44  ;;  %v514_v47 = vmul.f32 %v2421_v38, %v513_v42 }
 0x400   :  { %v2121_v49 = vadd.f32 -1.0, %v434_v46  ;;  %v515_v50 = vadd.f32 %v2421_v38, %v514_v47 }
 0x401   :  { %714 = vmatpush.bf16.msrb.mxu2 %v2357_v40 }
 0x402   :  { %442 = vrot.lane.b32.xlu0 %v2121_v49, %s2585_s2  ;;  %v519_v52 = vsel %vm518_vm5, %v2421_v38, %v515_v50 }
 0x403   :  { %v524_v53 = vsel %vm521_vm6, %v523_v51, %v519_v52 }
 0x404   :  { %v526_v54 = vmul.f32 2.0, %v524_v53 }
 0x405   :  { %715 = vmatpush.bf16.msrb.mxu2 %v2356_v41 }
 0x406   :  { %v2132_v55 = vadd.f32 -1.0, %v526_v54 }
 0x408   :  { %534 = vrot.lane.b32.xlu1 %v2132_v55, %s2585_s2 }
 0x40a   :  { %60 = vperm.xlu0 %2403, %v43_v56  }
 0x410   :  { %437 = vrot.lane.b32.xlu1 %v343_v57, %s2586_s12 }
 0x412   :  { %529 = vrot.lane.b32.xlu0 %v469_v58, %s2586_s12 }
 0x474   :  { %v443_v59 = vpop.permute.xlu0 %442 }
 0x475   :  { %v445_v60 = vmul.f32 %v443_v59, %v432_v44 }
 0x477   :  { %447 = vrot.lane.b32.xlu2 %v445_v60, %s2586_s12 }
 0x47a   :  { %v535_v62 = vpop.permute.xlu1 %534 }
 0x47b   :  { %v537_v63 = vmul.f32 %v535_v62, %v524_v53 }
 0x47c   :  { %v61_v1 = vpop.permute.xlu0 %60 }
 0x47d   :  { %vm77_vm8 = vcmp.eq.s32.totalorder %v61_v1, %v2681_v14  ;;  %539 = vrot.lane.b32.xlu1 %v537_v63, %s2586_s12 }
 0x47e   :  { %v2058_v2 = vsel %vm77_vm8, 1.0, %v2583_v8 }
 0x47f   :  { %v99_v3 = vpack.c.bf16 %v2058_v2, %v2057_v0 }
 0x481   :  { %2080 = vmatmul.msk.bf16.gmra.mxu0 %vm134_vm3, %v99_v3 }
 0x482   :  { %v438_v4 = vpop.permute.xlu1 %437 }
 0x483   :  { %v440_v5 = vmul.f32 %v438_v4, %v432_v44 }
 0x484   :  { %v530_v11 = vpop.permute.xlu0 %529 }
 0x485   :  { %v532_v12 = vmul.f32 %v530_v11, %v524_v53 }
 0x4d1   :  { %v448_v6 = vpop.permute.xlu2 %447 }
 0x4d2   :  { %v450_v7 = vadd.f32 %v448_v6, %v440_v5 }
 0x4d4   :  { %2422 = vtanh.f32 %v450_v7 }
 0x4da   :  { %v2423_v9 = vpop.eup %2422 }
 0x4db   :  { %453 = vrot.lane.b32.xlu2 %v2423_v9, %s2585_s2 }
 0x4ef   :  { %v540_v13 = vpop.permute.xlu1 %539 }
 0x4f0   :  { %v542_v15 = vadd.f32 %v540_v13, %v532_v12 }
 0x4f2   :  { %2424 = vtanh.f32 %v542_v15 }
 0x4f8   :  { %v2425_v16 = vpop.eup %2424 }
 0x4f9   :  { %545 = vrot.lane.b32.xlu0 %v2425_v16, %s2585_s2 }
 0x4fe   :  { %v161_v17 = vpop.f32.mrf.mxu0 }
 0x506   :  { %v163_v18 = vpop.f32.mrf.mxu0 }
 0x507   :  { %v177_v19 = vpack.c.bf16 %v163_v18, %v161_v17 }
 0x509   :  { %2088 = vmatmul.msk.bf16.gmra.mxu1 %vm192_vm4, %v177_v19 }
 0x535   :  { %v454_v20 = vpop.permute.xlu2 %453 }
 0x536   :  { %v456_v21 = vmul.f32 %v454_v20, %v432_v44 }
 0x538   :  { %458 = vrot.lane.b32.xlu1 %v456_v21, %s2586_s12 }
 0x540   :  { %63 = vperm.xlu1 %2405, %v44_v22  }
 0x548   :  { %72 = vperm.xlu1 %2405, %v47_v23  }
 0x550   :  { %555 = vrot.lane.b32.xlu1 %v542_v15, %s2587_s13 }
 0x56b   :  { %v546_v24 = vpop.permute.xlu0 %545 }
 0x56c   :  { %v548_v26 = vmul.f32 %v546_v24, %v524_v53 }
 0x56e   :  { %v594_v27 = vpack.c.bf16 %v548_v26, %v548_v26  ;;  %550 = vrot.lane.b32.xlu0 %v548_v26, %s2586_s12 }
 0x570   :  { %600 = vrot.lane.b32.xlu2 %v594_v27, %s2586_s12 }
 0x576   :  { %69 = vperm.xlu0 %2403, %v46_v28  }
 0x578   :  { %66 = vperm.xlu2 %2404, %v45_v30  }
 0x580   :  { %463 = vrot.lane.b32.xlu2 %v450_v7, %s2587_s13 }
 0x586   :  { %v219_v6 = vpop.f32.mrf.mxu1 }
 0x587   :  { %v220_v13 = vadd.f32 %v2697_v25, %v219_v6  ;;  %v2358_v6 = vld [vmem:[%s3129_s5] sm:$0xff] }
 0x5aa   :  { %v459_v35 = vpop.permute.xlu1 %458 }
 0x5ab   :  { %461 = vst.msk [vmem:[#allocation3 + $0x8] sm:$0xff] %vm35_vm0, %v459_v35 }
 0x5ac   :  { %467 = vst.msk [vmem:[#allocation5] sm:$0xff] %vm35_vm0, %v459_v35 }
 0x5b2   :  { %v64_v36 = vpop.permute.xlu1 %63  ;;  %v559_v37 = vld [vmem:[#allocation3 + $0x8] sm:$0xff] }
 0x5b3   :  { %v561_v38 = vpack.c.bf16 %v559_v37, %v559_v37  ;;  %vm78_vm9 = vcmp.eq.s32.totalorder %v64_v36, %v2681_v14 }
 0x5b4   :  { %v2059_v44 = vsel %vm78_vm9, 1.0, %v2583_v8 }
 0x5b5   :  { %2141 = vmatmul.msk.bf16.vlgmr.msra.gmra.mxu2 %vm35_vm0, %v561_v38 }
 0x5ba   :  { %v73_v39 = vpop.permute.xlu1 %72 }
 0x5bb   :  { %vm81_vm11 = vcmp.eq.s32.totalorder %v73_v39, %v2681_v14 }
 0x5bc   :  { %v2062_v50 = vsel %vm81_vm11, 1.0, %v2583_v8 }
 0x5c2   :  { %v556_v42 = vpop.permute.xlu1 %555 }
 0x5c3   :  { %558 = vst.msk [vmem:[#allocation4] sm:$0xff] %vm35_vm0, %v556_v42 }
 0x5ca   :  { %v601_v43 = vpop.permute.xlu2 %600 }
 0x5cb   :  { %2150 = vmatmul.msk.bf16.vlgmr.msra.gmra.mxu3 %vm35_vm0, %v601_v43 }
 0x5d2   :  { %v67_v45 = vpop.permute.xlu2 %66 }
 0x5d3   :  { %vm79_vm10 = vcmp.eq.s32.totalorder %v67_v45, %v2681_v14  ;;  %v687_v45 = vld [vmem:[#allocation4] sm:$0xff] }
 0x5d4   :  { %v2060_v46 = vsel %vm79_vm10, 1.0, %v2583_v8 }
 0x5d5   :  { %v100_v47 = vpack.c.bf16 %v2060_v46, %v2059_v44 }
 0x5d7   :  { %2081 = vmatmul.msk.bf16.gmra.mxu0 %vm134_vm3, %v100_v47 }
 0x5da   :  { %v464_v48 = vpop.permute.xlu2 %463 }
 0x5db   :  { %466 = vst.msk [vmem:[#allocation4 + $0x8] sm:$0xff] %vm35_vm0, %v464_v48 }
 0x5e0   :  { %v551_v49 = vpop.permute.xlu0 %550 }
 0x5e1   :  { %553 = vst.msk [vmem:[#allocation3] sm:$0xff] %vm35_vm0, %v551_v49 }
 0x5e2   :  { %v560_v32 = vld [vmem:[#allocation4 + $0x8] sm:$0xff] }
 0x5e8   :  { %v70_v51 = vpop.permute.xlu0 %69  ;;  %v686_v52 = vld [vmem:[#allocation3] sm:$0xff] }
 0x5e9   :  { %vm80_vm12 = vcmp.eq.s32.totalorder %v70_v51, %v2681_v14  ;;  %v688_v53 = vpack.c.bf16 %v686_v52, %v686_v52 }
 0x5ea   :  { %v2061_v54 = vsel %vm80_vm12, 1.0, %v2583_v8 }
 0x5eb   :  { %v101_v55 = vpack.c.bf16 %v2062_v50, %v2061_v54  ;;  %2161 = vmatmul.msk.bf16.vlgmr.msrb.gmra.mxu2 %vm35_vm0, %v688_v53 }
 0x5ed   :  { %2082 = vmatmul.msk.bf16.gmra.mxu0 %vm134_vm3, %v101_v55 }
 0x638   :  { %v590_v56 = vpop.f32.mrf.mxu2 }
 0x640   :  { %v592_v57 = vpop.f32.mrf.mxu2 }
 0x64e   :  { %v626_v58 = vpop.f32.mrf.mxu3 }
 0x64f   :  { %v627_v59 = vadd.f32 %v626_v58, %v590_v56 }
 0x651   :  { %v630_v60 = vadd.f32 %v2736_v10, %v627_v59 }
 0x653   :  { %v631_v61 = vmul.f32 %v630_v60, %v2700_v29  ;;  %v2361_v60 = vld [vmem:[%s3127_s3 + $0x8] sm:$0xff] }
 0x654   :  { %v166_v62 = vpop.f32.mrf.mxu0  ;;  %841 = vmatpush.bf16.msrb.mxu1 %v2361_v60 }
 0x655   :  { %v2151_v63 = vmul.f32 -1.442695, %v631_v61  ;;  %v2360_v61 = vld [vmem:[%s3127_s3] sm:$0xff] }
 0x656   :  { %v628_v0 = vpop.f32.mrf.mxu3 }
 0x657   :  { %2426 = vpow2.f32 %v2151_v63 }
 0x658   :  { %842 = vmatpush.bf16.msrb.mxu1 %v2360_v61 }
 0x65c   :  { %v168_v14 = vpop.f32.mrf.mxu0 }
 0x65d   :  { %v2427_v1 = vpop.eup %2426  ;;  %v178_v8 = vpack.c.bf16 %v168_v14, %v166_v62 }
 0x65e   :  { %v635_v2 = vadd.f32 1.0, %v2427_v1 }
 0x65f   :  { %2089 = vmatmul.msk.bf16.gmra.mxu1 %vm192_vm4, %v178_v8  ;;  %v2363_v8 = vld [vmem:[%s3128_s4 + $0x8] sm:$0xff] }
 0x660   :  { %2428 = vrcp.f32 %v635_v2  ;;  %v647_v9 = vand.u32 2147483648, %v635_v2  ;;  %v645_v12 = vand.u32 2147483647, %v635_v2  ;;  %vm641_vm13 = vweird.f32 %v635_v2  ;;  %932 = vmatpush.bf16.msra.mxu2 %v2363_v8 }
 0x662   :  { %v648_v17 = vor.u32 1.1754944e-38, %v647_v9  ;;  %vm646_vm15 = vcmp.eq.f32.partialorder %v645_v12, 8.507059e+37 }
 0x666   :  { %v2429_v3 = vpop.eup %2428 }
 0x667   :  { %v637_v4 = vmul.f32 %v2429_v3, %v635_v2  ;;  %vm642_vm3 = vweird.f32 %v2429_v3  ;;  %v2362_v2 = vld [vmem:[%s3128_s4] sm:$0xff] }
 0x668   :  { %vm643_vm14 = vmor %vm641_vm13, %vm642_vm3  ;;  %933 = vmatpush.bf16.msra.mxu2 %v2362_v2 }
 0x669   :  { %v638_v5 = vsub.f32 1.0, %v637_v4 }
 0x66a   :  { %v171_v7 = vpop.f32.mrf.mxu0 }
 0x66b   :  { %v639_v11 = vmul.f32 %v2429_v3, %v638_v5  ;;  %v2359_v5 = vld [vmem:[%s3129_s5 + $0x8] sm:$0xff] }
 0x66c   :  { %805 = vmatpush.bf16.msrb.mxu3 %v2359_v5 }
 0x66d   :  { %v640_v15 = vadd.f32 %v2429_v3, %v639_v11 }
 0x66e   :  { %v717_v16 = vpop.f32.mrf.mxu2 }
 0x66f   :  { %v723_v18 = vadd.f32 %v717_v16, %v220_v13  ;;  %v644_v19 = vsel %vm643_vm14, %v2429_v3, %v640_v15 }
 0x670   :  { %v2819_v20 = vsel %vm646_vm15, %v648_v17, %v644_v19  ;;  %806 = vmatpush.bf16.msrb.mxu3 %v2358_v6  ;;  %v221_v17 = vpop.f32.mrf.mxu1 }
 0x671   :  { %v724_v21 = vmul.f32 %v723_v18, %v2700_v29  ;;  %v651_v22 = vmul.f32 2.0, %v2819_v20 }
 0x672   :  { %v173_v23 = vpop.f32.mrf.mxu0 }
 0x673   :  { %v2162_v24 = vmul.f32 -1.442695, %v724_v21  ;;  %v179_v26 = vpack.c.bf16 %v173_v23, %v171_v7  ;;  %v2152_v27 = vadd.f32 -1.0, %v651_v22 }
 0x675   :  { %2430 = vpow2.f32 %v2162_v24  ;;  %659 = vrot.lane.b32.xlu0 %v2152_v27, %s2585_s2  ;;  %2090 = vmatmul.msk.bf16.gmra.mxu1 %vm192_vm4, %v179_v26  ;;  %v222_v24 = vadd.f32 %v2697_v25, %v221_v17 }
 0x676   :  { %v719_v28 = vpop.f32.mrf.mxu2 }
 0x67b   :  { %v2431_v30 = vpop.eup %2430 }
 0x67c   :  { %v728_v31 = vadd.f32 1.0, %v2431_v30 }
 0x67d   :  { %654 = vrot.lane.b32.xlu0 %v560_v32, %s2586_s12 }
 0x67e   :  { %2432 = vrcp.f32 %v728_v31  ;;  %v740_v36 = vand.u32 2147483648, %v728_v31  ;;  %v738_v38 = vand.u32 2147483647, %v728_v31  ;;  %vm734_vm2 = vweird.f32 %v728_v31 }
 0x680   :  { %v741_v40 = vor.u32 1.1754944e-38, %v740_v36  ;;  %vm739_vm4 = vcmp.eq.f32.partialorder %v738_v38, 8.507059e+37 }
 0x684   :  { %v2433_v33 = vpop.eup %2432 }
 0x685   :  { %v730_v34 = vmul.f32 %v2433_v33, %v728_v31  ;;  %vm735_vm1 = vweird.f32 %v2433_v33 }
 0x686   :  { %vm736_vm5 = vmor %vm734_vm2, %vm735_vm1 }
 0x687   :  { %v731_v35 = vsub.f32 1.0, %v730_v34 }
 0x689   :  { %v732_v37 = vmul.f32 %v2433_v33, %v731_v35 }
 0x68b   :  { %v733_v39 = vadd.f32 %v2433_v33, %v732_v37 }
 0x68d   :  { %v737_v41 = vsel %vm736_vm5, %v2433_v33, %v733_v39 }
 0x68e   :  { %v742_v42 = vsel %vm739_vm4, %v741_v40, %v737_v41 }
 0x68f   :  { %v744_v43 = vmul.f32 2.0, %v742_v42 }
 0x691   :  { %v2163_v44 = vadd.f32 -1.0, %v744_v43 }
 0x693   :  { %752 = vrot.lane.b32.xlu2 %v2163_v44, %s2585_s2 }
 0x69b   :  { %747 = vrot.lane.b32.xlu2 %v687_v45, %s2586_s12 }
 0x6dc   :  { %v2866_v18 = vpop.f32.mrf.mxu1 }
 0x6e4   :  { %v2868_v19 = vpop.f32.mrf.mxu1 }
 0x6e7   :  { %v660_v46 = vpop.permute.xlu0 %659 }
 0x6e8   :  { %v662_v47 = vmul.f32 %v660_v46, %v2819_v20 }
 0x6ea   :  { %664 = vrot.lane.b32.xlu1 %v662_v47, %s2586_s12 }
 0x6ed   :  { %v753_v48 = vpop.permute.xlu2 %752 }
 0x6ee   :  { %v755_v49 = vmul.f32 %v753_v48, %v742_v42 }
 0x6ef   :  { %v655_v50 = vpop.permute.xlu0 %654 }
 0x6f0   :  { %757 = vrot.lane.b32.xlu0 %v755_v49, %s2586_s12  ;;  %v657_v51 = vmul.f32 %v655_v50, %v2819_v20 }
 0x6f5   :  { %v748_v54 = vpop.permute.xlu2 %747 }
 0x6f6   :  { %v750_v55 = vmul.f32 %v748_v54, %v742_v42 }
 0x75c   :  { %v665_v52 = vpop.permute.xlu1 %664 }
 0x75d   :  { %v667_v53 = vadd.f32 %v665_v52, %v657_v51 }
 0x75f   :  { %2434 = vtanh.f32 %v667_v53 }
 0x762   :  { %v758_v56 = vpop.permute.xlu0 %757 }
 0x763   :  { %v760_v57 = vadd.f32 %v758_v56, %v750_v55 }
 0x765   :  { %v2435_v58 = vpop.eup %2434  ;;  %2436 = vtanh.f32 %v760_v57 }
 0x766   :  { %670 = vrot.lane.b32.xlu1 %v2435_v58, %s2585_s2 }
 0x76b   :  { %v2437_v59 = vpop.eup %2436 }
 0x76c   :  { %763 = vrot.lane.b32.xlu2 %v2437_v59, %s2585_s2 }
 0x7c6   :  { %v764_v62 = vpop.permute.xlu2 %763 }
 0x7c7   :  { %v766_v63 = vmul.f32 %v764_v62, %v742_v42 }
 0x7c9   :  { %v812_v0 = vpack.c.bf16 %v766_v63, %v766_v63  ;;  %768 = vrot.lane.b32.xlu1 %v766_v63, %s2586_s12 }
 0x7cb   :  { %818 = vrot.lane.b32.xlu2 %v812_v0, %s2586_s12 }
 0x7d3   :  { %773 = vrot.lane.b32.xlu2 %v760_v57, %s2587_s13 }
 0x7d8   :  { %v671_v14 = vpop.permute.xlu1 %670 }
 0x7d9   :  { %v673_v1 = vmul.f32 %v671_v14, %v2819_v20  ;;  %v2870_v20 = vpop.f32.mrf.mxu1 }
 0x7db   :  { %675 = vrot.lane.b32.xlu0 %v673_v1, %s2586_s12 }
 0x7e1   :  { %v2872_v21 = vpop.f32.mrf.mxu1 }
 0x7e3   :  { %680 = vrot.lane.b32.xlu0 %v667_v53, %s2587_s13 }
 0x825   :  { %v819_v3 = vpop.permute.xlu2 %818 }
 0x826   :  { %2181 = vmatmul.msk.bf16.vlgmr.msrb.gmra.mxu1 %vm35_vm0, %v819_v3 }
 0x82d   :  { %v774_v4 = vpop.permute.xlu2 %773 }
 0x82e   :  { %776 = vst.msk [vmem:[#allocation4] sm:$0xff] %vm35_vm0, %v774_v4 }
 0x835   :  { %v905_v56 = vld [vmem:[#allocation4] sm:$0xff] }
 0x83b   :  { %v769_v7 = vpop.permute.xlu1 %768 }
 0x83c   :  { %771 = vst.msk [vmem:[#allocation3] sm:$0xff] %vm35_vm0, %v769_v7 }
 0x843   :  { %v904_v9 = vld [vmem:[#allocation3] sm:$0xff] }
 0x844   :  { %v906_v11 = vpack.c.bf16 %v904_v9, %v904_v9 }
 0x846   :  { %2192 = vmatmul.msk.bf16.vlgmr.msra.gmra.mxu2 %vm35_vm0, %v906_v11 }
 0x84d   :  { %v676_v12 = vpop.permute.xlu0 %675 }
 0x84e   :  { %678 = vst.msk [vmem:[#allocation3 + $0x8] sm:$0xff] %vm35_vm0, %v676_v12 }
 0x84f   :  { %685 = vst.msk [vmem:[#allocation5 + $0x8] sm:$0xff] %vm35_vm0, %v676_v12 }
 0x855   :  { %v681_v13 = vpop.permute.xlu0 %680  ;;  %v777_v15 = vld [vmem:[#allocation3 + $0x8] sm:$0xff] }
 0x856   :  { %683 = vst.msk [vmem:[#allocation4 + $0x8] sm:$0xff] %vm35_vm0, %v681_v13  ;;  %v779_v16 = vpack.c.bf16 %v777_v15, %v777_v15 }
 0x858   :  { %2172 = vmatmul.msk.bf16.vlgmr.msrb.gmra.mxu3 %vm35_vm0, %v779_v16 }
 0x85d   :  { %v778_v8 = vld [vmem:[#allocation4 + $0x8] sm:$0xff] }
 0x8a3   :  { %v844_v22 = vpop.f32.mrf.mxu1 }
 0x8ab   :  { %v846_v23 = vpop.f32.mrf.mxu1 }
 0x8c9   :  { %v935_v26 = vpop.f32.mrf.mxu2 }
 0x8ca   :  { %v941_v27 = vadd.f32 %v935_v26, %v222_v24  ;;  %v2367_v26 = vld [vmem:[%s3127_s3 + $0x8] sm:$0xff] }
 0x8cb   :  { %1059 = vmatpush.bf16.msrb.mxu0 %v2367_v26 }
 0x8cc   :  { %v942_v28 = vmul.f32 %v941_v27, %v2700_v29  ;;  %v2366_v27 = vld [vmem:[%s3127_s3] sm:$0xff] }
 0x8ce   :  { %v2193_v30 = vmul.f32 -1.442695, %v942_v28 }
 0x8cf   :  { %1060 = vmatpush.bf16.msrb.mxu0 %v2366_v27 }
 0x8d0   :  { %2438 = vpow2.f32 %v2193_v30 }
 0x8d1   :  { %v937_v31 = vpop.f32.mrf.mxu2 }
 0x8d6   :  { %v2439_v32 = vpop.eup %2438 }
 0x8d7   :  { %v946_v33 = vadd.f32 1.0, %v2439_v32  ;;  %v2365_v32 = vld [vmem:[%s3129_s5 + $0x8] sm:$0xff] }
 0x8d8   :  { %1023 = vmatpush.bf16.msra.mxu3 %v2365_v32 }
 0x8d9   :  { %2440 = vrcp.f32 %v946_v33  ;;  %v958_v43 = vand.u32 2147483648, %v946_v33  ;;  %v956_v45 = vand.u32 2147483647, %v946_v33  ;;  %vm952_vm7 = vweird.f32 %v946_v33 }
 0x8db   :  { %v808_v34 = vpop.f32.mrf.mxu3  ;;  %v959_v47 = vor.u32 1.1754944e-38, %v958_v43  ;;  %vm957_vm9 = vcmp.eq.f32.partialorder %v956_v45, 8.507059e+37 }
 0x8dc   :  { %v845_v35 = vadd.f32 %v844_v22, %v808_v34  ;;  %v2364_v34 = vld [vmem:[%s3129_s5] sm:$0xff] }
 0x8dd   :  { %1024 = vmatpush.bf16.msra.mxu3 %v2364_v34 }
 0x8de   :  { %v848_v36 = vadd.f32 %v2736_v10, %v845_v35  ;;  %v2368_v35 = vld [vmem:[%s3128_s4] sm:$0xff] }
 0x8df   :  { %v2441_v37 = vpop.eup %2440 }
 0x8e0   :  { %v948_v38 = vmul.f32 %v2441_v37, %v946_v33  ;;  %v849_v39 = vmul.f32 %v848_v36, %v2700_v29  ;;  %vm953_vm6 = vweird.f32 %v2441_v37  ;;  %v2369_v33 = vld [vmem:[%s3128_s4 + $0x8] sm:$0xff] }
 0x8e1   :  { %vm954_vm8 = vmor %vm952_vm7, %vm953_vm6  ;;  %1150 = vmatpush.bf16.msra.mxu1 %v2369_v33 }
 0x8e2   :  { %v949_v40 = vsub.f32 1.0, %v948_v38  ;;  %v2182_v41 = vmul.f32 -1.442695, %v849_v39 }
 0x8e3   :  { %v810_v42 = vpop.f32.mrf.mxu3 }
 0x8e4   :  { %2442 = vpow2.f32 %v2182_v41  ;;  %v950_v44 = vmul.f32 %v2441_v37, %v949_v40 }
 0x8e5   :  { %1151 = vmatpush.bf16.msra.mxu1 %v2368_v35 }
 0x8e6   :  { %v951_v46 = vadd.f32 %v2441_v37, %v950_v44 }
 0x8e8   :  { %v955_v48 = vsel %vm954_vm8, %v2441_v37, %v951_v46  ;;  %v225_v46 = vadd.f32 %v2697_v25, %v2866_v18 }
 0x8e9   :  { %v960_v49 = vsel %vm957_vm9, %v959_v47, %v955_v48 }
 0x8ea   :  { %v2443_v50 = vpop.eup %2442  ;;  %v962_v51 = vmul.f32 2.0, %v960_v49 }
 0x8eb   :  { %v853_v52 = vadd.f32 1.0, %v2443_v50 }
 0x8ec   :  { %v2194_v53 = vadd.f32 -1.0, %v962_v51 }
 0x8ed   :  { %2444 = vrcp.f32 %v853_v52  ;;  %v865_v58 = vand.u32 2147483648, %v853_v52  ;;  %v863_v60 = vand.u32 2147483647, %v853_v52  ;;  %vm859_vm11 = vweird.f32 %v853_v52 }
 0x8ee   :  { %970 = vrot.lane.b32.xlu0 %v2194_v53, %s2585_s2 }
 0x8ef   :  { %v866_v62 = vor.u32 1.1754944e-38, %v865_v58  ;;  %vm864_vm3 = vcmp.eq.f32.partialorder %v863_v60, 8.507059e+37 }
 0x8f3   :  { %v2445_v54 = vpop.eup %2444 }
 0x8f4   :  { %v855_v55 = vmul.f32 %v2445_v54, %v853_v52  ;;  %vm860_vm10 = vweird.f32 %v2445_v54 }
 0x8f5   :  { %vm861_vm12 = vmor %vm859_vm11, %vm860_vm10 }
 0x8f6   :  { %965 = vrot.lane.b32.xlu0 %v905_v56, %s2586_s12  ;;  %v856_v57 = vsub.f32 1.0, %v855_v55 }
 0x8f8   :  { %v857_v59 = vmul.f32 %v2445_v54, %v856_v57 }
 0x8fa   :  { %v858_v61 = vadd.f32 %v2445_v54, %v857_v59 }
 0x8fc   :  { %v862_v63 = vsel %vm861_vm12, %v2445_v54, %v858_v61 }
 0x8fd   :  { %v867_v0 = vsel %vm864_vm3, %v866_v62, %v862_v63 }
 0x8fe   :  { %v869_v14 = vmul.f32 2.0, %v867_v0 }
 0x900   :  { %v2183_v1 = vadd.f32 -1.0, %v869_v14 }
 0x902   :  { %877 = vrot.lane.b32.xlu1 %v2183_v1, %s2585_s2 }
 0x90a   :  { %872 = vrot.lane.b32.xlu1 %v778_v8, %s2586_s12 }
 0x960   :  { %v971_v2 = vpop.permute.xlu0 %970 }
 0x961   :  { %v973_v3 = vmul.f32 %v971_v2, %v960_v49 }
 0x963   :  { %975 = vrot.lane.b32.xlu1 %v973_v3, %s2586_s12 }
 0x968   :  { %v966_v9 = vpop.permute.xlu0 %965 }
 0x969   :  { %v968_v13 = vmul.f32 %v966_v9, %v960_v49 }
 0x974   :  { %v878_v4 = vpop.permute.xlu1 %877 }
 0x975   :  { %v880_v5 = vmul.f32 %v878_v4, %v867_v0 }
 0x977   :  { %882 = vrot.lane.b32.xlu2 %v880_v5, %s2586_s12 }
 0x97c   :  { %v873_v6 = vpop.permute.xlu1 %872 }
 0x97d   :  { %v875_v7 = vmul.f32 %v873_v6, %v867_v0 }
 0x9d1   :  { %v883_v11 = vpop.permute.xlu2 %882 }
 0x9d2   :  { %v885_v12 = vadd.f32 %v883_v11, %v875_v7 }
 0x9d4   :  { %2446 = vtanh.f32 %v885_v12 }
 0x9d5   :  { %v976_v15 = vpop.permute.xlu1 %975 }
 0x9d6   :  { %v978_v16 = vadd.f32 %v976_v15, %v968_v13 }
 0x9d8   :  { %2448 = vtanh.f32 %v978_v16 }
 0x9da   :  { %v2447_v17 = vpop.eup %2446 }
 0x9db   :  { %888 = vrot.lane.b32.xlu2 %v2447_v17, %s2585_s2 }
 0x9de   :  { %v2449_v22 = vpop.eup %2448 }
 0x9df   :  { %981 = vrot.lane.b32.xlu0 %v2449_v22, %s2585_s2 }
 0xa35   :  { %v889_v23 = vpop.permute.xlu2 %888 }
 0xa36   :  { %v891_v24 = vmul.f32 %v889_v23, %v867_v0 }
 0xa38   :  { %893 = vrot.lane.b32.xlu1 %v891_v24, %s2586_s12 }
 0xa40   :  { %898 = vrot.lane.b32.xlu1 %v885_v12, %s2587_s13 }
 0xa51   :  { %v982_v28 = vpop.permute.xlu0 %981 }
 0xa52   :  { %v984_v30 = vmul.f32 %v982_v28, %v960_v49 }
 0xa54   :  { %v1030_v31 = vpack.c.bf16 %v984_v30, %v984_v30  ;;  %986 = vrot.lane.b32.xlu2 %v984_v30, %s2586_s12 }
 0xa56   :  { %1036 = vrot.lane.b32.xlu0 %v1030_v31, %s2586_s12 }
 0xa5c   :  { %991 = vrot.lane.b32.xlu2 %v978_v16, %s2587_s13 }
 0xaaa   :  { %v894_v36 = vpop.permute.xlu1 %893 }
 0xaab   :  { %896 = vst.msk [vmem:[#allocation3 + $0x8] sm:$0xff] %vm35_vm0, %v894_v36 }
 0xaac   :  { %903 = vst.msk [vmem:[#allocation5 + $0x10] sm:$0xff] %vm35_vm0, %v894_v36 }
 0xaae   :  { %v987_v37 = vpop.permute.xlu2 %986 }
 0xaaf   :  { %989 = vst.msk [vmem:[#allocation3] sm:$0xff] %vm35_vm0, %v987_v37 }
 0xab2   :  { %v899_v38 = vpop.permute.xlu1 %898  ;;  %v995_v39 = vld [vmem:[#allocation3 + $0x8] sm:$0xff] }
 0xab3   :  { %901 = vst.msk [vmem:[#allocation4 + $0x8] sm:$0xff] %vm35_vm0, %v899_v38  ;;  %v997_v40 = vpack.c.bf16 %v995_v39, %v995_v39 }
 0xab5   :  { %2203 = vmatmul.msk.bf16.vlgmr.msra.gmra.mxu3 %vm35_vm0, %v997_v40 }
 0xab6   :  { %v992_v41 = vpop.permute.xlu2 %991  ;;  %v1122_v42 = vld [vmem:[#allocation3] sm:$0xff] }
 0xab7   :  { %994 = vst.msk [vmem:[#allocation4] sm:$0xff] %vm35_vm0, %v992_v41  ;;  %v1124_v43 = vpack.c.bf16 %v1122_v42, %v1122_v42 }
 0xab9   :  { %2223 = vmatmul.msk.bf16.vlgmr.msra.gmra.mxu1 %vm35_vm0, %v1124_v43 }
 0xaba   :  { %v996_v44 = vld [vmem:[#allocation4 + $0x8] sm:$0xff] }
 0xabb   :  { %1090 = vrot.lane.b32.xlu2 %v996_v44, %s2586_s12 }
 0xabe   :  { %v1123_v12 = vld [vmem:[#allocation4] sm:$0xff] }
 0xac8   :  { %v1037_v45 = vpop.permute.xlu0 %1036 }
 0xac9   :  { %2212 = vmatmul.msk.bf16.vlgmr.msrb.gmra.mxu0 %vm35_vm0, %v1037_v45 }
 0xb15   :  { %v1091_v33 = vpop.permute.xlu2 %1090 }
 0xb36   :  { %v1153_v47 = vpop.f32.mrf.mxu1 }
 0xb37   :  { %v1159_v48 = vadd.f32 %v1153_v47, %v225_v46  ;;  %v2373_v46 = vld [vmem:[%s3127_s3 + $0x8] sm:$0xff]  ;;  %v2372_v47 = vld [vmem:[%s3127_s3] sm:$0xff] }
 0xb38   :  { %v1026_v49 = vpop.f32.mrf.mxu3  ;;  %1277 = vmatpush.bf16.msrb.mxu3 %v2373_v46 }
 0xb39   :  { %v1160_v50 = vmul.f32 %v1159_v48, %v2700_v29 }
 0xb3b   :  { %v2224_v51 = vmul.f32 -1.442695, %v1160_v50  ;;  %v2375_v50 = vld [vmem:[%s3128_s4 + $0x8] sm:$0xff] }
 0xb3c   :  { %1278 = vmatpush.bf16.msrb.mxu3 %v2372_v47  ;;  %1368 = vmatpush.bf16.msra.mxu0 %v2375_v50 }
 0xb3d   :  { %2450 = vpow2.f32 %v2224_v51  ;;  %v2374_v51 = vld [vmem:[%s3128_s4] sm:$0xff] }
 0xb3e   :  { %v1155_v52 = vpop.f32.mrf.mxu1 }
 0xb3f   :  { %v2371_v52 = vld [vmem:[%s3129_s5 + $0x8] sm:$0xff] }
 0xb40   :  { %v1028_v53 = vpop.f32.mrf.mxu3  ;;  %1369 = vmatpush.bf16.msra.mxu0 %v2374_v51  ;;  %1241 = vmatpush.bf16.msrb.mxu2 %v2371_v52 }
 0xb41   :  { %v2370_v53 = vld [vmem:[%s3129_s5] sm:$0xff] }
 0xb43   :  { %v2451_v54 = vpop.eup %2450 }
 0xb44   :  { %v1164_v55 = vadd.f32 1.0, %v2451_v54  ;;  %1242 = vmatpush.bf16.msrb.mxu2 %v2370_v53 }
 0xb46   :  { %2452 = vrcp.f32 %v1164_v55  ;;  %v1062_v56 = vpop.f32.mrf.mxu0  ;;  %v1176_v63 = vand.u32 2147483648, %v1164_v55  ;;  %v1174_v14 = vand.u32 2147483647, %v1164_v55  ;;  %vm1170_vm14 = vweird.f32 %v1164_v55 }
 0xb47   :  { %v1063_v57 = vadd.f32 %v1062_v56, %v1026_v49 }
 0xb48   :  { %v1177_v8 = vor.u32 1.1754944e-38, %v1176_v63  ;;  %vm1175_vm1 = vcmp.eq.f32.partialorder %v1174_v14, 8.507059e+37  ;;  %v2965_v63 = vld [vmem:[%s3130_s6] ss:$0 sm:$0xff] }
 0xb49   :  { %v1066_v58 = vadd.f32 %v2736_v10, %v1063_v57 }
 0xb4b   :  { %v1067_v59 = vmul.f32 %v1066_v58, %v2700_v29 }
 0xb4c   :  { %v2453_v60 = vpop.eup %2452 }
 0xb4d   :  { %v1166_v25 = vmul.f32 %v2453_v60, %v1164_v55  ;;  %v2213_v18 = vmul.f32 -1.442695, %v1067_v59  ;;  %vm1171_vm13 = vweird.f32 %v2453_v60 }
 0xb4e   :  { %v1064_v61 = vpop.f32.mrf.mxu0  ;;  %vm1172_vm15 = vmor %vm1170_vm14, %vm1171_vm13 }
 0xb4f   :  { %v1167_v62 = vsub.f32 1.0, %v1166_v25  ;;  %2454 = vpow2.f32 %v2213_v18 }
 0xb51   :  { %v1168_v0 = vmul.f32 %v2453_v60, %v1167_v62 }
 0xb53   :  { %v1169_v1 = vadd.f32 %v2453_v60, %v1168_v0  ;;  %v227_v0 = vadd.f32 %v2965_v63, %v2868_v19  ;;  %v2973_v19 = vld [vmem:[%s3131_s7] ss:$0 sm:$0xff] }
 0xb55   :  { %v2455_v2 = vpop.eup %2454  ;;  %v1173_v3 = vsel %vm1172_vm15, %v2453_v60, %v1169_v1 }
 0xb56   :  { %v1071_v10 = vadd.f32 1.0, %v2455_v2  ;;  %v1178_v4 = vsel %vm1175_vm1, %v1177_v8, %v1173_v3 }
 0xb57   :  { %v1180_v5 = vmul.f32 2.0, %v1178_v4 }
 0xb58   :  { %2456 = vrcp.f32 %v1071_v10  ;;  %v1083_v13 = vand.u32 2147483648, %v1071_v10  ;;  %v1081_v16 = vand.u32 2147483647, %v1071_v10  ;;  %vm1077_vm5 = vweird.f32 %v1071_v10 }
 0xb59   :  { %v2225_v6 = vadd.f32 -1.0, %v1180_v5 }
 0xb5a   :  { %v1084_v22 = vor.u32 1.1754944e-38, %v1083_v13  ;;  %vm1082_vm6 = vcmp.eq.f32.partialorder %v1081_v16, 8.507059e+37 }
 0xb5b   :  { %1188 = vrot.lane.b32.xlu1 %v2225_v6, %s2585_s2 }
 0xb5e   :  { %v2457_v7 = vpop.eup %2456 }
 0xb5f   :  { %v1073_v9 = vmul.f32 %v2457_v7, %v1071_v10  ;;  %vm1078_vm2 = vweird.f32 %v2457_v7 }
 0xb60   :  { %vm1079_vm4 = vmor %vm1077_vm5, %vm1078_vm2 }
 0xb61   :  { %v1074_v11 = vsub.f32 1.0, %v1073_v9 }
 0xb63   :  { %1183 = vrot.lane.b32.xlu1 %v1123_v12, %s2586_s12  ;;  %v1075_v15 = vmul.f32 %v2457_v7, %v1074_v11 }
 0xb65   :  { %v1076_v17 = vadd.f32 %v2457_v7, %v1075_v15 }
 0xb67   :  { %v1080_v23 = vsel %vm1079_vm4, %v2457_v7, %v1076_v17 }
 0xb68   :  { %v1085_v24 = vsel %vm1082_vm6, %v1084_v22, %v1080_v23 }
 0xb69   :  { %v1087_v26 = vmul.f32 2.0, %v1085_v24  ;;  %v1093_v39 = vmul.f32 %v1091_v33, %v1085_v24 }
 0xb6b   :  { %v2214_v27 = vadd.f32 -1.0, %v1087_v26 }
 0xb6d   :  { %1095 = vrot.lane.b32.xlu0 %v2214_v27, %s2585_s2 }
 0xbcd   :  { %v1189_v28 = vpop.permute.xlu1 %1188 }
 0xbce   :  { %v1191_v30 = vmul.f32 %v1189_v28, %v1178_v4 }
 0xbd0   :  { %1193 = vrot.lane.b32.xlu2 %v1191_v30, %s2586_s12 }
 0xbd5   :  { %v1184_v34 = vpop.permute.xlu1 %1183 }
 0xbd6   :  { %v1186_v35 = vmul.f32 %v1184_v34, %v1178_v4 }
 0xbdf   :  { %v1096_v31 = vpop.permute.xlu0 %1095 }
 0xbe0   :  { %v1098_v32 = vmul.f32 %v1096_v31, %v1085_v24 }
 0xbe2   :  { %1100 = vrot.lane.b32.xlu0 %v1098_v32, %s2586_s12 }
 0xc2a   :  { %v1194_v36 = vpop.permute.xlu2 %1193 }
 0xc2b   :  { %v1196_v37 = vadd.f32 %v1194_v36, %v1186_v35 }
 0xc2d   :  { %2458 = vtanh.f32 %v1196_v37 }
 0xc33   :  { %v2459_v38 = vpop.eup %2458 }
 0xc34   :  { %1199 = vrot.lane.b32.xlu1 %v2459_v38, %s2585_s2 }
 0xc54   :  { %v1101_v40 = vpop.permute.xlu0 %1100 }
 0xc55   :  { %v1103_v41 = vadd.f32 %v1101_v40, %v1093_v39 }
 0xc57   :  { %2460 = vtanh.f32 %v1103_v41 }
 0xc5d   :  { %v2461_v42 = vpop.eup %2460 }
 0xc5e   :  { %1106 = vrot.lane.b32.xlu0 %v2461_v42, %s2585_s2 }
 0xca6   :  { %v1200_v43 = vpop.permute.xlu1 %1199 }
 0xca7   :  { %v1202_v44 = vmul.f32 %v1200_v43, %v1178_v4 }
 0xca9   :  { %v1248_v45 = vpack.c.bf16 %v1202_v44, %v1202_v44  ;;  %1204 = vrot.lane.b32.xlu0 %v1202_v44, %s2586_s12 }
 0xcab   :  { %1254 = vrot.lane.b32.xlu1 %v1248_v45, %s2586_s12 }
 0xcb1   :  { %1209 = vrot.lane.b32.xlu0 %v1196_v37, %s2587_s13 }
 0xcd0   :  { %v1107_v48 = vpop.permute.xlu0 %1106 }
 0xcd1   :  { %v1109_v49 = vmul.f32 %v1107_v48, %v1085_v24 }
 0xcd3   :  { %1111 = vrot.lane.b32.xlu2 %v1109_v49, %s2586_s12 }
 0xcdb   :  { %1116 = vrot.lane.b32.xlu2 %v1103_v41, %s2587_s13 }
 0xd1b   :  { %v1205_v54 = vpop.permute.xlu0 %1204 }
 0xd1c   :  { %1207 = vst.msk [vmem:[#allocation3] sm:$0xff] %vm35_vm0, %v1205_v54 }
 0xd1d   :  { %v1255_v55 = vpop.permute.xlu1 %1254 }
 0xd1e   :  { %2243 = vmatmul.msk.bf16.vlgmr.msrb.gmra.mxu3 %vm35_vm0, %v1255_v55 }
 0xd23   :  { %v1210_v56 = vpop.permute.xlu0 %1209  ;;  %v1340_v57 = vld [vmem:[#allocation3] sm:$0xff] }
 0xd24   :  { %1212 = vst.msk [vmem:[#allocation4] sm:$0xff] %vm35_vm0, %v1210_v56  ;;  %v1342_v58 = vpack.c.bf16 %v1340_v57, %v1340_v57 }
 0xd26   :  { %2254 = vmatmul.msk.bf16.vlgmr.msra.gmra.mxu0 %vm35_vm0, %v1342_v58 }
 0xd2b   :  { %v1341_v35 = vld [vmem:[#allocation4] sm:$0xff] }
 0xd2d   :  { %v1112_v59 = vpop.permute.xlu2 %1111 }
 0xd2e   :  { %1114 = vst.msk [vmem:[#allocation3 + $0x8] sm:$0xff] %vm35_vm0, %v1112_v59 }
 0xd2f   :  { %1121 = vst.msk [vmem:[#allocation5 + $0x18] sm:$0xff] %vm35_vm0, %v1112_v59 }
 0xd35   :  { %v1117_v60 = vpop.permute.xlu2 %1116  ;;  %v1213_v25 = vld [vmem:[#allocation3 + $0x8] sm:$0xff] }
 0xd36   :  { %1119 = vst.msk [vmem:[#allocation4 + $0x8] sm:$0xff] %vm35_vm0, %v1117_v60  ;;  %v1215_v18 = vpack.c.bf16 %v1213_v25, %v1213_v25 }
 0xd38   :  { %2234 = vmatmul.msk.bf16.vlgmr.msrb.gmra.mxu2 %vm35_vm0, %v1215_v18 }
 0xd3d   :  { %v1214_v61 = vld [vmem:[#allocation4 + $0x8] sm:$0xff] }
 0xd3e   :  { %1308 = vrot.lane.b32.xlu0 %v1214_v61, %s2586_s12 }
 0xda1   :  { %v1280_v62 = vpop.f32.mrf.mxu3 }
 0xda3   :  { %v1371_v14 = vpop.f32.mrf.mxu0 }
 0xda4   :  { %v1377_v1 = vadd.f32 %v1371_v14, %v227_v0  ;;  %v2379_v0 = vld [vmem:[%s3127_s3 + $0x8] sm:$0xff]  ;;  %v2378_v14 = vld [vmem:[%s3127_s3] sm:$0xff] }
 0xda5   :  { %1495 = vmatpush.bf16.msra.mxu2 %v2379_v0 }
 0xda6   :  { %v1378_v8 = vmul.f32 %v1377_v1, %v2700_v29 }
 0xda8   :  { %v2255_v2 = vmul.f32 -1.442695, %v1378_v8 }
 0xda9   :  { %v1282_v3 = vpop.f32.mrf.mxu3  ;;  %1496 = vmatpush.bf16.msra.mxu2 %v2378_v14 }
 0xdaa   :  { %2462 = vpow2.f32 %v2255_v2  ;;  %v2381_v2 = vld [vmem:[%s3128_s4 + $0x8] sm:$0xff]  ;;  %v2380_v3 = vld [vmem:[%s3128_s4] sm:$0xff] }
 0xdab   :  { %v1373_v10 = vpop.f32.mrf.mxu0  ;;  %1586 = vmatpush.bf16.msra.mxu3 %v2381_v2 }
 0xdaf   :  { %1587 = vmatpush.bf16.msra.mxu3 %v2380_v3 }
 0xdb0   :  { %v2463_v4 = vpop.eup %2462  ;;  %v1309_v52 = vpop.permute.xlu0 %1308 }
 0xdb1   :  { %v1382_v5 = vadd.f32 1.0, %v2463_v4  ;;  %v2377_v4 = vld [vmem:[%s3129_s5 + $0x8] sm:$0xff] }
 0xdb2   :  { %1459 = vmatpush.bf16.msrb.mxu1 %v2377_v4 }
 0xdb3   :  { %2464 = vrcp.f32 %v1382_v5  ;;  %v1394_v13 = vand.u32 2147483648, %v1382_v5  ;;  %v1392_v17 = vand.u32 2147483647, %v1382_v5  ;;  %vm1388_vm8 = vweird.f32 %v1382_v5 }
 0xdb5   :  { %v1395_v24 = vor.u32 1.1754944e-38, %v1394_v13  ;;  %vm1393_vm10 = vcmp.eq.f32.partialorder %v1392_v17, 8.507059e+37 }
 0xdb9   :  { %v2465_v6 = vpop.eup %2464 }
 0xdba   :  { %v1384_v7 = vmul.f32 %v2465_v6, %v1382_v5  ;;  %vm1389_vm7 = vweird.f32 %v2465_v6 }
 0xdbb   :  { %v1244_v9 = vpop.f32.mrf.mxu2  ;;  %vm1390_vm9 = vmor %vm1388_vm8, %vm1389_vm7 }
 0xdbc   :  { %v1385_v11 = vsub.f32 1.0, %v1384_v7  ;;  %v1281_v12 = vadd.f32 %v1280_v62, %v1244_v9 }
 0xdbe   :  { %v1284_v15 = vadd.f32 %v2973_v19, %v1281_v12  ;;  %v1386_v16 = vmul.f32 %v2465_v6, %v1385_v11  ;;  %v2376_v11 = vld [vmem:[%s3129_s5] sm:$0xff] }
 0xdbf   :  { %1460 = vmatpush.bf16.msrb.mxu1 %v2376_v11 }
 0xdc0   :  { %v1285_v22 = vmul.f32 %v1284_v15, %v2700_v29  ;;  %v1387_v23 = vadd.f32 %v2465_v6, %v1386_v16 }
 0xdc2   :  { %v2244_v26 = vmul.f32 -1.442695, %v1285_v22  ;;  %v1391_v27 = vsel %vm1390_vm9, %v2465_v6, %v1387_v23 }
 0xdc3   :  { %v1246_v28 = vpop.f32.mrf.mxu2  ;;  %v1396_v30 = vsel %vm1393_vm10, %v1395_v24, %v1391_v27  ;;  %v230_v24 = vadd.f32 %v2965_v63, %v2870_v20 }
 0xdc4   :  { %2466 = vpow2.f32 %v2244_v26  ;;  %v1398_v31 = vmul.f32 2.0, %v1396_v30 }
 0xdc6   :  { %v2256_v32 = vadd.f32 -1.0, %v1398_v31 }
 0xdc8   :  { %1406 = vrot.lane.b32.xlu2 %v2256_v32, %s2585_s2 }
 0xdca   :  { %v2467_v33 = vpop.eup %2466 }
 0xdcb   :  { %v1289_v34 = vadd.f32 1.0, %v2467_v33 }
 0xdcd   :  { %2468 = vrcp.f32 %v1289_v34  ;;  %v1301_v39 = vand.u32 2147483648, %v1289_v34  ;;  %v1299_v41 = vand.u32 2147483647, %v1289_v34  ;;  %vm1295_vm12 = vweird.f32 %v1289_v34 }
 0xdcf   :  { %v1302_v43 = vor.u32 1.1754944e-38, %v1301_v39  ;;  %vm1300_vm13 = vcmp.eq.f32.partialorder %v1299_v41, 8.507059e+37 }
 0xdd0   :  { %1401 = vrot.lane.b32.xlu2 %v1341_v35, %s2586_s12 }
 0xdd3   :  { %v2469_v36 = vpop.eup %2468 }
 0xdd4   :  { %v1291_v37 = vmul.f32 %v2469_v36, %v1289_v34  ;;  %vm1296_vm11 = vweird.f32 %v2469_v36 }
 0xdd5   :  { %vm1297_vm3 = vmor %vm1295_vm12, %vm1296_vm11 }
 0xdd6   :  { %v1292_v38 = vsub.f32 1.0, %v1291_v37 }
 0xdd8   :  { %v1293_v40 = vmul.f32 %v2469_v36, %v1292_v38 }
 0xdda   :  { %v1294_v42 = vadd.f32 %v2469_v36, %v1293_v40 }
 0xddc   :  { %v1298_v44 = vsel %vm1297_vm3, %v2469_v36, %v1294_v42 }
 0xddd   :  { %v1303_v45 = vsel %vm1300_vm13, %v1302_v43, %v1298_v44 }
 0xdde   :  { %v1305_v46 = vmul.f32 2.0, %v1303_v45  ;;  %v1311_v58 = vmul.f32 %v1309_v52, %v1303_v45 }
 0xde0   :  { %v2245_v47 = vadd.f32 -1.0, %v1305_v46 }
 0xde2   :  { %1313 = vrot.lane.b32.xlu1 %v2245_v47, %s2585_s2 }
 0xe22   :  { %v1407_v48 = vpop.permute.xlu2 %1406 }
 0xe23   :  { %v1409_v49 = vmul.f32 %v1407_v48, %v1396_v30 }
 0xe25   :  { %1411 = vrot.lane.b32.xlu0 %v1409_v49, %s2586_s12 }
 0xe2a   :  { %v1402_v53 = vpop.permute.xlu2 %1401 }
 0xe2b   :  { %v1404_v54 = vmul.f32 %v1402_v53, %v1396_v30 }
 0xe54   :  { %v1314_v50 = vpop.permute.xlu1 %1313 }
 0xe55   :  { %v1316_v51 = vmul.f32 %v1314_v50, %v1303_v45 }
 0xe57   :  { %1318 = vrot.lane.b32.xlu1 %v1316_v51, %s2586_s12 }
 0xe97   :  { %v1412_v55 = vpop.permute.xlu0 %1411 }
 0xe98   :  { %v1414_v56 = vadd.f32 %v1412_v55, %v1404_v54 }
 0xe9a   :  { %2470 = vtanh.f32 %v1414_v56 }
 0xea0   :  { %v2471_v57 = vpop.eup %2470 }
 0xea1   :  { %1417 = vrot.lane.b32.xlu2 %v2471_v57, %s2585_s2 }
 0xec9   :  { %v1319_v59 = vpop.permute.xlu1 %1318 }
 0xeca   :  { %v1321_v60 = vadd.f32 %v1319_v59, %v1311_v58 }
 0xecc   :  { %2472 = vtanh.f32 %v1321_v60 }
 0xed2   :  { %v2473_v25 = vpop.eup %2472 }
 0xed3   :  { %1324 = vrot.lane.b32.xlu1 %v2473_v25, %s2585_s2 }
 0xefb   :  { %v1418_v18 = vpop.permute.xlu2 %1417 }
 0xefc   :  { %v1420_v61 = vmul.f32 %v1418_v18, %v1396_v30 }
 0xefe   :  { %v1466_v62 = vpack.c.bf16 %v1420_v61, %v1420_v61  ;;  %1422 = vrot.lane.b32.xlu1 %v1420_v61, %s2586_s12 }
 0xf00   :  { %1472 = vrot.lane.b32.xlu2 %v1466_v62, %s2586_s12 }
 0xf06   :  { %1427 = vrot.lane.b32.xlu1 %v1414_v56, %s2587_s13 }
 0xf45   :  { %v1325_v1 = vpop.permute.xlu1 %1324 }
 0xf46   :  { %v1327_v8 = vmul.f32 %v1325_v1, %v1303_v45 }
 0xf48   :  { %1329 = vrot.lane.b32.xlu0 %v1327_v8, %s2586_s12 }
 0xf50   :  { %1334 = vrot.lane.b32.xlu0 %v1321_v60, %s2587_s13 }
 0xf5a   :  { %v1473_v10 = vpop.permute.xlu2 %1472 }
 0xf5b   :  { %2274 = vmatmul.msk.bf16.vlgmr.msra.gmra.mxu2 %vm35_vm0, %v1473_v10 }
 0xf70   :  { %v1423_v5 = vpop.permute.xlu1 %1422 }
 0xf71   :  { %1425 = vst.msk [vmem:[#allocation3] sm:$0xff] %vm35_vm0, %v1423_v5 }
 0xf78   :  { %v1428_v6 = vpop.permute.xlu1 %1427  ;;  %v1558_v7 = vld [vmem:[#allocation3] sm:$0xff] }
 0xf79   :  { %1430 = vst.msk [vmem:[#allocation4] sm:$0xff] %vm35_vm0, %v1428_v6  ;;  %v1560_v9 = vpack.c.bf16 %v1558_v7, %v1558_v7 }
 0xf7b   :  { %2285 = vmatmul.msk.bf16.vlgmr.msra.gmra.mxu3 %vm35_vm0, %v1560_v9 }
 0xf80   :  { %v1559_v45 = vld [vmem:[#allocation4] sm:$0xff] }
 0xfba   :  { %v1330_v12 = vpop.permute.xlu0 %1329 }
 0xfbb   :  { %1332 = vst.msk [vmem:[#allocation3 + $0x8] sm:$0xff] %vm35_vm0, %v1330_v12 }
 0xfbc   :  { %1339 = vst.msk [vmem:[#allocation5 + $0x20] sm:$0xff] %vm35_vm0, %v1330_v12 }
 0xfc2   :  { %v1335_v13 = vpop.permute.xlu0 %1334  ;;  %v1431_v15 = vld [vmem:[#allocation3 + $0x8] sm:$0xff] }
 0xfc3   :  { %1337 = vst.msk [vmem:[#allocation4 + $0x8] sm:$0xff] %vm35_vm0, %v1335_v13  ;;  %v1433_v16 = vpack.c.bf16 %v1431_v15, %v1431_v15 }
 0xfc5   :  { %2265 = vmatmul.msk.bf16.vlgmr.msrb.gmra.mxu1 %vm35_vm0, %v1433_v16 }
 0xfca   :  { %v1432_v17 = vld [vmem:[#allocation4 + $0x8] sm:$0xff] }
 0xfcb   :  { %1526 = vrot.lane.b32.xlu1 %v1432_v17, %s2586_s12 }
 0xfde   :  { %v1498_v22 = vpop.f32.mrf.mxu2 }
 0xfe6   :  { %v1500_v23 = vpop.f32.mrf.mxu2 }
 0xffe   :  { %v1589_v26 = vpop.f32.mrf.mxu3 }
 0xfff   :  { %v1595_v27 = vadd.f32 %v1589_v26, %v230_v24  ;;  %v2387_v24 = vld [vmem:[%s3128_s4 + $0x8] sm:$0xff]  ;;  %v2386_v26 = vld [vmem:[%s3128_s4] sm:$0xff] }
0x1000   :  { %1804 = vmatpush.bf16.msrb.mxu2 %v2387_v24 }
0x1001   :  { %v1596_v28 = vmul.f32 %v1595_v27, %v2700_v29  ;;  %v2383_v27 = vld [vmem:[%s3129_s5 + $0x8] sm:$0xff] }
0x1002   :  { %1677 = vmatpush.bf16.msrb.mxu0 %v2383_v27 }
0x1003   :  { %v2286_v30 = vmul.f32 -1.442695, %v1596_v28  ;;  %v2385_v28 = vld [vmem:[%s3127_s3 + $0x8] sm:$0xff] }
0x1004   :  { %1805 = vmatpush.bf16.msrb.mxu2 %v2386_v26  ;;  %1713 = vmatpush.bf16.msra.mxu1 %v2385_v28 }
0x1005   :  { %2474 = vpow2.f32 %v2286_v30  ;;  %v2384_v30 = vld [vmem:[%s3127_s3] sm:$0xff] }
0x1006   :  { %v1591_v31 = vpop.f32.mrf.mxu3 }
0x1007   :  { %v2382_v31 = vld [vmem:[%s3129_s5] sm:$0xff] }
0x1008   :  { %1714 = vmatpush.bf16.msra.mxu1 %v2384_v30  ;;  %1678 = vmatpush.bf16.msrb.mxu0 %v2382_v31 }
0x100b   :  { %v2475_v32 = vpop.eup %2474 }
0x100c   :  { %v1600_v33 = vadd.f32 1.0, %v2475_v32 }
0x100e   :  { %2476 = vrcp.f32 %v1600_v33  ;;  %v1612_v37 = vand.u32 2147483648, %v1600_v33  ;;  %v1610_v39 = vand.u32 2147483647, %v1600_v33  ;;  %vm1606_vm15 = vweird.f32 %v1600_v33 }
0x1010   :  { %v1613_v20 = vor.u32 1.1754944e-38, %v1612_v37  ;;  %vm1611_vm2 = vcmp.eq.f32.partialorder %v1610_v39, 8.507059e+37 }
0x1014   :  { %v2477_v34 = vpop.eup %2476 }
0x1015   :  { %v1602_v35 = vmul.f32 %v2477_v34, %v1600_v33  ;;  %vm1607_vm14 = vweird.f32 %v2477_v34 }
0x1016   :  { %vm1608_vm1 = vmor %vm1606_vm15, %vm1607_vm14 }
0x1017   :  { %v1603_v36 = vsub.f32 1.0, %v1602_v35 }
0x1019   :  { %v1604_v38 = vmul.f32 %v2477_v34, %v1603_v36 }
0x101b   :  { %v1605_v40 = vadd.f32 %v2477_v34, %v1604_v38 }
0x101d   :  { %v1609_v41 = vsel %vm1608_vm1, %v2477_v34, %v1605_v40 }
0x101e   :  { %v1614_v42 = vsel %vm1611_vm2, %v1613_v20, %v1609_v41  ;;  %v232_v20 = vadd.f32 %v2965_v63, %v2872_v21 }
0x101f   :  { %v1616_v43 = vmul.f32 2.0, %v1614_v42 }
0x1021   :  { %v2287_v44 = vadd.f32 -1.0, %v1616_v43 }
0x1023   :  { %1624 = vrot.lane.b32.xlu0 %v2287_v44, %s2585_s2 }
0x102b   :  { %1619 = vrot.lane.b32.xlu0 %v1559_v45, %s2586_s12 }
0x103d   :  { %v1527_v3 = vpop.permute.xlu1 %1526 }
0x1042   :  { %v1462_v46 = vpop.f32.mrf.mxu1 }
0x1043   :  { %v1499_v47 = vadd.f32 %v1498_v22, %v1462_v46 }
0x1045   :  { %v1502_v48 = vadd.f32 %v2973_v19, %v1499_v47 }
0x1047   :  { %v1503_v49 = vmul.f32 %v1502_v48, %v2700_v29 }
0x1049   :  { %v2275_v50 = vmul.f32 -1.442695, %v1503_v49 }
0x104a   :  { %v1464_v51 = vpop.f32.mrf.mxu1 }
0x104b   :  { %2478 = vpow2.f32 %v2275_v50 }
0x1051   :  { %v2479_v52 = vpop.eup %2478 }
0x1052   :  { %v1507_v53 = vadd.f32 1.0, %v2479_v52 }
0x1054   :  { %2480 = vrcp.f32 %v1507_v53  ;;  %v1519_v57 = vand.u32 2147483648, %v1507_v53  ;;  %v1517_v59 = vand.u32 2147483647, %v1507_v53  ;;  %vm1513_vm4 = vweird.f32 %v1507_v53 }
0x1056   :  { %v1520_v25 = vor.u32 1.1754944e-38, %v1519_v57  ;;  %vm1518_vm7 = vcmp.eq.f32.partialorder %v1517_v59, 8.507059e+37 }
0x105a   :  { %v2481_v54 = vpop.eup %2480 }
0x105b   :  { %v1509_v55 = vmul.f32 %v2481_v54, %v1507_v53  ;;  %vm1514_vm5 = vweird.f32 %v2481_v54 }
0x105c   :  { %vm1515_vm6 = vmor %vm1513_vm4, %vm1514_vm5 }
0x105d   :  { %v1510_v56 = vsub.f32 1.0, %v1509_v55 }
0x105f   :  { %v1511_v58 = vmul.f32 %v2481_v54, %v1510_v56 }
0x1061   :  { %v1512_v60 = vadd.f32 %v2481_v54, %v1511_v58 }
0x1063   :  { %v1516_v18 = vsel %vm1515_vm6, %v2481_v54, %v1512_v60 }
0x1064   :  { %v1521_v61 = vsel %vm1518_vm7, %v1520_v25, %v1516_v18 }
0x1065   :  { %v1523_v62 = vmul.f32 2.0, %v1521_v61  ;;  %v1529_v9 = vmul.f32 %v1527_v3, %v1521_v61 }
0x1067   :  { %v2276_v0 = vadd.f32 -1.0, %v1523_v62 }
0x1069   :  { %1531 = vrot.lane.b32.xlu2 %v2276_v0, %s2585_s2 }
0x1095   :  { %v1625_v14 = vpop.permute.xlu0 %1624 }
0x1096   :  { %v1627_v1 = vmul.f32 %v1625_v14, %v1614_v42 }
0x1098   :  { %1629 = vrot.lane.b32.xlu1 %v1627_v1, %s2586_s12 }
0x109d   :  { %v1620_v10 = vpop.permute.xlu0 %1619 }
0x109e   :  { %v1622_v4 = vmul.f32 %v1620_v10, %v1614_v42 }
0x10c3   :  { %v1532_v8 = vpop.permute.xlu2 %1531 }
0x10c4   :  { %v1534_v2 = vmul.f32 %v1532_v8, %v1521_v61 }
0x10c6   :  { %1536 = vrot.lane.b32.xlu2 %v1534_v2, %s2586_s12 }
0x110a   :  { %v1630_v5 = vpop.permute.xlu1 %1629 }
0x110b   :  { %v1632_v6 = vadd.f32 %v1630_v5, %v1622_v4 }
0x110d   :  { %2482 = vtanh.f32 %v1632_v6 }
0x1113   :  { %v2483_v7 = vpop.eup %2482 }
0x1114   :  { %1635 = vrot.lane.b32.xlu0 %v2483_v7, %s2585_s2 }
0x1120   :  { %v1537_v11 = vpop.permute.xlu2 %1536 }
0x1121   :  { %v1539_v12 = vadd.f32 %v1537_v11, %v1529_v9 }
0x1123   :  { %2484 = vtanh.f32 %v1539_v12 }
0x1129   :  { %v2485_v13 = vpop.eup %2484 }
0x112a   :  { %1542 = vrot.lane.b32.xlu2 %v2485_v13, %s2585_s2 }
0x1184   :  { %v1543_v15 = vpop.permute.xlu2 %1542 }
0x1185   :  { %v1545_v16 = vmul.f32 %v1543_v15, %v1521_v61 }
0x1186   :  { %v1636_v17 = vpop.permute.xlu0 %1635 }
0x1187   :  { %v1638_v22 = vmul.f32 %v1636_v17, %v1614_v42  ;;  %1547 = vrot.lane.b32.xlu1 %v1545_v16, %s2586_s12 }
0x1189   :  { %v1684_v23 = vpack.c.bf16 %v1638_v22, %v1638_v22  ;;  %1640 = vrot.lane.b32.xlu2 %v1638_v22, %s2586_s12 }
0x118b   :  { %1690 = vrot.lane.b32.xlu0 %v1684_v23, %s2586_s12 }
0x118f   :  { %1552 = vrot.lane.b32.xlu1 %v1539_v12, %s2587_s13 }
0x1193   :  { %1645 = vrot.lane.b32.xlu0 %v1632_v6, %s2587_s13 }
0x11e3   :  { %v1641_v32 = vpop.permute.xlu2 %1640 }
0x11e4   :  { %1643 = vst.msk [vmem:[#allocation3] sm:$0xff] %vm35_vm0, %v1641_v32 }
0x11eb   :  { %v1776_v33 = vld [vmem:[#allocation3] sm:$0xff] }
0x11ec   :  { %v1778_v34 = vpack.c.bf16 %v1776_v33, %v1776_v33 }
0x11ee   :  { %2316 = vmatmul.msk.bf16.vlgmr.msrb.gmra.mxu2 %vm35_vm0, %v1778_v34 }
0x11f9   :  { %v1548_v35 = vpop.permute.xlu1 %1547 }
0x11fa   :  { %1550 = vst.msk [vmem:[#allocation3 + $0x8] sm:$0xff] %vm35_vm0, %v1548_v35 }
0x11fb   :  { %1557 = vst.msk [vmem:[#allocation5 + $0x28] sm:$0xff] %vm35_vm0, %v1548_v35 }
0x11fd   :  { %v1691_v36 = vpop.permute.xlu0 %1690 }
0x11fe   :  { %2305 = vmatmul.msk.bf16.vlgmr.msra.gmra.mxu1 %vm35_vm0, %v1691_v36 }
0x1201   :  { %v1553_v37 = vpop.permute.xlu1 %1552  ;;  %v1649_v38 = vld [vmem:[#allocation3 + $0x8] sm:$0xff] }
0x1202   :  { %1555 = vst.msk [vmem:[#allocation4 + $0x8] sm:$0xff] %vm35_vm0, %v1553_v37  ;;  %v1651_v39 = vpack.c.bf16 %v1649_v38, %v1649_v38  ;;  %v2389_v37 = vld [vmem:[%s3129_s5 + $0x8] sm:$0xff] }
0x1203   :  { %1895 = vmatpush.bf16.msrb.mxu3 %v2389_v37 }
0x1204   :  { %2296 = vmatmul.msk.bf16.vlgmr.msrb.gmra.mxu0 %vm35_vm0, %v1651_v39 }
0x1205   :  { %v1646_v40 = vpop.permute.xlu0 %1645 }
0x1206   :  { %1648 = vst.msk [vmem:[#allocation4] sm:$0xff] %vm35_vm0, %v1646_v40 }
0x1209   :  { %v1650_v16 = vld [vmem:[#allocation4 + $0x8] sm:$0xff] }
0x120d   :  { %v1777_v10 = vld [vmem:[#allocation4] sm:$0xff] }
0x1271   :  { %v1807_v41 = vpop.f32.mrf.mxu2 }
0x1272   :  { %v1813_v42 = vadd.f32 %v1807_v41, %v232_v20 }
0x1274   :  { %v1814_v43 = vmul.f32 %v1813_v42, %v2700_v29 }
0x1276   :  { %v2317_v44 = vmul.f32 -1.442695, %v1814_v43 }
0x1278   :  { %2486 = vpow2.f32 %v2317_v44  ;;  %v2391_v44 = vld [vmem:[%s3127_s3 + $0x8] sm:$0xff] }
0x1279   :  { %v1809_v45 = vpop.f32.mrf.mxu2  ;;  %1931 = vmatpush.bf16.msra.mxu0 %v2391_v44 }
0x127a   :  { %v2388_v45 = vld [vmem:[%s3129_s5] sm:$0xff] }
0x127b   :  { %v1716_v46 = vpop.f32.mrf.mxu1  ;;  %1896 = vmatpush.bf16.msrb.mxu3 %v2388_v45 }
0x127e   :  { %v2487_v47 = vpop.eup %2486 }
0x127f   :  { %v1818_v48 = vadd.f32 1.0, %v2487_v47 }
0x1281   :  { %2488 = vrcp.f32 %v1818_v48  ;;  %v1680_v49 = vpop.f32.mrf.mxu0  ;;  %v1830_v57 = vand.u32 2147483648, %v1818_v48  ;;  %v1828_v59 = vand.u32 2147483647, %v1818_v48  ;;  %vm1824_vm9 = vweird.f32 %v1818_v48 }
0x1282   :  { %v1717_v50 = vadd.f32 %v1716_v46, %v1680_v49  ;;  %v2390_v46 = vld [vmem:[%s3127_s3] sm:$0xff]  ;;  %s2588_s3 = smov [#allocation5]  }
0x1283   :  { %v1718_v51 = vpop.f32.mrf.mxu1  ;;  %v1831_v25 = vor.u32 1.1754944e-38, %v1830_v57  ;;  %vm1829_vm11 = vcmp.eq.f32.partialorder %v1828_v59, 8.507059e+37  ;;  %1932 = vmatpush.bf16.msra.mxu0 %v2390_v46  ;;  %s2006_s5 = sshll.u32 %s2588_s3, 4  ;;  %s2007_s5 = int_to_ptr.vmem [resolvable:$true] %s2006_s5 }
0x1284   :  { %v1720_v52 = vadd.f32 %v2973_v19, %v1717_v50 }
0x1286   :  { %v1721_v53 = vmul.f32 %v1720_v52, %v2700_v29 }
0x1287   :  { %v2489_v54 = vpop.eup %2488 }
0x1288   :  { %v1820_v21 = vmul.f32 %v2489_v54, %v1818_v48  ;;  %v2306_v63 = vmul.f32 -1.442695, %v1721_v53  ;;  %vm1825_vm8 = vweird.f32 %v2489_v54 }
0x1289   :  { %v1682_v55 = vpop.f32.mrf.mxu0  ;;  %vm1826_vm10 = vmor %vm1824_vm9, %vm1825_vm8 }
0x128a   :  { %v1821_v56 = vsub.f32 1.0, %v1820_v21  ;;  %2490 = vpow2.f32 %v2306_v63 }
0x128c   :  { %v1822_v58 = vmul.f32 %v2489_v54, %v1821_v56 }
0x128e   :  { %v1823_v60 = vadd.f32 %v2489_v54, %v1822_v58 }
0x1290   :  { %v2491_v18 = vpop.eup %2490  ;;  %v1827_v61 = vsel %vm1826_vm10, %v2489_v54, %v1823_v60 }
0x1291   :  { %v1725_v62 = vadd.f32 1.0, %v2491_v18  ;;  %v1832_v0 = vsel %vm1829_vm11, %v1831_v25, %v1827_v61 }
0x1292   :  { %v1834_v14 = vmul.f32 2.0, %v1832_v0 }
0x1293   :  { %2492 = vrcp.f32 %v1725_v62  ;;  %v1737_v4 = vand.u32 2147483648, %v1725_v62  ;;  %v1735_v6 = vand.u32 2147483647, %v1725_v62  ;;  %vm1731_vm3 = vweird.f32 %v1725_v62 }
0x1294   :  { %v2318_v1 = vadd.f32 -1.0, %v1834_v14 }
0x1295   :  { %v1738_v9 = vor.u32 1.1754944e-38, %v1737_v4  ;;  %vm1736_vm14 = vcmp.eq.f32.partialorder %v1735_v6, 8.507059e+37 }
0x1296   :  { %1842 = vrot.lane.b32.xlu1 %v2318_v1, %s2585_s2 }
0x1299   :  { %v2493_v8 = vpop.eup %2492 }
0x129a   :  { %v1727_v2 = vmul.f32 %v2493_v8, %v1725_v62  ;;  %vm1732_vm12 = vweird.f32 %v2493_v8 }
0x129b   :  { %vm1733_vm13 = vmor %vm1731_vm3, %vm1732_vm12 }
0x129c   :  { %v1728_v3 = vsub.f32 1.0, %v1727_v2 }
0x129e   :  { %1837 = vrot.lane.b32.xlu1 %v1777_v10, %s2586_s12  ;;  %v1729_v5 = vmul.f32 %v2493_v8, %v1728_v3 }
0x12a0   :  { %v1730_v7 = vadd.f32 %v2493_v8, %v1729_v5 }
0x12a2   :  { %v1734_v11 = vsel %vm1733_vm13, %v2493_v8, %v1730_v7 }
0x12a3   :  { %v1739_v12 = vsel %vm1736_vm14, %v1738_v9, %v1734_v11 }
0x12a4   :  { %v1741_v13 = vmul.f32 2.0, %v1739_v12 }
0x12a6   :  { %v2307_v15 = vadd.f32 -1.0, %v1741_v13 }
0x12a8   :  { %1749 = vrot.lane.b32.xlu2 %v2307_v15, %s2585_s2 }
0x12b0   :  { %1744 = vrot.lane.b32.xlu2 %v1650_v16, %s2586_s12 }
0x1302   :  { %v1750_v17 = vpop.permute.xlu2 %1749 }
0x1303   :  { %v1752_v22 = vmul.f32 %v1750_v17, %v1739_v12 }
0x1305   :  { %1754 = vrot.lane.b32.xlu0 %v1752_v22, %s2586_s12 }
0x1308   :  { %v1843_v23 = vpop.permute.xlu1 %1842 }
0x1309   :  { %v1845_v24 = vmul.f32 %v1843_v23, %v1832_v0 }
0x130a   :  { %v1745_v26 = vpop.permute.xlu2 %1744 }
0x130b   :  { %1847 = vrot.lane.b32.xlu2 %v1845_v24, %s2586_s12  ;;  %v1747_v33 = vmul.f32 %v1745_v26, %v1739_v12 }
0x1310   :  { %v1838_v27 = vpop.permute.xlu1 %1837 }
0x1311   :  { %v1840_v28 = vmul.f32 %v1838_v27, %v1832_v0 }
0x1365   :  { %v1848_v30 = vpop.permute.xlu2 %1847 }
0x1366   :  { %v3070_v31 = vadd.f32 %v1848_v30, %v1840_v28 }
0x1368   :  { %2494 = vtanh.f32 %v3070_v31 }
0x136e   :  { %v2495_v32 = vpop.eup %2494 }
0x136f   :  { %1853 = vrot.lane.b32.xlu1 %v2495_v32, %s2585_s2 }
0x1377   :  { %v1755_v34 = vpop.permute.xlu0 %1754 }
0x1378   :  { %v1757_v35 = vadd.f32 %v1755_v34, %v1747_v33 }
0x137a   :  { %2496 = vtanh.f32 %v1757_v35  ;;  %1770 = vrot.lane.b32.xlu1 %v1757_v35, %s2587_s13 }
0x1380   :  { %v2497_v36 = vpop.eup %2496 }
0x1381   :  { %1760 = vrot.lane.b32.xlu0 %v2497_v36, %s2585_s2 }
0x13e1   :  { %v1854_v38 = vpop.permute.xlu1 %1853 }
0x13e2   :  { %v1856_v39 = vmul.f32 %v1854_v38, %v1832_v0 }
0x13e4   :  { %v1902_v40 = vpack.c.bf16 %v1856_v39, %v1856_v39 }
0x13e6   :  { %1908 = vrot.lane.b32.xlu0 %v1902_v40, %s2586_s12 }
0x13ec   :  { %v1771_v20 = vpop.permute.xlu1 %1770 }
0x13ed   :  { %1773 = vst.msk [vmem:[#allocation4 + $0x8] sm:$0xff] %vm35_vm0, %v1771_v20 }
0x13f3   :  { %v1761_v41 = vpop.permute.xlu0 %1760 }
0x13f4   :  { %v1763_v42 = vmul.f32 %v1761_v41, %v1739_v12  ;;  %v1868_v43 = vld [vmem:[#allocation4 + $0x8] sm:$0xff] }
0x13f5   :  { %1962 = vrot.lane.b32.xlu0 %v1868_v43, %s2586_s12 }
0x13f6   :  { %1765 = vrot.lane.b32.xlu2 %v1763_v42, %s2586_s12 }
0x13fd   :  { %1858 = vrot.lane.b32.xlu0 %v1856_v39, %s2586_s12 }
0x1450   :  { %v1766_v47 = vpop.permute.xlu2 %1765 }
0x1451   :  { %1768 = vst.msk [vmem:[#allocation3 + $0x8] sm:$0xff] %vm35_vm0, %v1766_v47 }
0x1452   :  { %1775 = vst.msk [vmem:[#allocation5 + $0x30] sm:$0xff] %vm35_vm0, %v1766_v47 }
0x1458   :  { %v1909_v48 = vpop.permute.xlu0 %1908  ;;  %v1867_v49 = vld [vmem:[#allocation3 + $0x8] sm:$0xff] }
0x1459   :  { %2336 = vmatmul.msk.bf16.vlgmr.msra.gmra.mxu0 %vm35_vm0, %v1909_v48  ;;  %v1869_v50 = vpack.c.bf16 %v1867_v49, %v1867_v49 }
0x145b   :  { %2327 = vmatmul.msk.bf16.vlgmr.msrb.gmra.mxu3 %vm35_vm0, %v1869_v50 }
0x1467   :  { %v1963_v51 = vpop.permute.xlu0 %1962 }
0x146f   :  { %v1859_v52 = vpop.permute.xlu0 %1858 }
0x1470   :  { %1861 = vst.msk [vmem:[#allocation3] sm:$0xff] %vm35_vm0, %v1859_v52 }
0x1477   :  { %v1994_v53 = vld [vmem:[#allocation3] sm:$0xff] }
0x1478   :  { %1996 = vst.msk [vmem:[#allocation7] sm:$0xff] %vm35_vm0, %v1994_v53 }
0x14d6   :  { %v1934_v54 = vpop.f32.mrf.mxu0 }
0x14de   :  { %v1898_v21 = vpop.f32.mrf.mxu3  ;;  %v1936_v63 = vpop.f32.mrf.mxu0 }
0x14df   :  { %v1935_v55 = vadd.f32 %v1934_v54, %v1898_v21 }
0x14e1   :  { %v1938_v56 = vadd.f32 %v2973_v19, %v1935_v55 }
0x14e3   :  { %v1939_v57 = vmul.f32 %v1938_v56, %v2700_v29 }
0x14e5   :  { %v2337_v58 = vmul.f32 -1.442695, %v1939_v57 }
0x14e6   :  { %v1900_v59 = vpop.f32.mrf.mxu3 }
0x14e7   :  { %2498 = vpow2.f32 %v2337_v58 }
0x14ed   :  { %v2499_v60 = vpop.eup %2498 }
0x14ee   :  { %v1943_v25 = vadd.f32 1.0, %v2499_v60 }
0x14f0   :  { %2500 = vrcp.f32 %v1943_v25  ;;  %v1955_v0 = vand.u32 2147483648, %v1943_v25  ;;  %v1953_v1 = vand.u32 2147483647, %v1943_v25  ;;  %vm1949_vm1 = vweird.f32 %v1943_v25 }
0x14f2   :  { %v1956_v2 = vor.u32 1.1754944e-38, %v1955_v0  ;;  %vm1954_vm5 = vcmp.eq.f32.partialorder %v1953_v1, 8.507059e+37 }
0x14f6   :  { %v2501_v18 = vpop.eup %2500 }
0x14f7   :  { %v1945_v61 = vmul.f32 %v2501_v18, %v1943_v25  ;;  %vm1950_vm15 = vweird.f32 %v2501_v18 }
0x14f8   :  { %vm1951_vm2 = vmor %vm1949_vm1, %vm1950_vm15 }
0x14f9   :  { %v1946_v62 = vsub.f32 1.0, %v1945_v61 }
0x14fb   :  { %v1947_v14 = vmul.f32 %v2501_v18, %v1946_v62 }
0x14fd   :  { %v1948_v8 = vadd.f32 %v2501_v18, %v1947_v14 }
0x14ff   :  { %v1952_v19 = vsel %vm1951_vm2, %v2501_v18, %v1948_v8 }
0x1500   :  { %v1957_v29 = vsel %vm1954_vm5, %v1956_v2, %v1952_v19 }
0x1501   :  { %v1959_v3 = vmul.f32 2.0, %v1957_v29  ;;  %v1965_v6 = vmul.f32 %v1963_v51, %v1957_v29 }
0x1503   :  { %v2338_v10 = vadd.f32 -1.0, %v1959_v3 }
0x1505   :  { %1967 = vrot.lane.b32.xlu2 %v2338_v10, %s2585_s2 }
0x155f   :  { %v1968_v4 = vpop.permute.xlu2 %1967 }
0x1560   :  { %v1970_v5 = vmul.f32 %v1968_v4, %v1957_v29 }
0x1562   :  { %1972 = vrot.lane.b32.xlu1 %v1970_v5, %s2586_s12 }
0x15d4   :  { %v1973_v7 = vpop.permute.xlu1 %1972 }
0x15d5   :  { %v1975_v9 = vadd.f32 %v1973_v7, %v1965_v6 }
0x15d7   :  { %2502 = vtanh.f32 %v1975_v9  ;;  %1988 = vrot.lane.b32.xlu0 %v1975_v9, %s2587_s13 }
0x15dd   :  { %v2503_v11 = vpop.eup %2502 }
0x15de   :  { %1978 = vrot.lane.b32.xlu2 %v2503_v11, %s2585_s2 }
0x15e6   :  { %1863 = vrot.lane.b32.xlu2 %v3070_v31, %s2587_s13 }
0x1638   :  { %v1979_v12 = vpop.permute.xlu2 %1978 }
0x1639   :  { %v1981_v13 = vmul.f32 %v1979_v12, %v1957_v29 }
0x163b   :  { %1983 = vrot.lane.b32.xlu1 %v1981_v13, %s2586_s12  ;;  %s2589_s12 = smov 128  }
0x1640   :  { %v1864_v15 = vpop.permute.xlu2 %1863 }
0x1641   :  { %1866 = vst.msk [vmem:[#allocation4] sm:$0xff] %vm35_vm0, %v1864_v15 }
0x1648   :  { %v1998_v16 = vld [vmem:[#allocation4] sm:$0xff] }
0x1649   :  { %v1989_v17 = vpop.permute.xlu0 %1988  ;;  %2000 = vst.msk [vmem:[#allocation9] sm:$0xff] %vm35_vm0, %v1998_v16 }
0x164a   :  { %1991 = vst.msk [vmem:[#allocation4 + $0x8] sm:$0xff] %vm35_vm0, %v1989_v17 }
0x1651   :  { %v1999_v22 = vld [vmem:[#allocation4 + $0x8] sm:$0xff] }
0x1652   :  { %2001 = vst.msk [vmem:[#allocation9 + $0x8] sm:$0xff] %vm35_vm0, %v1999_v22 }
0x16ad   :  { %v1984_v23 = vpop.permute.xlu1 %1983 }
0x16ae   :  { %1986 = vst.msk [vmem:[#allocation3 + $0x8] sm:$0xff] %vm35_vm0, %v1984_v23 }
0x16af   :  { %1993 = vst.msk [vmem:[#allocation5 + $0x38] sm:$0xff] %vm35_vm0, %v1984_v23 }
0x16b0   :  { %2014 = dma.vmem_to_hbm [thread:$0]  %s2007_s5, 1024, %s2009_s20, [#allocation6], %s2589_s12, %s2589_s12, %s2590_s21  }
0x16b5   :  { %v1995_v24 = vld [vmem:[#allocation3 + $0x8] sm:$0xff] }
0x16b6   :  { %1997 = vst.msk [vmem:[#allocation7 + $0x8] sm:$0xff] %vm35_vm0, %v1995_v24 }
0x16b7   :  { %2027 = dma.vmem_to_hbm [thread:$0]  %s2020_s23, 256, %s2022_s26, [#allocation8], %s2589_s12, %s2589_s12, %s2590_s21  }
0x16b8   :  { %2040 = dma.vmem_to_hbm [thread:$0]  %s2033_s27, 256, %s2035_s1, [#allocation8], %s2589_s12, %s2589_s12, %s2590_s21  }
0x16b9   :  { %2578 = dma.done.wait [#allocation6], 1024  }
0x16ba   :  { %2579 = vsyncadd [#allocation6], 4294966272 }
0x16bb   :  { %2580 = dma.done.wait [#allocation8], 512  }
0x16bc   :  { %2581 = vsyncadd [#allocation8], 4294966784 }
0x16bd   :  { %2053 = vsyncpa [#allocation6], 1 }
0x16be   :  { %2054 = vsyncpa [#allocation8], 1 }

</bundles_post_ra>
